<compile_context>
chip_gen: v7x
topology: tpu7x:2x2x1
jax: 0.10.0
libtpu: 0.0.40
codegen_flags: <defaults>
</compile_context>

<pallas_src>
import functools
from math import sqrt

import jax
import jax.numpy as jnp
from jax import lax
from jax.experimental import pallas as pl
from jax.experimental.pallas import tpu as pltpu


# ------------------------------ helpers -------------------------------------

def _gelu_tanh(x):
    c = 0.7978845608028654  # sqrt(2/pi)
    return 0.5 * x * (1.0 + jnp.tanh(c * (x + 0.044715 * x * x * x)))


# ------------------------------ fused kernel ---------------------------------

def _perceiver_kernel(
        ctx_ref, qry_ref,
        ca_ln_g, ca_ln_b, ca_lnc_g, ca_lnc_b, ca_wq, ca_wkv, ca_wo, ca_bo,
        cf_ln_g, cf_ln_b, cf_w1, cf_b1, cf_w2, cf_b2,
        sa_ln_g, sa_ln_b, sa_wq, sa_wkv, sa_wo, sa_bo,
        sf_ln_g, sf_ln_b, sf_w1, sf_b1, sf_w2, sf_b2,
        o_ref, *, heads, depth, eps):
    """One grid step == one batch element; everything lives in VMEM/vregs."""

    def ln(x, g, b):
        xf = x.astype(jnp.float32)
        mu = jnp.mean(xf, axis=-1, keepdims=True)
        xc = xf - mu
        var = jnp.mean(xc * xc, axis=-1, keepdims=True)
        return xc * lax.rsqrt(var + eps) * g + b

    def attention(xn, cn, wq, wkv, wo, bo):
        nq = xn.shape[0]
        inner = wq.shape[1]
        dh = inner // heads
        scale = float(dh) ** -0.5
        q = jnp.dot(xn, wq, preferred_element_type=jnp.float32)     # (Nq, inner)
        kv = jnp.dot(cn, wkv, preferred_element_type=jnp.float32)   # (Nk, 2*inner)
        k_all = kv[:, :inner]
        v_all = kv[:, inner:]
        out = jnp.zeros((nq, wo.shape[1]), jnp.float32)
        # Static per-head loop (unrolled at trace time); head merge is fused
        # into the output projection so no concatenate / transpose is needed.
        for h in range(heads):
            sl = slice(h * dh, (h + 1) * dh)
            qh, kh, vh = q[:, sl], k_all[:, sl], v_all[:, sl]
            s = lax.dot_general(qh, kh, (((1,), (1,)), ((), ())),
                                preferred_element_type=jnp.float32) * scale
            m = jnp.max(s, axis=-1, keepdims=True)
            p = jnp.exp(s - m)
            denom = jnp.sum(p, axis=-1, keepdims=True)
            attn = p * pl.reciprocal(denom, approx=True)
            oh = jnp.dot(attn, vh, preferred_element_type=jnp.float32)
            out = out + jnp.dot(oh, wo[sl, :], preferred_element_type=jnp.float32)
        return out + bo

    def ffn(xn, w1, b1, w2, b2):
        h = jnp.dot(xn, w1, preferred_element_type=jnp.float32) + b1
        h = _gelu_tanh(h)
        return jnp.dot(h, w2, preferred_element_type=jnp.float32) + b2

    ctx = ctx_ref[...].astype(jnp.float32)      # (Nk, Cd)
    x = qry_ref[...].astype(jnp.float32)        # (Nq, dim) -- querys broadcast

    # cross-attention (+ residual)
    xn = ln(x, ca_ln_g[...], ca_ln_b[...])
    cn = ln(ctx, ca_lnc_g[...], ca_lnc_b[...])
    x = attention(xn, cn, ca_wq[...], ca_wkv[...], ca_wo[...], ca_bo[...]) + x

    # cross FFN (+ residual)
    xn = ln(x, cf_ln_g[...], cf_ln_b[...])
    x = ffn(xn, cf_w1[...], cf_b1[...], cf_w2[...], cf_b2[...]) + x

    # self-attention stack (no residuals, matching the torch module)
    for l in range(depth):
        xn = ln(x, sa_ln_g[l], sa_ln_b[l])
        x = attention(xn, xn, sa_wq[l], sa_wkv[l], sa_wo[l], sa_bo[l])
        xn = ln(x, sf_ln_g[l], sf_ln_b[l])
        x = ffn(xn, sf_w1[l], sf_b1[l], sf_w2[l], sf_b2[l])

    o_ref[...] = x.astype(o_ref.dtype)


# ------------------------------ wrapper --------------------------------------

def _full_spec(shape):
    """Full-array block that is grid-invariant (stays resident in VMEM)."""
    zero = (0,) * len(shape)
    return pl.BlockSpec(shape, lambda i, _z=zero: _z)


def pack_perceiver_params(params):
    """Flatten/stack the structured params ONCE into the kernel arg order."""
    ca, cf = params["cross_attn"], params["cross_ffn"]
    layers = params["self_layers"]

    def row(v):
        return v.reshape(1, -1).astype(jnp.float32)

    if layers:
        def srow(a, k):
            return jnp.stack([l[a][k].reshape(1, -1) for l in layers]).astype(jnp.float32)

        def smat(a, k):
            return jnp.stack([l[a][k] for l in layers]).astype(jnp.float32)

        self_stacks = (
            srow("attn", "ln_g"), srow("attn", "ln_b"),
            smat("attn", "wq"), smat("attn", "wkv"),
            smat("attn", "wo"), srow("attn", "bo"),
            srow("ffn", "ln_g"), srow("ffn", "ln_b"),
            smat("ffn", "w1"), srow("ffn", "b1"),
            smat("ffn", "w2"), srow("ffn", "b2"),
        )
    else:  # depth == 0: unused dummies (kernel loop runs zero times)
        dim, inner = ca["wq"].shape
        mlp = cf["w1"].shape[1]
        z = lambda *s: jnp.zeros(s, jnp.float32)
        self_stacks = (z(1, 1, dim), z(1, 1, dim), z(1, dim, inner),
                       z(1, dim, 2 * inner), z(1, inner, dim), z(1, 1, dim),
                       z(1, 1, dim), z(1, 1, dim), z(1, dim, mlp),
                       z(1, 1, mlp), z(1, mlp, dim), z(1, 1, dim))

    return (
        params["querys"][0].astype(jnp.float32),              # (Nq, dim)
        row(ca["ln_g"]), row(ca["ln_b"]),
        row(ca["lnc_g"]), row(ca["lnc_b"]),
        ca["wq"].astype(jnp.float32), ca["wkv"].astype(jnp.float32),
        ca["wo"].astype(jnp.float32), row(ca["bo"]),
        row(cf["ln_g"]), row(cf["ln_b"]),
        cf["w1"].astype(jnp.float32), row(cf["b1"]),
        cf["w2"].astype(jnp.float32), row(cf["b2"]),
    ) + self_stacks


def perceiver_forward(packed, context, *, heads, depth, eps=1e-5):
    context = context.astype(jnp.float32)
    b, nk, cd = context.shape
    nq, dim = packed[0].shape

    in_specs = [pl.BlockSpec((None, nk, cd), lambda i: (i, 0, 0))]
    in_specs += [_full_spec(a.shape) for a in packed]

    return pl.pallas_call(
        functools.partial(_perceiver_kernel, heads=heads, depth=depth, eps=eps),
        out_shape=jax.ShapeDtypeStruct((b, nq, dim), jnp.float32),
        grid_spec=pltpu.PrefetchScalarGridSpec(
            num_scalar_prefetch=0,
            grid=(b,),
            in_specs=in_specs,
            out_specs=pl.BlockSpec((None, nq, dim), lambda i: (i, 0, 0)),
        ),
        compiler_params=pltpu.CompilerParams(
            dimension_semantics=("parallel",),
            vmem_limit_bytes=32 * 1024 * 1024,
        ),
    )(context, *packed)


# ------------------------------ params & reference ---------------------------

def init_perceiver_params(key, *, dim, context_dim, num_querys, depth,
                          heads, dim_head, mlp_dim):
    inner = heads * dim_head
    keys = iter(jax.random.split(key, 16 + 16 * max(depth, 1)))

    def lin_w(fan_in, fan_out):
        lim = 1.0 / sqrt(fan_in)
        return jax.random.uniform(next(keys), (fan_in, fan_out),
                                  jnp.float32, -lim, lim)

    def lin_b(fan_in, fan_out):
        lim = 1.0 / sqrt(fan_in)
        return jax.random.uniform(next(keys), (fan_out,),
                                  jnp.float32, -lim, lim)

    def attn_params(q_dim, c_dim, with_context_norm):
        p = {
            "ln_g": jnp.ones((q_dim,), jnp.float32),
            "ln_b": jnp.zeros((q_dim,), jnp.float32),
            "wq": lin_w(q_dim, inner),
            "wkv": lin_w(c_dim, 2 * inner),
            "wo": lin_w(inner, q_dim),
            "bo": lin_b(inner, q_dim),
        }
        if with_context_norm:
            p["lnc_g"] = jnp.ones((c_dim,), jnp.float32)
            p["lnc_b"] = jnp.zeros((c_dim,), jnp.float32)
        return p

    def ffn_params(d):
        return {
            "ln_g": jnp.ones((d,), jnp.float32),
            "ln_b": jnp.zeros((d,), jnp.float32),
            "w1": lin_w(d, mlp_dim),
            "b1": lin_b(d, mlp_dim),
            "w2": lin_w(mlp_dim, d),
            "b2": lin_b(mlp_dim, d),
        }

    return {
        "querys": 0.2 * jax.random.normal(next(keys), (1, num_querys, dim),
                                          jnp.float32),
        "cross_attn": attn_params(dim, context_dim, True),
        "cross_ffn": ffn_params(dim),
        "self_layers": [
            {"attn": attn_params(dim, dim, False), "ffn": ffn_params(dim)}
            for _ in range(depth)
        ],
    }


def _ref_layernorm(x, g, b, eps=1e-5):
    mu = jnp.mean(x, axis=-1, keepdims=True)
    var = jnp.mean((x - mu) ** 2, axis=-1, keepdims=True)
    return (x - mu) / jnp.sqrt(var + eps) * g + b


def _ref_attention(xn, cn, p, heads):
    b, nq, _ = xn.shape
    inner = p["wq"].shape[1]
    dh = inner // heads
    q = xn @ p["wq"]
    kv = cn @ p["wkv"]
    k, v = kv[..., :inner], kv[..., inner:]

    def hs(t):
        return t.reshape(t.shape[0], t.shape[1], heads, dh).transpose(0, 2, 1, 3)

    s = jnp.einsum("bhid,bhjd->bhij", hs(q), hs(k)) * dh ** -0.5
    a = jax.nn.softmax(s, axis=-1)
    o = jnp.einsum("bhij,bhjd->bhid", a, hs(v))
    o = o.transpose(0, 2, 1, 3).reshape(b, nq, inner)
    return o @ p["wo"] + p["bo"]


def _ref_ffn(xn, p):
    return _gelu_tanh(xn @ p["w1"] + p["b1"]) @ p["w2"] + p["b2"]


def perceiver_reference(params, context, heads):
    b = context.shape[0]
    q = params["querys"]
    x = jnp.broadcast_to(q, (b,) + q.shape[1:]).astype(jnp.float32)
    ca, cf = params["cross_attn"], params["cross_ffn"]
    xn = _ref_layernorm(x, ca["ln_g"], ca["ln_b"])
    cn = _ref_layernorm(context, ca["lnc_g"], ca["lnc_b"])
    x = _ref_attention(xn, cn, ca, heads) + x
    xn = _ref_layernorm(x, cf["ln_g"], cf["ln_b"])
    x = _ref_ffn(xn, cf) + x
    for layer in params["self_layers"]:
        sa, sf = layer["attn"], layer["ffn"]
        xn = _ref_layernorm(x, sa["ln_g"], sa["ln_b"])
        x = _ref_attention(xn, xn, sa, heads)
        xn = _ref_layernorm(x, sf["ln_g"], sf["ln_b"])
        x = _ref_ffn(xn, sf)
    return x


# ------------------------------ main -----------------------------------------

if __name__ == "__main__":
    key = jax.random.PRNGKey(0)
    k_par, k_ctx = jax.random.split(key)

    batch, seq = 2, 16
    dim, context_dim = 32, 32
    num_querys, depth = 8, 2
    heads, dim_head, mlp_dim = 4, 16, 64

    params = init_perceiver_params(
        k_par, dim=dim, context_dim=context_dim, num_querys=num_querys,
        depth=depth, heads=heads, dim_head=dim_head, mlp_dim=mlp_dim)
    context = jax.random.normal(k_ctx, (batch, seq, context_dim), jnp.float32)

    packed = pack_perceiver_params(params)          # one-time setup
    fwd = jax.jit(functools.partial(perceiver_forward, heads=heads, depth=depth))
    y = fwd(packed, context)
    y = jax.block_until_ready(y)

    y_ref = perceiver_reference(params, context, heads)
    assert y.shape == (batch, num_querys, dim), y.shape
    max_err = float(jnp.max(jnp.abs(y - y_ref)))
    assert jnp.allclose(y, y_ref, atol=2e-2, rtol=2e-2), max_err

    print("KERNEL_OK")
</pallas_src>

<mosaic_0001>
module attributes {stable_mosaic.version = 11 : i64} {
  func.func @_perceiver_kernel(%arg0: i32, %arg1: memref<1x16x32xf32, #tpu.memory_space<vmem>>, %arg2: memref<8x32xf32, #tpu.memory_space<vmem>>, %arg3: memref<1x32xf32, #tpu.memory_space<vmem>>, %arg4: memref<1x32xf32, #tpu.memory_space<vmem>>, %arg5: memref<1x32xf32, #tpu.memory_space<vmem>>, %arg6: memref<1x32xf32, #tpu.memory_space<vmem>>, %arg7: memref<32x64xf32, #tpu.memory_space<vmem>>, %arg8: memref<32x128xf32, #tpu.memory_space<vmem>>, %arg9: memref<64x32xf32, #tpu.memory_space<vmem>>, %arg10: memref<1x32xf32, #tpu.memory_space<vmem>>, %arg11: memref<1x32xf32, #tpu.memory_space<vmem>>, %arg12: memref<1x32xf32, #tpu.memory_space<vmem>>, %arg13: memref<32x64xf32, #tpu.memory_space<vmem>>, %arg14: memref<1x64xf32, #tpu.memory_space<vmem>>, %arg15: memref<64x32xf32, #tpu.memory_space<vmem>>, %arg16: memref<1x32xf32, #tpu.memory_space<vmem>>, %arg17: memref<2x1x32xf32, #tpu.memory_space<vmem>>, %arg18: memref<2x1x32xf32, #tpu.memory_space<vmem>>, %arg19: memref<2x32x64xf32, #tpu.memory_space<vmem>>, %arg20: memref<2x32x128xf32, #tpu.memory_space<vmem>>, %arg21: memref<2x64x32xf32, #tpu.memory_space<vmem>>, %arg22: memref<2x1x32xf32, #tpu.memory_space<vmem>>, %arg23: memref<2x1x32xf32, #tpu.memory_space<vmem>>, %arg24: memref<2x1x32xf32, #tpu.memory_space<vmem>>, %arg25: memref<2x32x64xf32, #tpu.memory_space<vmem>>, %arg26: memref<2x1x64xf32, #tpu.memory_space<vmem>>, %arg27: memref<2x64x32xf32, #tpu.memory_space<vmem>>, %arg28: memref<2x1x32xf32, #tpu.memory_space<vmem>>, %arg29: memref<1x8x32xf32, #tpu.memory_space<vmem>>) attributes {dimension_semantics = [#tpu.dimension_semantics<parallel>], iteration_bounds = array<i64: 2>, scalar_prefetch = 0 : i64, scratch_operands = 0 : i64, tpu.core_type = #tpu.core_type<tc>, window_params = [{transform_indices = @transform_0, window_bounds = array<i64: 1, 16, 32>}, {pipeline_mode = #tpu.pipeline_mode<synchronous>, transform_indices = @transform_1, window_bounds = array<i64: 8, 32>}, {pipeline_mode = #tpu.pipeline_mode<synchronous>, transform_indices = @transform_2, window_bounds = array<i64: 1, 32>}, {pipeline_mode = #tpu.pipeline_mode<synchronous>, transform_indices = @transform_3, window_bounds = array<i64: 1, 32>}, {pipeline_mode = #tpu.pipeline_mode<synchronous>, transform_indices = @transform_4, window_bounds = array<i64: 1, 32>}, {pipeline_mode = #tpu.pipeline_mode<synchronous>, transform_indices = @transform_5, window_bounds = array<i64: 1, 32>}, {pipeline_mode = #tpu.pipeline_mode<synchronous>, transform_indices = @transform_6, window_bounds = array<i64: 32, 64>}, {pipeline_mode = #tpu.pipeline_mode<synchronous>, transform_indices = @transform_7, window_bounds = array<i64: 32, 128>}, {pipeline_mode = #tpu.pipeline_mode<synchronous>, transform_indices = @transform_8, window_bounds = array<i64: 64, 32>}, {pipeline_mode = #tpu.pipeline_mode<synchronous>, transform_indices = @transform_9, window_bounds = array<i64: 1, 32>}, {pipeline_mode = #tpu.pipeline_mode<synchronous>, transform_indices = @transform_10, window_bounds = array<i64: 1, 32>}, {pipeline_mode = #tpu.pipeline_mode<synchronous>, transform_indices = @transform_11, window_bounds = array<i64: 1, 32>}, {pipeline_mode = #tpu.pipeline_mode<synchronous>, transform_indices = @transform_12, window_bounds = array<i64: 32, 64>}, {pipeline_mode = #tpu.pipeline_mode<synchronous>, transform_indices = @transform_13, window_bounds = array<i64: 1, 64>}, {pipeline_mode = #tpu.pipeline_mode<synchronous>, transform_indices = @transform_14, window_bounds = array<i64: 64, 32>}, {pipeline_mode = #tpu.pipeline_mode<synchronous>, transform_indices = @transform_15, window_bounds = array<i64: 1, 32>}, {pipeline_mode = #tpu.pipeline_mode<synchronous>, transform_indices = @transform_16, window_bounds = array<i64: 2, 1, 32>}, {pipeline_mode = #tpu.pipeline_mode<synchronous>, transform_indices = @transform_17, window_bounds = array<i64: 2, 1, 32>}, {pipeline_mode = #tpu.pipeline_mode<synchronous>, transform_indices = @transform_18, window_bounds = array<i64: 2, 32, 64>}, {pipeline_mode = #tpu.pipeline_mode<synchronous>, transform_indices = @transform_19, window_bounds = array<i64: 2, 32, 128>}, {pipeline_mode = #tpu.pipeline_mode<synchronous>, transform_indices = @transform_20, window_bounds = array<i64: 2, 64, 32>}, {pipeline_mode = #tpu.pipeline_mode<synchronous>, transform_indices = @transform_21, window_bounds = array<i64: 2, 1, 32>}, {pipeline_mode = #tpu.pipeline_mode<synchronous>, transform_indices = @transform_22, window_bounds = array<i64: 2, 1, 32>}, {pipeline_mode = #tpu.pipeline_mode<synchronous>, transform_indices = @transform_23, window_bounds = array<i64: 2, 1, 32>}, {pipeline_mode = #tpu.pipeline_mode<synchronous>, transform_indices = @transform_24, window_bounds = array<i64: 2, 32, 64>}, {pipeline_mode = #tpu.pipeline_mode<synchronous>, transform_indices = @transform_25, window_bounds = array<i64: 2, 1, 64>}, {pipeline_mode = #tpu.pipeline_mode<synchronous>, transform_indices = @transform_26, window_bounds = array<i64: 2, 64, 32>}, {pipeline_mode = #tpu.pipeline_mode<synchronous>, transform_indices = @transform_27, window_bounds = array<i64: 2, 1, 32>}, {transform_indices = @transform_28, window_bounds = array<i64: 1, 8, 32>}]} {
    %c0 = arith.constant 0 : index
    %c0_0 = arith.constant 0 : index
    %c0_1 = arith.constant 0 : index
    %0 = vector.load %arg1[%c0, %c0_0, %c0_1] : memref<1x16x32xf32, #tpu.memory_space<vmem>>, vector<1x16x32xf32>
    %1 = vector.shape_cast %0 : vector<1x16x32xf32> to vector<16x32xf32>
    %c0_2 = arith.constant 0 : index
    %c0_3 = arith.constant 0 : index
    %2 = vector.load %arg2[%c0_2, %c0_3] : memref<8x32xf32, #tpu.memory_space<vmem>>, vector<8x32xf32>
    %c0_4 = arith.constant 0 : index
    %c0_5 = arith.constant 0 : index
    %3 = vector.load %arg3[%c0_4, %c0_5] : memref<1x32xf32, #tpu.memory_space<vmem>>, vector<1x32xf32>
    %c0_6 = arith.constant 0 : index
    %c0_7 = arith.constant 0 : index
    %4 = vector.load %arg4[%c0_6, %c0_7] : memref<1x32xf32, #tpu.memory_space<vmem>>, vector<1x32xf32>
    %cst = arith.constant dense<0.000000e+00> : vector<8xf32>
    %5 = vector.multi_reduction <add>, %2, %cst [1] : vector<8x32xf32> to vector<8xf32>
    %6 = vector.shape_cast %5 : vector<8xf32> to vector<8x1xf32>
    %cst_8 = arith.constant 3.200000e+01 : f32
    %7 = vector.broadcast %cst_8 : f32 to vector<8x1xf32>
    %8 = arith.divf %6, %7 : vector<8x1xf32>
    %9 = vector.broadcast %8 : vector<8x1xf32> to vector<8x32xf32>
    %10 = arith.subf %2, %9 : vector<8x32xf32>
    %11 = arith.mulf %10, %10 : vector<8x32xf32>
    %cst_9 = arith.constant dense<0.000000e+00> : vector<8xf32>
    %12 = vector.multi_reduction <add>, %11, %cst_9 [1] : vector<8x32xf32> to vector<8xf32>
    %13 = vector.shape_cast %12 : vector<8xf32> to vector<8x1xf32>
    %cst_10 = arith.constant 3.200000e+01 : f32
    %14 = vector.broadcast %cst_10 : f32 to vector<8x1xf32>
    %15 = arith.divf %13, %14 : vector<8x1xf32>
    %cst_11 = arith.constant 9.99999974E-6 : f32
    %16 = vector.broadcast %cst_11 : f32 to vector<8x1xf32>
    %17 = arith.addf %15, %16 : vector<8x1xf32>
    %18 = math.rsqrt %17 : vector<8x1xf32>
    %19 = vector.broadcast %18 : vector<8x1xf32> to vector<8x32xf32>
    %20 = arith.mulf %10, %19 : vector<8x32xf32>
    %21 = vector.broadcast %3 : vector<1x32xf32> to vector<8x32xf32>
    %22 = arith.mulf %20, %21 : vector<8x32xf32>
    %23 = vector.broadcast %4 : vector<1x32xf32> to vector<8x32xf32>
    %24 = arith.addf %22, %23 : vector<8x32xf32>
    %c0_12 = arith.constant 0 : index
    %c0_13 = arith.constant 0 : index
    %25 = vector.load %arg5[%c0_12, %c0_13] : memref<1x32xf32, #tpu.memory_space<vmem>>, vector<1x32xf32>
    %c0_14 = arith.constant 0 : index
    %c0_15 = arith.constant 0 : index
    %26 = vector.load %arg6[%c0_14, %c0_15] : memref<1x32xf32, #tpu.memory_space<vmem>>, vector<1x32xf32>
    %cst_16 = arith.constant dense<0.000000e+00> : vector<16xf32>
    %27 = vector.multi_reduction <add>, %1, %cst_16 [1] : vector<16x32xf32> to vector<16xf32>
    %28 = vector.shape_cast %27 : vector<16xf32> to vector<16x1xf32>
    %cst_17 = arith.constant 3.200000e+01 : f32
    %29 = vector.broadcast %cst_17 : f32 to vector<16x1xf32>
    %30 = arith.divf %28, %29 : vector<16x1xf32>
    %31 = vector.broadcast %30 : vector<16x1xf32> to vector<16x32xf32>
    %32 = arith.subf %1, %31 : vector<16x32xf32>
    %33 = arith.mulf %32, %32 : vector<16x32xf32>
    %cst_18 = arith.constant dense<0.000000e+00> : vector<16xf32>
    %34 = vector.multi_reduction <add>, %33, %cst_18 [1] : vector<16x32xf32> to vector<16xf32>
    %35 = vector.shape_cast %34 : vector<16xf32> to vector<16x1xf32>
    %cst_19 = arith.constant 3.200000e+01 : f32
    %36 = vector.broadcast %cst_19 : f32 to vector<16x1xf32>
    %37 = arith.divf %35, %36 : vector<16x1xf32>
    %cst_20 = arith.constant 9.99999974E-6 : f32
    %38 = vector.broadcast %cst_20 : f32 to vector<16x1xf32>
    %39 = arith.addf %37, %38 : vector<16x1xf32>
    %40 = math.rsqrt %39 : vector<16x1xf32>
    %41 = vector.broadcast %40 : vector<16x1xf32> to vector<16x32xf32>
    %42 = arith.mulf %32, %41 : vector<16x32xf32>
    %43 = vector.broadcast %25 : vector<1x32xf32> to vector<16x32xf32>
    %44 = arith.mulf %42, %43 : vector<16x32xf32>
    %45 = vector.broadcast %26 : vector<1x32xf32> to vector<16x32xf32>
    %46 = arith.addf %44, %45 : vector<16x32xf32>
    %c0_21 = arith.constant 0 : index
    %c0_22 = arith.constant 0 : index
    %47 = vector.load %arg7[%c0_21, %c0_22] : memref<32x64xf32, #tpu.memory_space<vmem>>, vector<32x64xf32>
    %c0_23 = arith.constant 0 : index
    %c0_24 = arith.constant 0 : index
    %48 = vector.load %arg8[%c0_23, %c0_24] : memref<32x128xf32, #tpu.memory_space<vmem>>, vector<32x128xf32>
    %c0_25 = arith.constant 0 : index
    %c0_26 = arith.constant 0 : index
    %49 = vector.load %arg9[%c0_25, %c0_26] : memref<64x32xf32, #tpu.memory_space<vmem>>, vector<64x32xf32>
    %c0_27 = arith.constant 0 : index
    %c0_28 = arith.constant 0 : index
    %50 = vector.load %arg10[%c0_27, %c0_28] : memref<1x32xf32, #tpu.memory_space<vmem>>, vector<1x32xf32>
    %cst_29 = arith.constant dense<0.000000e+00> : vector<8x64xf32>
    %51 = tpu.matmul %24, %47, %cst_29 {dimension_numbers = #tpu.dot_dimension_numbers<[1], [0], [0], [1], [0, 0, 1, 1], [], []>} : vector<8x32xf32>, vector<32x64xf32>, vector<8x64xf32> -> vector<8x64xf32>
    %cst_30 = arith.constant dense<0.000000e+00> : vector<16x128xf32>
    %52 = tpu.matmul %46, %48, %cst_30 {dimension_numbers = #tpu.dot_dimension_numbers<[1], [0], [0], [1], [0, 0, 1, 1], [], []>} : vector<16x32xf32>, vector<32x128xf32>, vector<16x128xf32> -> vector<16x128xf32>
    %53 = vector.extract_strided_slice %52 {offsets = [0, 0], sizes = [16, 64], strides = [1, 1]} : vector<16x128xf32> to vector<16x64xf32>
    %54 = vector.extract_strided_slice %52 {offsets = [0, 64], sizes = [16, 64], strides = [1, 1]} : vector<16x128xf32> to vector<16x64xf32>
    %cst_31 = arith.constant 0.000000e+00 : f32
    %55 = vector.broadcast %cst_31 : f32 to vector<8x32xf32>
    %56 = vector.extract_strided_slice %51 {offsets = [0, 0], sizes = [8, 16], strides = [1, 1]} : vector<8x64xf32> to vector<8x16xf32>
    %57 = vector.extract_strided_slice %53 {offsets = [0, 0], sizes = [16, 16], strides = [1, 1]} : vector<16x64xf32> to vector<16x16xf32>
    %58 = vector.extract_strided_slice %54 {offsets = [0, 0], sizes = [16, 16], strides = [1, 1]} : vector<16x64xf32> to vector<16x16xf32>
    %cst_32 = arith.constant dense<0.000000e+00> : vector<8x16xf32>
    %59 = tpu.matmul %56, %57, %cst_32 {dimension_numbers = #tpu.dot_dimension_numbers<[1], [1], [0], [0], [0, 0, 1, 0], [], []>} : vector<8x16xf32>, vector<16x16xf32>, vector<8x16xf32> -> vector<8x16xf32>
    %cst_33 = arith.constant 2.500000e-01 : f32
    %60 = vector.broadcast %cst_33 : f32 to vector<8x16xf32>
    %61 = arith.mulf %59, %60 : vector<8x16xf32>
    %cst_34 = arith.constant dense<0xFF800000> : vector<8xf32>
    %62 = vector.multi_reduction <maximumf>, %61, %cst_34 [1] : vector<8x16xf32> to vector<8xf32>
    %63 = vector.shape_cast %62 : vector<8xf32> to vector<8x1xf32>
    %64 = vector.broadcast %63 : vector<8x1xf32> to vector<8x16xf32>
    %65 = arith.subf %61, %64 : vector<8x16xf32>
    %66 = math.exp %65 : vector<8x16xf32>
    %cst_35 = arith.constant dense<0.000000e+00> : vector<8xf32>
    %67 = vector.multi_reduction <add>, %66, %cst_35 [1] : vector<8x16xf32> to vector<8xf32>
    %68 = vector.shape_cast %67 : vector<8xf32> to vector<8x1xf32>
    %69 = tpu.reciprocal %68 {approx = true} : vector<8x1xf32> -> vector<8x1xf32>
    %70 = vector.broadcast %69 : vector<8x1xf32> to vector<8x16xf32>
    %71 = arith.mulf %66, %70 : vector<8x16xf32>
    %cst_36 = arith.constant dense<0.000000e+00> : vector<8x16xf32>
    %72 = tpu.matmul %71, %58, %cst_36 {dimension_numbers = #tpu.dot_dimension_numbers<[1], [0], [0], [1], [0, 0, 1, 1], [], []>} : vector<8x16xf32>, vector<16x16xf32>, vector<8x16xf32> -> vector<8x16xf32>
    %73 = vector.extract_strided_slice %49 {offsets = [0, 0], sizes = [16, 32], strides = [1, 1]} : vector<64x32xf32> to vector<16x32xf32>
    %cst_37 = arith.constant dense<0.000000e+00> : vector<8x32xf32>
    %74 = tpu.matmul %72, %73, %cst_37 {dimension_numbers = #tpu.dot_dimension_numbers<[1], [0], [0], [1], [0, 0, 1, 1], [], []>} : vector<8x16xf32>, vector<16x32xf32>, vector<8x32xf32> -> vector<8x32xf32>
    %75 = arith.addf %55, %74 : vector<8x32xf32>
    %76 = vector.extract_strided_slice %51 {offsets = [0, 16], sizes = [8, 16], strides = [1, 1]} : vector<8x64xf32> to vector<8x16xf32>
    %77 = vector.extract_strided_slice %53 {offsets = [0, 16], sizes = [16, 16], strides = [1, 1]} : vector<16x64xf32> to vector<16x16xf32>
    %78 = vector.extract_strided_slice %54 {offsets = [0, 16], sizes = [16, 16], strides = [1, 1]} : vector<16x64xf32> to vector<16x16xf32>
    %cst_38 = arith.constant dense<0.000000e+00> : vector<8x16xf32>
    %79 = tpu.matmul %76, %77, %cst_38 {dimension_numbers = #tpu.dot_dimension_numbers<[1], [1], [0], [0], [0, 0, 1, 0], [], []>} : vector<8x16xf32>, vector<16x16xf32>, vector<8x16xf32> -> vector<8x16xf32>
    %cst_39 = arith.constant 2.500000e-01 : f32
    %80 = vector.broadcast %cst_39 : f32 to vector<8x16xf32>
    %81 = arith.mulf %79, %80 : vector<8x16xf32>
    %cst_40 = arith.constant dense<0xFF800000> : vector<8xf32>
    %82 = vector.multi_reduction <maximumf>, %81, %cst_40 [1] : vector<8x16xf32> to vector<8xf32>
    %83 = vector.shape_cast %82 : vector<8xf32> to vector<8x1xf32>
    %84 = vector.broadcast %83 : vector<8x1xf32> to vector<8x16xf32>
    %85 = arith.subf %81, %84 : vector<8x16xf32>
    %86 = math.exp %85 : vector<8x16xf32>
    %cst_41 = arith.constant dense<0.000000e+00> : vector<8xf32>
    %87 = vector.multi_reduction <add>, %86, %cst_41 [1] : vector<8x16xf32> to vector<8xf32>
    %88 = vector.shape_cast %87 : vector<8xf32> to vector<8x1xf32>
    %89 = tpu.reciprocal %88 {approx = true} : vector<8x1xf32> -> vector<8x1xf32>
    %90 = vector.broadcast %89 : vector<8x1xf32> to vector<8x16xf32>
    %91 = arith.mulf %86, %90 : vector<8x16xf32>
    %cst_42 = arith.constant dense<0.000000e+00> : vector<8x16xf32>
    %92 = tpu.matmul %91, %78, %cst_42 {dimension_numbers = #tpu.dot_dimension_numbers<[1], [0], [0], [1], [0, 0, 1, 1], [], []>} : vector<8x16xf32>, vector<16x16xf32>, vector<8x16xf32> -> vector<8x16xf32>
    %93 = vector.extract_strided_slice %49 {offsets = [16, 0], sizes = [16, 32], strides = [1, 1]} : vector<64x32xf32> to vector<16x32xf32>
    %cst_43 = arith.constant dense<0.000000e+00> : vector<8x32xf32>
    %94 = tpu.matmul %92, %93, %cst_43 {dimension_numbers = #tpu.dot_dimension_numbers<[1], [0], [0], [1], [0, 0, 1, 1], [], []>} : vector<8x16xf32>, vector<16x32xf32>, vector<8x32xf32> -> vector<8x32xf32>
    %95 = arith.addf %75, %94 : vector<8x32xf32>
    %96 = vector.extract_strided_slice %51 {offsets = [0, 32], sizes = [8, 16], strides = [1, 1]} : vector<8x64xf32> to vector<8x16xf32>
    %97 = vector.extract_strided_slice %53 {offsets = [0, 32], sizes = [16, 16], strides = [1, 1]} : vector<16x64xf32> to vector<16x16xf32>
    %98 = vector.extract_strided_slice %54 {offsets = [0, 32], sizes = [16, 16], strides = [1, 1]} : vector<16x64xf32> to vector<16x16xf32>
    %cst_44 = arith.constant dense<0.000000e+00> : vector<8x16xf32>
    %99 = tpu.matmul %96, %97, %cst_44 {dimension_numbers = #tpu.dot_dimension_numbers<[1], [1], [0], [0], [0, 0, 1, 0], [], []>} : vector<8x16xf32>, vector<16x16xf32>, vector<8x16xf32> -> vector<8x16xf32>
    %cst_45 = arith.constant 2.500000e-01 : f32
    %100 = vector.broadcast %cst_45 : f32 to vector<8x16xf32>
    %101 = arith.mulf %99, %100 : vector<8x16xf32>
    %cst_46 = arith.constant dense<0xFF800000> : vector<8xf32>
    %102 = vector.multi_reduction <maximumf>, %101, %cst_46 [1] : vector<8x16xf32> to vector<8xf32>
    %103 = vector.shape_cast %102 : vector<8xf32> to vector<8x1xf32>
    %104 = vector.broadcast %103 : vector<8x1xf32> to vector<8x16xf32>
    %105 = arith.subf %101, %104 : vector<8x16xf32>
    %106 = math.exp %105 : vector<8x16xf32>
    %cst_47 = arith.constant dense<0.000000e+00> : vector<8xf32>
    %107 = vector.multi_reduction <add>, %106, %cst_47 [1] : vector<8x16xf32> to vector<8xf32>
    %108 = vector.shape_cast %107 : vector<8xf32> to vector<8x1xf32>
    %109 = tpu.reciprocal %108 {approx = true} : vector<8x1xf32> -> vector<8x1xf32>
    %110 = vector.broadcast %109 : vector<8x1xf32> to vector<8x16xf32>
    %111 = arith.mulf %106, %110 : vector<8x16xf32>
    %cst_48 = arith.constant dense<0.000000e+00> : vector<8x16xf32>
    %112 = tpu.matmul %111, %98, %cst_48 {dimension_numbers = #tpu.dot_dimension_numbers<[1], [0], [0], [1], [0, 0, 1, 1], [], []>} : vector<8x16xf32>, vector<16x16xf32>, vector<8x16xf32> -> vector<8x16xf32>
    %113 = vector.extract_strided_slice %49 {offsets = [32, 0], sizes = [16, 32], strides = [1, 1]} : vector<64x32xf32> to vector<16x32xf32>
    %cst_49 = arith.constant dense<0.000000e+00> : vector<8x32xf32>
    %114 = tpu.matmul %112, %113, %cst_49 {dimension_numbers = #tpu.dot_dimension_numbers<[1], [0], [0], [1], [0, 0, 1, 1], [], []>} : vector<8x16xf32>, vector<16x32xf32>, vector<8x32xf32> -> vector<8x32xf32>
    %115 = arith.addf %95, %114 : vector<8x32xf32>
    %116 = vector.extract_strided_slice %51 {offsets = [0, 48], sizes = [8, 16], strides = [1, 1]} : vector<8x64xf32> to vector<8x16xf32>
    %117 = vector.extract_strided_slice %53 {offsets = [0, 48], sizes = [16, 16], strides = [1, 1]} : vector<16x64xf32> to vector<16x16xf32>
    %118 = vector.extract_strided_slice %54 {offsets = [0, 48], sizes = [16, 16], strides = [1, 1]} : vector<16x64xf32> to vector<16x16xf32>
    %cst_50 = arith.constant dense<0.000000e+00> : vector<8x16xf32>
    %119 = tpu.matmul %116, %117, %cst_50 {dimension_numbers = #tpu.dot_dimension_numbers<[1], [1], [0], [0], [0, 0, 1, 0], [], []>} : vector<8x16xf32>, vector<16x16xf32>, vector<8x16xf32> -> vector<8x16xf32>
    %cst_51 = arith.constant 2.500000e-01 : f32
    %120 = vector.broadcast %cst_51 : f32 to vector<8x16xf32>
    %121 = arith.mulf %119, %120 : vector<8x16xf32>
    %cst_52 = arith.constant dense<0xFF800000> : vector<8xf32>
    %122 = vector.multi_reduction <maximumf>, %121, %cst_52 [1] : vector<8x16xf32> to vector<8xf32>
    %123 = vector.shape_cast %122 : vector<8xf32> to vector<8x1xf32>
    %124 = vector.broadcast %123 : vector<8x1xf32> to vector<8x16xf32>
    %125 = arith.subf %121, %124 : vector<8x16xf32>
    %126 = math.exp %125 : vector<8x16xf32>
    %cst_53 = arith.constant dense<0.000000e+00> : vector<8xf32>
    %127 = vector.multi_reduction <add>, %126, %cst_53 [1] : vector<8x16xf32> to vector<8xf32>
    %128 = vector.shape_cast %127 : vector<8xf32> to vector<8x1xf32>
    %129 = tpu.reciprocal %128 {approx = true} : vector<8x1xf32> -> vector<8x1xf32>
    %130 = vector.broadcast %129 : vector<8x1xf32> to vector<8x16xf32>
    %131 = arith.mulf %126, %130 : vector<8x16xf32>
    %cst_54 = arith.constant dense<0.000000e+00> : vector<8x16xf32>
    %132 = tpu.matmul %131, %118, %cst_54 {dimension_numbers = #tpu.dot_dimension_numbers<[1], [0], [0], [1], [0, 0, 1, 1], [], []>} : vector<8x16xf32>, vector<16x16xf32>, vector<8x16xf32> -> vector<8x16xf32>
    %133 = vector.extract_strided_slice %49 {offsets = [48, 0], sizes = [16, 32], strides = [1, 1]} : vector<64x32xf32> to vector<16x32xf32>
    %cst_55 = arith.constant dense<0.000000e+00> : vector<8x32xf32>
    %134 = tpu.matmul %132, %133, %cst_55 {dimension_numbers = #tpu.dot_dimension_numbers<[1], [0], [0], [1], [0, 0, 1, 1], [], []>} : vector<8x16xf32>, vector<16x32xf32>, vector<8x32xf32> -> vector<8x32xf32>
    %135 = arith.addf %115, %134 : vector<8x32xf32>
    %136 = vector.broadcast %50 : vector<1x32xf32> to vector<8x32xf32>
    %137 = arith.addf %135, %136 : vector<8x32xf32>
    %138 = arith.addf %137, %2 : vector<8x32xf32>
    %c0_56 = arith.constant 0 : index
    %c0_57 = arith.constant 0 : index
    %139 = vector.load %arg11[%c0_56, %c0_57] : memref<1x32xf32, #tpu.memory_space<vmem>>, vector<1x32xf32>
    %c0_58 = arith.constant 0 : index
    %c0_59 = arith.constant 0 : index
    %140 = vector.load %arg12[%c0_58, %c0_59] : memref<1x32xf32, #tpu.memory_space<vmem>>, vector<1x32xf32>
    %cst_60 = arith.constant dense<0.000000e+00> : vector<8xf32>
    %141 = vector.multi_reduction <add>, %138, %cst_60 [1] : vector<8x32xf32> to vector<8xf32>
    %142 = vector.shape_cast %141 : vector<8xf32> to vector<8x1xf32>
    %cst_61 = arith.constant 3.200000e+01 : f32
    %143 = vector.broadcast %cst_61 : f32 to vector<8x1xf32>
    %144 = arith.divf %142, %143 : vector<8x1xf32>
    %145 = vector.broadcast %144 : vector<8x1xf32> to vector<8x32xf32>
    %146 = arith.subf %138, %145 : vector<8x32xf32>
    %147 = arith.mulf %146, %146 : vector<8x32xf32>
    %cst_62 = arith.constant dense<0.000000e+00> : vector<8xf32>
    %148 = vector.multi_reduction <add>, %147, %cst_62 [1] : vector<8x32xf32> to vector<8xf32>
    %149 = vector.shape_cast %148 : vector<8xf32> to vector<8x1xf32>
    %cst_63 = arith.constant 3.200000e+01 : f32
    %150 = vector.broadcast %cst_63 : f32 to vector<8x1xf32>
    %151 = arith.divf %149, %150 : vector<8x1xf32>
    %cst_64 = arith.constant 9.99999974E-6 : f32
    %152 = vector.broadcast %cst_64 : f32 to vector<8x1xf32>
    %153 = arith.addf %151, %152 : vector<8x1xf32>
    %154 = math.rsqrt %153 : vector<8x1xf32>
    %155 = vector.broadcast %154 : vector<8x1xf32> to vector<8x32xf32>
    %156 = arith.mulf %146, %155 : vector<8x32xf32>
    %157 = vector.broadcast %139 : vector<1x32xf32> to vector<8x32xf32>
    %158 = arith.mulf %156, %157 : vector<8x32xf32>
    %159 = vector.broadcast %140 : vector<1x32xf32> to vector<8x32xf32>
    %160 = arith.addf %158, %159 : vector<8x32xf32>
    %c0_65 = arith.constant 0 : index
    %c0_66 = arith.constant 0 : index
    %161 = vector.load %arg13[%c0_65, %c0_66] : memref<32x64xf32, #tpu.memory_space<vmem>>, vector<32x64xf32>
    %c0_67 = arith.constant 0 : index
    %c0_68 = arith.constant 0 : index
    %162 = vector.load %arg14[%c0_67, %c0_68] : memref<1x64xf32, #tpu.memory_space<vmem>>, vector<1x64xf32>
    %c0_69 = arith.constant 0 : index
    %c0_70 = arith.constant 0 : index
    %163 = vector.load %arg15[%c0_69, %c0_70] : memref<64x32xf32, #tpu.memory_space<vmem>>, vector<64x32xf32>
    %c0_71 = arith.constant 0 : index
    %c0_72 = arith.constant 0 : index
    %164 = vector.load %arg16[%c0_71, %c0_72] : memref<1x32xf32, #tpu.memory_space<vmem>>, vector<1x32xf32>
    %cst_73 = arith.constant dense<0.000000e+00> : vector<8x64xf32>
    %165 = tpu.matmul %160, %161, %cst_73 {dimension_numbers = #tpu.dot_dimension_numbers<[1], [0], [0], [1], [0, 0, 1, 1], [], []>} : vector<8x32xf32>, vector<32x64xf32>, vector<8x64xf32> -> vector<8x64xf32>
    %166 = vector.broadcast %162 : vector<1x64xf32> to vector<8x64xf32>
    %167 = arith.addf %165, %166 : vector<8x64xf32>
    %cst_74 = arith.constant 5.000000e-01 : f32
    %168 = vector.broadcast %cst_74 : f32 to vector<8x64xf32>
    %169 = arith.mulf %168, %167 : vector<8x64xf32>
    %cst_75 = arith.constant 4.471500e-02 : f32
    %170 = vector.broadcast %cst_75 : f32 to vector<8x64xf32>
    %171 = arith.mulf %170, %167 : vector<8x64xf32>
    %172 = arith.mulf %171, %167 : vector<8x64xf32>
    %173 = arith.mulf %172, %167 : vector<8x64xf32>
    %174 = arith.addf %167, %173 : vector<8x64xf32>
    %cst_76 = arith.constant 0.797884583 : f32
    %175 = vector.broadcast %cst_76 : f32 to vector<8x64xf32>
    %176 = arith.mulf %175, %174 : vector<8x64xf32>
    %177 = math.tanh %176 : vector<8x64xf32>
    %cst_77 = arith.constant 1.000000e+00 : f32
    %178 = vector.broadcast %cst_77 : f32 to vector<8x64xf32>
    %179 = arith.addf %178, %177 : vector<8x64xf32>
    %180 = arith.mulf %169, %179 : vector<8x64xf32>
    %cst_78 = arith.constant dense<0.000000e+00> : vector<8x32xf32>
    %181 = tpu.matmul %180, %163, %cst_78 {dimension_numbers = #tpu.dot_dimension_numbers<[1], [0], [0], [1], [0, 0, 1, 1], [], []>} : vector<8x64xf32>, vector<64x32xf32>, vector<8x32xf32> -> vector<8x32xf32>
    %182 = vector.broadcast %164 : vector<1x32xf32> to vector<8x32xf32>
    %183 = arith.addf %181, %182 : vector<8x32xf32>
    %184 = arith.addf %183, %138 : vector<8x32xf32>
    %c0_79 = arith.constant 0 : index
    %c0_80 = arith.constant 0 : index
    %c0_81 = arith.constant 0 : index
    %185 = vector.load %arg17[%c0_79, %c0_80, %c0_81] : memref<2x1x32xf32, #tpu.memory_space<vmem>>, vector<1x1x32xf32>
    %186 = vector.shape_cast %185 : vector<1x1x32xf32> to vector<1x32xf32>
    %c0_82 = arith.constant 0 : index
    %c0_83 = arith.constant 0 : index
    %c0_84 = arith.constant 0 : index
    %187 = vector.load %arg18[%c0_82, %c0_83, %c0_84] : memref<2x1x32xf32, #tpu.memory_space<vmem>>, vector<1x1x32xf32>
    %188 = vector.shape_cast %187 : vector<1x1x32xf32> to vector<1x32xf32>
    %cst_85 = arith.constant dense<0.000000e+00> : vector<8xf32>
    %189 = vector.multi_reduction <add>, %184, %cst_85 [1] : vector<8x32xf32> to vector<8xf32>
    %190 = vector.shape_cast %189 : vector<8xf32> to vector<8x1xf32>
    %cst_86 = arith.constant 3.200000e+01 : f32
    %191 = vector.broadcast %cst_86 : f32 to vector<8x1xf32>
    %192 = arith.divf %190, %191 : vector<8x1xf32>
    %193 = vector.broadcast %192 : vector<8x1xf32> to vector<8x32xf32>
    %194 = arith.subf %184, %193 : vector<8x32xf32>
    %195 = arith.mulf %194, %194 : vector<8x32xf32>
    %cst_87 = arith.constant dense<0.000000e+00> : vector<8xf32>
    %196 = vector.multi_reduction <add>, %195, %cst_87 [1] : vector<8x32xf32> to vector<8xf32>
    %197 = vector.shape_cast %196 : vector<8xf32> to vector<8x1xf32>
    %cst_88 = arith.constant 3.200000e+01 : f32
    %198 = vector.broadcast %cst_88 : f32 to vector<8x1xf32>
    %199 = arith.divf %197, %198 : vector<8x1xf32>
    %cst_89 = arith.constant 9.99999974E-6 : f32
    %200 = vector.broadcast %cst_89 : f32 to vector<8x1xf32>
    %201 = arith.addf %199, %200 : vector<8x1xf32>
    %202 = math.rsqrt %201 : vector<8x1xf32>
    %203 = vector.broadcast %202 : vector<8x1xf32> to vector<8x32xf32>
    %204 = arith.mulf %194, %203 : vector<8x32xf32>
    %205 = vector.broadcast %186 : vector<1x32xf32> to vector<8x32xf32>
    %206 = arith.mulf %204, %205 : vector<8x32xf32>
    %207 = vector.broadcast %188 : vector<1x32xf32> to vector<8x32xf32>
    %208 = arith.addf %206, %207 : vector<8x32xf32>
    %c0_90 = arith.constant 0 : index
    %c0_91 = arith.constant 0 : index
    %c0_92 = arith.constant 0 : index
    %209 = vector.load %arg19[%c0_90, %c0_91, %c0_92] : memref<2x32x64xf32, #tpu.memory_space<vmem>>, vector<1x32x64xf32>
    %210 = vector.shape_cast %209 : vector<1x32x64xf32> to vector<32x64xf32>
    %c0_93 = arith.constant 0 : index
    %c0_94 = arith.constant 0 : index
    %c0_95 = arith.constant 0 : index
    %211 = vector.load %arg20[%c0_93, %c0_94, %c0_95] : memref<2x32x128xf32, #tpu.memory_space<vmem>>, vector<1x32x128xf32>
    %212 = vector.shape_cast %211 : vector<1x32x128xf32> to vector<32x128xf32>
    %c0_96 = arith.constant 0 : index
    %c0_97 = arith.constant 0 : index
    %c0_98 = arith.constant 0 : index
    %213 = vector.load %arg21[%c0_96, %c0_97, %c0_98] : memref<2x64x32xf32, #tpu.memory_space<vmem>>, vector<1x64x32xf32>
    %214 = vector.shape_cast %213 : vector<1x64x32xf32> to vector<64x32xf32>
    %c0_99 = arith.constant 0 : index
    %c0_100 = arith.constant 0 : index
    %c0_101 = arith.constant 0 : index
    %215 = vector.load %arg22[%c0_99, %c0_100, %c0_101] : memref<2x1x32xf32, #tpu.memory_space<vmem>>, vector<1x1x32xf32>
    %216 = vector.shape_cast %215 : vector<1x1x32xf32> to vector<1x32xf32>
    %cst_102 = arith.constant dense<0.000000e+00> : vector<8x64xf32>
    %217 = tpu.matmul %208, %210, %cst_102 {dimension_numbers = #tpu.dot_dimension_numbers<[1], [0], [0], [1], [0, 0, 1, 1], [], []>} : vector<8x32xf32>, vector<32x64xf32>, vector<8x64xf32> -> vector<8x64xf32>
    %cst_103 = arith.constant dense<0.000000e+00> : vector<8x128xf32>
    %218 = tpu.matmul %208, %212, %cst_103 {dimension_numbers = #tpu.dot_dimension_numbers<[1], [0], [0], [1], [0, 0, 1, 1], [], []>} : vector<8x32xf32>, vector<32x128xf32>, vector<8x128xf32> -> vector<8x128xf32>
    %219 = vector.extract_strided_slice %218 {offsets = [0, 0], sizes = [8, 64], strides = [1, 1]} : vector<8x128xf32> to vector<8x64xf32>
    %220 = vector.extract_strided_slice %218 {offsets = [0, 64], sizes = [8, 64], strides = [1, 1]} : vector<8x128xf32> to vector<8x64xf32>
    %cst_104 = arith.constant 0.000000e+00 : f32
    %221 = vector.broadcast %cst_104 : f32 to vector<8x32xf32>
    %222 = vector.extract_strided_slice %217 {offsets = [0, 0], sizes = [8, 16], strides = [1, 1]} : vector<8x64xf32> to vector<8x16xf32>
    %223 = vector.extract_strided_slice %219 {offsets = [0, 0], sizes = [8, 16], strides = [1, 1]} : vector<8x64xf32> to vector<8x16xf32>
    %224 = vector.extract_strided_slice %220 {offsets = [0, 0], sizes = [8, 16], strides = [1, 1]} : vector<8x64xf32> to vector<8x16xf32>
    %cst_105 = arith.constant dense<0.000000e+00> : vector<8x8xf32>
    %225 = tpu.matmul %222, %223, %cst_105 {dimension_numbers = #tpu.dot_dimension_numbers<[1], [1], [0], [0], [0, 0, 1, 0], [], []>} : vector<8x16xf32>, vector<8x16xf32>, vector<8x8xf32> -> vector<8x8xf32>
    %cst_106 = arith.constant 2.500000e-01 : f32
    %226 = vector.broadcast %cst_106 : f32 to vector<8x8xf32>
    %227 = arith.mulf %225, %226 : vector<8x8xf32>
    %cst_107 = arith.constant dense<0xFF800000> : vector<8xf32>
    %228 = vector.multi_reduction <maximumf>, %227, %cst_107 [1] : vector<8x8xf32> to vector<8xf32>
    %229 = vector.shape_cast %228 : vector<8xf32> to vector<8x1xf32>
    %230 = vector.broadcast %229 : vector<8x1xf32> to vector<8x8xf32>
    %231 = arith.subf %227, %230 : vector<8x8xf32>
    %232 = math.exp %231 : vector<8x8xf32>
    %cst_108 = arith.constant dense<0.000000e+00> : vector<8xf32>
    %233 = vector.multi_reduction <add>, %232, %cst_108 [1] : vector<8x8xf32> to vector<8xf32>
    %234 = vector.shape_cast %233 : vector<8xf32> to vector<8x1xf32>
    %235 = tpu.reciprocal %234 {approx = true} : vector<8x1xf32> -> vector<8x1xf32>
    %236 = vector.broadcast %235 : vector<8x1xf32> to vector<8x8xf32>
    %237 = arith.mulf %232, %236 : vector<8x8xf32>
    %cst_109 = arith.constant dense<0.000000e+00> : vector<8x16xf32>
    %238 = tpu.matmul %237, %224, %cst_109 {dimension_numbers = #tpu.dot_dimension_numbers<[1], [0], [0], [1], [0, 0, 1, 1], [], []>} : vector<8x8xf32>, vector<8x16xf32>, vector<8x16xf32> -> vector<8x16xf32>
    %239 = vector.extract_strided_slice %214 {offsets = [0, 0], sizes = [16, 32], strides = [1, 1]} : vector<64x32xf32> to vector<16x32xf32>
    %cst_110 = arith.constant dense<0.000000e+00> : vector<8x32xf32>
    %240 = tpu.matmul %238, %239, %cst_110 {dimension_numbers = #tpu.dot_dimension_numbers<[1], [0], [0], [1], [0, 0, 1, 1], [], []>} : vector<8x16xf32>, vector<16x32xf32>, vector<8x32xf32> -> vector<8x32xf32>
    %241 = arith.addf %221, %240 : vector<8x32xf32>
    %242 = vector.extract_strided_slice %217 {offsets = [0, 16], sizes = [8, 16], strides = [1, 1]} : vector<8x64xf32> to vector<8x16xf32>
    %243 = vector.extract_strided_slice %219 {offsets = [0, 16], sizes = [8, 16], strides = [1, 1]} : vector<8x64xf32> to vector<8x16xf32>
    %244 = vector.extract_strided_slice %220 {offsets = [0, 16], sizes = [8, 16], strides = [1, 1]} : vector<8x64xf32> to vector<8x16xf32>
    %cst_111 = arith.constant dense<0.000000e+00> : vector<8x8xf32>
    %245 = tpu.matmul %242, %243, %cst_111 {dimension_numbers = #tpu.dot_dimension_numbers<[1], [1], [0], [0], [0, 0, 1, 0], [], []>} : vector<8x16xf32>, vector<8x16xf32>, vector<8x8xf32> -> vector<8x8xf32>
    %cst_112 = arith.constant 2.500000e-01 : f32
    %246 = vector.broadcast %cst_112 : f32 to vector<8x8xf32>
    %247 = arith.mulf %245, %246 : vector<8x8xf32>
    %cst_113 = arith.constant dense<0xFF800000> : vector<8xf32>
    %248 = vector.multi_reduction <maximumf>, %247, %cst_113 [1] : vector<8x8xf32> to vector<8xf32>
    %249 = vector.shape_cast %248 : vector<8xf32> to vector<8x1xf32>
    %250 = vector.broadcast %249 : vector<8x1xf32> to vector<8x8xf32>
    %251 = arith.subf %247, %250 : vector<8x8xf32>
    %252 = math.exp %251 : vector<8x8xf32>
    %cst_114 = arith.constant dense<0.000000e+00> : vector<8xf32>
    %253 = vector.multi_reduction <add>, %252, %cst_114 [1] : vector<8x8xf32> to vector<8xf32>
    %254 = vector.shape_cast %253 : vector<8xf32> to vector<8x1xf32>
    %255 = tpu.reciprocal %254 {approx = true} : vector<8x1xf32> -> vector<8x1xf32>
    %256 = vector.broadcast %255 : vector<8x1xf32> to vector<8x8xf32>
    %257 = arith.mulf %252, %256 : vector<8x8xf32>
    %cst_115 = arith.constant dense<0.000000e+00> : vector<8x16xf32>
    %258 = tpu.matmul %257, %244, %cst_115 {dimension_numbers = #tpu.dot_dimension_numbers<[1], [0], [0], [1], [0, 0, 1, 1], [], []>} : vector<8x8xf32>, vector<8x16xf32>, vector<8x16xf32> -> vector<8x16xf32>
    %259 = vector.extract_strided_slice %214 {offsets = [16, 0], sizes = [16, 32], strides = [1, 1]} : vector<64x32xf32> to vector<16x32xf32>
    %cst_116 = arith.constant dense<0.000000e+00> : vector<8x32xf32>
    %260 = tpu.matmul %258, %259, %cst_116 {dimension_numbers = #tpu.dot_dimension_numbers<[1], [0], [0], [1], [0, 0, 1, 1], [], []>} : vector<8x16xf32>, vector<16x32xf32>, vector<8x32xf32> -> vector<8x32xf32>
    %261 = arith.addf %241, %260 : vector<8x32xf32>
    %262 = vector.extract_strided_slice %217 {offsets = [0, 32], sizes = [8, 16], strides = [1, 1]} : vector<8x64xf32> to vector<8x16xf32>
    %263 = vector.extract_strided_slice %219 {offsets = [0, 32], sizes = [8, 16], strides = [1, 1]} : vector<8x64xf32> to vector<8x16xf32>
    %264 = vector.extract_strided_slice %220 {offsets = [0, 32], sizes = [8, 16], strides = [1, 1]} : vector<8x64xf32> to vector<8x16xf32>
    %cst_117 = arith.constant dense<0.000000e+00> : vector<8x8xf32>
    %265 = tpu.matmul %262, %263, %cst_117 {dimension_numbers = #tpu.dot_dimension_numbers<[1], [1], [0], [0], [0, 0, 1, 0], [], []>} : vector<8x16xf32>, vector<8x16xf32>, vector<8x8xf32> -> vector<8x8xf32>
    %cst_118 = arith.constant 2.500000e-01 : f32
    %266 = vector.broadcast %cst_118 : f32 to vector<8x8xf32>
    %267 = arith.mulf %265, %266 : vector<8x8xf32>
    %cst_119 = arith.constant dense<0xFF800000> : vector<8xf32>
    %268 = vector.multi_reduction <maximumf>, %267, %cst_119 [1] : vector<8x8xf32> to vector<8xf32>
    %269 = vector.shape_cast %268 : vector<8xf32> to vector<8x1xf32>
    %270 = vector.broadcast %269 : vector<8x1xf32> to vector<8x8xf32>
    %271 = arith.subf %267, %270 : vector<8x8xf32>
    %272 = math.exp %271 : vector<8x8xf32>
    %cst_120 = arith.constant dense<0.000000e+00> : vector<8xf32>
    %273 = vector.multi_reduction <add>, %272, %cst_120 [1] : vector<8x8xf32> to vector<8xf32>
    %274 = vector.shape_cast %273 : vector<8xf32> to vector<8x1xf32>
    %275 = tpu.reciprocal %274 {approx = true} : vector<8x1xf32> -> vector<8x1xf32>
    %276 = vector.broadcast %275 : vector<8x1xf32> to vector<8x8xf32>
    %277 = arith.mulf %272, %276 : vector<8x8xf32>
    %cst_121 = arith.constant dense<0.000000e+00> : vector<8x16xf32>
    %278 = tpu.matmul %277, %264, %cst_121 {dimension_numbers = #tpu.dot_dimension_numbers<[1], [0], [0], [1], [0, 0, 1, 1], [], []>} : vector<8x8xf32>, vector<8x16xf32>, vector<8x16xf32> -> vector<8x16xf32>
    %279 = vector.extract_strided_slice %214 {offsets = [32, 0], sizes = [16, 32], strides = [1, 1]} : vector<64x32xf32> to vector<16x32xf32>
    %cst_122 = arith.constant dense<0.000000e+00> : vector<8x32xf32>
    %280 = tpu.matmul %278, %279, %cst_122 {dimension_numbers = #tpu.dot_dimension_numbers<[1], [0], [0], [1], [0, 0, 1, 1], [], []>} : vector<8x16xf32>, vector<16x32xf32>, vector<8x32xf32> -> vector<8x32xf32>
    %281 = arith.addf %261, %280 : vector<8x32xf32>
    %282 = vector.extract_strided_slice %217 {offsets = [0, 48], sizes = [8, 16], strides = [1, 1]} : vector<8x64xf32> to vector<8x16xf32>
    %283 = vector.extract_strided_slice %219 {offsets = [0, 48], sizes = [8, 16], strides = [1, 1]} : vector<8x64xf32> to vector<8x16xf32>
    %284 = vector.extract_strided_slice %220 {offsets = [0, 48], sizes = [8, 16], strides = [1, 1]} : vector<8x64xf32> to vector<8x16xf32>
    %cst_123 = arith.constant dense<0.000000e+00> : vector<8x8xf32>
    %285 = tpu.matmul %282, %283, %cst_123 {dimension_numbers = #tpu.dot_dimension_numbers<[1], [1], [0], [0], [0, 0, 1, 0], [], []>} : vector<8x16xf32>, vector<8x16xf32>, vector<8x8xf32> -> vector<8x8xf32>
    %cst_124 = arith.constant 2.500000e-01 : f32
    %286 = vector.broadcast %cst_124 : f32 to vector<8x8xf32>
    %287 = arith.mulf %285, %286 : vector<8x8xf32>
    %cst_125 = arith.constant dense<0xFF800000> : vector<8xf32>
    %288 = vector.multi_reduction <maximumf>, %287, %cst_125 [1] : vector<8x8xf32> to vector<8xf32>
    %289 = vector.shape_cast %288 : vector<8xf32> to vector<8x1xf32>
    %290 = vector.broadcast %289 : vector<8x1xf32> to vector<8x8xf32>
    %291 = arith.subf %287, %290 : vector<8x8xf32>
    %292 = math.exp %291 : vector<8x8xf32>
    %cst_126 = arith.constant dense<0.000000e+00> : vector<8xf32>
    %293 = vector.multi_reduction <add>, %292, %cst_126 [1] : vector<8x8xf32> to vector<8xf32>
    %294 = vector.shape_cast %293 : vector<8xf32> to vector<8x1xf32>
    %295 = tpu.reciprocal %294 {approx = true} : vector<8x1xf32> -> vector<8x1xf32>
    %296 = vector.broadcast %295 : vector<8x1xf32> to vector<8x8xf32>
    %297 = arith.mulf %292, %296 : vector<8x8xf32>
    %cst_127 = arith.constant dense<0.000000e+00> : vector<8x16xf32>
    %298 = tpu.matmul %297, %284, %cst_127 {dimension_numbers = #tpu.dot_dimension_numbers<[1], [0], [0], [1], [0, 0, 1, 1], [], []>} : vector<8x8xf32>, vector<8x16xf32>, vector<8x16xf32> -> vector<8x16xf32>
    %299 = vector.extract_strided_slice %214 {offsets = [48, 0], sizes = [16, 32], strides = [1, 1]} : vector<64x32xf32> to vector<16x32xf32>
    %cst_128 = arith.constant dense<0.000000e+00> : vector<8x32xf32>
    %300 = tpu.matmul %298, %299, %cst_128 {dimension_numbers = #tpu.dot_dimension_numbers<[1], [0], [0], [1], [0, 0, 1, 1], [], []>} : vector<8x16xf32>, vector<16x32xf32>, vector<8x32xf32> -> vector<8x32xf32>
    %301 = arith.addf %281, %300 : vector<8x32xf32>
    %302 = vector.broadcast %216 : vector<1x32xf32> to vector<8x32xf32>
    %303 = arith.addf %301, %302 : vector<8x32xf32>
    %c0_129 = arith.constant 0 : index
    %c0_130 = arith.constant 0 : index
    %c0_131 = arith.constant 0 : index
    %304 = vector.load %arg23[%c0_129, %c0_130, %c0_131] : memref<2x1x32xf32, #tpu.memory_space<vmem>>, vector<1x1x32xf32>
    %305 = vector.shape_cast %304 : vector<1x1x32xf32> to vector<1x32xf32>
    %c0_132 = arith.constant 0 : index
    %c0_133 = arith.constant 0 : index
    %c0_134 = arith.constant 0 : index
    %306 = vector.load %arg24[%c0_132, %c0_133, %c0_134] : memref<2x1x32xf32, #tpu.memory_space<vmem>>, vector<1x1x32xf32>
    %307 = vector.shape_cast %306 : vector<1x1x32xf32> to vector<1x32xf32>
    %cst_135 = arith.constant dense<0.000000e+00> : vector<8xf32>
    %308 = vector.multi_reduction <add>, %303, %cst_135 [1] : vector<8x32xf32> to vector<8xf32>
    %309 = vector.shape_cast %308 : vector<8xf32> to vector<8x1xf32>
    %cst_136 = arith.constant 3.200000e+01 : f32
    %310 = vector.broadcast %cst_136 : f32 to vector<8x1xf32>
    %311 = arith.divf %309, %310 : vector<8x1xf32>
    %312 = vector.broadcast %311 : vector<8x1xf32> to vector<8x32xf32>
    %313 = arith.subf %303, %312 : vector<8x32xf32>
    %314 = arith.mulf %313, %313 : vector<8x32xf32>
    %cst_137 = arith.constant dense<0.000000e+00> : vector<8xf32>
    %315 = vector.multi_reduction <add>, %314, %cst_137 [1] : vector<8x32xf32> to vector<8xf32>
    %316 = vector.shape_cast %315 : vector<8xf32> to vector<8x1xf32>
    %cst_138 = arith.constant 3.200000e+01 : f32
    %317 = vector.broadcast %cst_138 : f32 to vector<8x1xf32>
    %318 = arith.divf %316, %317 : vector<8x1xf32>
    %cst_139 = arith.constant 9.99999974E-6 : f32
    %319 = vector.broadcast %cst_139 : f32 to vector<8x1xf32>
    %320 = arith.addf %318, %319 : vector<8x1xf32>
    %321 = math.rsqrt %320 : vector<8x1xf32>
    %322 = vector.broadcast %321 : vector<8x1xf32> to vector<8x32xf32>
    %323 = arith.mulf %313, %322 : vector<8x32xf32>
    %324 = vector.broadcast %305 : vector<1x32xf32> to vector<8x32xf32>
    %325 = arith.mulf %323, %324 : vector<8x32xf32>
    %326 = vector.broadcast %307 : vector<1x32xf32> to vector<8x32xf32>
    %327 = arith.addf %325, %326 : vector<8x32xf32>
    %c0_140 = arith.constant 0 : index
    %c0_141 = arith.constant 0 : index
    %c0_142 = arith.constant 0 : index
    %328 = vector.load %arg25[%c0_140, %c0_141, %c0_142] : memref<2x32x64xf32, #tpu.memory_space<vmem>>, vector<1x32x64xf32>
    %329 = vector.shape_cast %328 : vector<1x32x64xf32> to vector<32x64xf32>
    %c0_143 = arith.constant 0 : index
    %c0_144 = arith.constant 0 : index
    %c0_145 = arith.constant 0 : index
    %330 = vector.load %arg26[%c0_143, %c0_144, %c0_145] : memref<2x1x64xf32, #tpu.memory_space<vmem>>, vector<1x1x64xf32>
    %331 = vector.shape_cast %330 : vector<1x1x64xf32> to vector<1x64xf32>
    %c0_146 = arith.constant 0 : index
    %c0_147 = arith.constant 0 : index
    %c0_148 = arith.constant 0 : index
    %332 = vector.load %arg27[%c0_146, %c0_147, %c0_148] : memref<2x64x32xf32, #tpu.memory_space<vmem>>, vector<1x64x32xf32>
    %333 = vector.shape_cast %332 : vector<1x64x32xf32> to vector<64x32xf32>
    %c0_149 = arith.constant 0 : index
    %c0_150 = arith.constant 0 : index
    %c0_151 = arith.constant 0 : index
    %334 = vector.load %arg28[%c0_149, %c0_150, %c0_151] : memref<2x1x32xf32, #tpu.memory_space<vmem>>, vector<1x1x32xf32>
    %335 = vector.shape_cast %334 : vector<1x1x32xf32> to vector<1x32xf32>
    %cst_152 = arith.constant dense<0.000000e+00> : vector<8x64xf32>
    %336 = tpu.matmul %327, %329, %cst_152 {dimension_numbers = #tpu.dot_dimension_numbers<[1], [0], [0], [1], [0, 0, 1, 1], [], []>} : vector<8x32xf32>, vector<32x64xf32>, vector<8x64xf32> -> vector<8x64xf32>
    %337 = vector.broadcast %331 : vector<1x64xf32> to vector<8x64xf32>
    %338 = arith.addf %336, %337 : vector<8x64xf32>
    %cst_153 = arith.constant 5.000000e-01 : f32
    %339 = vector.broadcast %cst_153 : f32 to vector<8x64xf32>
    %340 = arith.mulf %339, %338 : vector<8x64xf32>
    %cst_154 = arith.constant 4.471500e-02 : f32
    %341 = vector.broadcast %cst_154 : f32 to vector<8x64xf32>
    %342 = arith.mulf %341, %338 : vector<8x64xf32>
    %343 = arith.mulf %342, %338 : vector<8x64xf32>
    %344 = arith.mulf %343, %338 : vector<8x64xf32>
    %345 = arith.addf %338, %344 : vector<8x64xf32>
    %cst_155 = arith.constant 0.797884583 : f32
    %346 = vector.broadcast %cst_155 : f32 to vector<8x64xf32>
    %347 = arith.mulf %346, %345 : vector<8x64xf32>
    %348 = math.tanh %347 : vector<8x64xf32>
    %cst_156 = arith.constant 1.000000e+00 : f32
    %349 = vector.broadcast %cst_156 : f32 to vector<8x64xf32>
    %350 = arith.addf %349, %348 : vector<8x64xf32>
    %351 = arith.mulf %340, %350 : vector<8x64xf32>
    %cst_157 = arith.constant dense<0.000000e+00> : vector<8x32xf32>
    %352 = tpu.matmul %351, %333, %cst_157 {dimension_numbers = #tpu.dot_dimension_numbers<[1], [0], [0], [1], [0, 0, 1, 1], [], []>} : vector<8x64xf32>, vector<64x32xf32>, vector<8x32xf32> -> vector<8x32xf32>
    %353 = vector.broadcast %335 : vector<1x32xf32> to vector<8x32xf32>
    %354 = arith.addf %352, %353 : vector<8x32xf32>
    %c1 = arith.constant 1 : index
    %c0_158 = arith.constant 0 : index
    %c0_159 = arith.constant 0 : index
    %355 = vector.load %arg17[%c1, %c0_158, %c0_159] : memref<2x1x32xf32, #tpu.memory_space<vmem>>, vector<1x1x32xf32>
    %356 = vector.shape_cast %355 : vector<1x1x32xf32> to vector<1x32xf32>
    %c1_160 = arith.constant 1 : index
    %c0_161 = arith.constant 0 : index
    %c0_162 = arith.constant 0 : index
    %357 = vector.load %arg18[%c1_160, %c0_161, %c0_162] : memref<2x1x32xf32, #tpu.memory_space<vmem>>, vector<1x1x32xf32>
    %358 = vector.shape_cast %357 : vector<1x1x32xf32> to vector<1x32xf32>
    %cst_163 = arith.constant dense<0.000000e+00> : vector<8xf32>
    %359 = vector.multi_reduction <add>, %354, %cst_163 [1] : vector<8x32xf32> to vector<8xf32>
    %360 = vector.shape_cast %359 : vector<8xf32> to vector<8x1xf32>
    %cst_164 = arith.constant 3.200000e+01 : f32
    %361 = vector.broadcast %cst_164 : f32 to vector<8x1xf32>
    %362 = arith.divf %360, %361 : vector<8x1xf32>
    %363 = vector.broadcast %362 : vector<8x1xf32> to vector<8x32xf32>
    %364 = arith.subf %354, %363 : vector<8x32xf32>
    %365 = arith.mulf %364, %364 : vector<8x32xf32>
    %cst_165 = arith.constant dense<0.000000e+00> : vector<8xf32>
    %366 = vector.multi_reduction <add>, %365, %cst_165 [1] : vector<8x32xf32> to vector<8xf32>
    %367 = vector.shape_cast %366 : vector<8xf32> to vector<8x1xf32>
    %cst_166 = arith.constant 3.200000e+01 : f32
    %368 = vector.broadcast %cst_166 : f32 to vector<8x1xf32>
    %369 = arith.divf %367, %368 : vector<8x1xf32>
    %cst_167 = arith.constant 9.99999974E-6 : f32
    %370 = vector.broadcast %cst_167 : f32 to vector<8x1xf32>
    %371 = arith.addf %369, %370 : vector<8x1xf32>
    %372 = math.rsqrt %371 : vector<8x1xf32>
    %373 = vector.broadcast %372 : vector<8x1xf32> to vector<8x32xf32>
    %374 = arith.mulf %364, %373 : vector<8x32xf32>
    %375 = vector.broadcast %356 : vector<1x32xf32> to vector<8x32xf32>
    %376 = arith.mulf %374, %375 : vector<8x32xf32>
    %377 = vector.broadcast %358 : vector<1x32xf32> to vector<8x32xf32>
    %378 = arith.addf %376, %377 : vector<8x32xf32>
    %c1_168 = arith.constant 1 : index
    %c0_169 = arith.constant 0 : index
    %c0_170 = arith.constant 0 : index
    %379 = vector.load %arg19[%c1_168, %c0_169, %c0_170] : memref<2x32x64xf32, #tpu.memory_space<vmem>>, vector<1x32x64xf32>
    %380 = vector.shape_cast %379 : vector<1x32x64xf32> to vector<32x64xf32>
    %c1_171 = arith.constant 1 : index
    %c0_172 = arith.constant 0 : index
    %c0_173 = arith.constant 0 : index
    %381 = vector.load %arg20[%c1_171, %c0_172, %c0_173] : memref<2x32x128xf32, #tpu.memory_space<vmem>>, vector<1x32x128xf32>
    %382 = vector.shape_cast %381 : vector<1x32x128xf32> to vector<32x128xf32>
    %c1_174 = arith.constant 1 : index
    %c0_175 = arith.constant 0 : index
    %c0_176 = arith.constant 0 : index
    %383 = vector.load %arg21[%c1_174, %c0_175, %c0_176] : memref<2x64x32xf32, #tpu.memory_space<vmem>>, vector<1x64x32xf32>
    %384 = vector.shape_cast %383 : vector<1x64x32xf32> to vector<64x32xf32>
    %c1_177 = arith.constant 1 : index
    %c0_178 = arith.constant 0 : index
    %c0_179 = arith.constant 0 : index
    %385 = vector.load %arg22[%c1_177, %c0_178, %c0_179] : memref<2x1x32xf32, #tpu.memory_space<vmem>>, vector<1x1x32xf32>
    %386 = vector.shape_cast %385 : vector<1x1x32xf32> to vector<1x32xf32>
    %cst_180 = arith.constant dense<0.000000e+00> : vector<8x64xf32>
    %387 = tpu.matmul %378, %380, %cst_180 {dimension_numbers = #tpu.dot_dimension_numbers<[1], [0], [0], [1], [0, 0, 1, 1], [], []>} : vector<8x32xf32>, vector<32x64xf32>, vector<8x64xf32> -> vector<8x64xf32>
    %cst_181 = arith.constant dense<0.000000e+00> : vector<8x128xf32>
    %388 = tpu.matmul %378, %382, %cst_181 {dimension_numbers = #tpu.dot_dimension_numbers<[1], [0], [0], [1], [0, 0, 1, 1], [], []>} : vector<8x32xf32>, vector<32x128xf32>, vector<8x128xf32> -> vector<8x128xf32>
    %389 = vector.extract_strided_slice %388 {offsets = [0, 0], sizes = [8, 64], strides = [1, 1]} : vector<8x128xf32> to vector<8x64xf32>
    %390 = vector.extract_strided_slice %388 {offsets = [0, 64], sizes = [8, 64], strides = [1, 1]} : vector<8x128xf32> to vector<8x64xf32>
    %cst_182 = arith.constant 0.000000e+00 : f32
    %391 = vector.broadcast %cst_182 : f32 to vector<8x32xf32>
    %392 = vector.extract_strided_slice %387 {offsets = [0, 0], sizes = [8, 16], strides = [1, 1]} : vector<8x64xf32> to vector<8x16xf32>
    %393 = vector.extract_strided_slice %389 {offsets = [0, 0], sizes = [8, 16], strides = [1, 1]} : vector<8x64xf32> to vector<8x16xf32>
    %394 = vector.extract_strided_slice %390 {offsets = [0, 0], sizes = [8, 16], strides = [1, 1]} : vector<8x64xf32> to vector<8x16xf32>
    %cst_183 = arith.constant dense<0.000000e+00> : vector<8x8xf32>
    %395 = tpu.matmul %392, %393, %cst_183 {dimension_numbers = #tpu.dot_dimension_numbers<[1], [1], [0], [0], [0, 0, 1, 0], [], []>} : vector<8x16xf32>, vector<8x16xf32>, vector<8x8xf32> -> vector<8x8xf32>
    %cst_184 = arith.constant 2.500000e-01 : f32
    %396 = vector.broadcast %cst_184 : f32 to vector<8x8xf32>
    %397 = arith.mulf %395, %396 : vector<8x8xf32>
    %cst_185 = arith.constant dense<0xFF800000> : vector<8xf32>
    %398 = vector.multi_reduction <maximumf>, %397, %cst_185 [1] : vector<8x8xf32> to vector<8xf32>
    %399 = vector.shape_cast %398 : vector<8xf32> to vector<8x1xf32>
    %400 = vector.broadcast %399 : vector<8x1xf32> to vector<8x8xf32>
    %401 = arith.subf %397, %400 : vector<8x8xf32>
    %402 = math.exp %401 : vector<8x8xf32>
    %cst_186 = arith.constant dense<0.000000e+00> : vector<8xf32>
    %403 = vector.multi_reduction <add>, %402, %cst_186 [1] : vector<8x8xf32> to vector<8xf32>
    %404 = vector.shape_cast %403 : vector<8xf32> to vector<8x1xf32>
    %405 = tpu.reciprocal %404 {approx = true} : vector<8x1xf32> -> vector<8x1xf32>
    %406 = vector.broadcast %405 : vector<8x1xf32> to vector<8x8xf32>
    %407 = arith.mulf %402, %406 : vector<8x8xf32>
    %cst_187 = arith.constant dense<0.000000e+00> : vector<8x16xf32>
    %408 = tpu.matmul %407, %394, %cst_187 {dimension_numbers = #tpu.dot_dimension_numbers<[1], [0], [0], [1], [0, 0, 1, 1], [], []>} : vector<8x8xf32>, vector<8x16xf32>, vector<8x16xf32> -> vector<8x16xf32>
    %409 = vector.extract_strided_slice %384 {offsets = [0, 0], sizes = [16, 32], strides = [1, 1]} : vector<64x32xf32> to vector<16x32xf32>
    %cst_188 = arith.constant dense<0.000000e+00> : vector<8x32xf32>
    %410 = tpu.matmul %408, %409, %cst_188 {dimension_numbers = #tpu.dot_dimension_numbers<[1], [0], [0], [1], [0, 0, 1, 1], [], []>} : vector<8x16xf32>, vector<16x32xf32>, vector<8x32xf32> -> vector<8x32xf32>
    %411 = arith.addf %391, %410 : vector<8x32xf32>
    %412 = vector.extract_strided_slice %387 {offsets = [0, 16], sizes = [8, 16], strides = [1, 1]} : vector<8x64xf32> to vector<8x16xf32>
    %413 = vector.extract_strided_slice %389 {offsets = [0, 16], sizes = [8, 16], strides = [1, 1]} : vector<8x64xf32> to vector<8x16xf32>
    %414 = vector.extract_strided_slice %390 {offsets = [0, 16], sizes = [8, 16], strides = [1, 1]} : vector<8x64xf32> to vector<8x16xf32>
    %cst_189 = arith.constant dense<0.000000e+00> : vector<8x8xf32>
    %415 = tpu.matmul %412, %413, %cst_189 {dimension_numbers = #tpu.dot_dimension_numbers<[1], [1], [0], [0], [0, 0, 1, 0], [], []>} : vector<8x16xf32>, vector<8x16xf32>, vector<8x8xf32> -> vector<8x8xf32>
    %cst_190 = arith.constant 2.500000e-01 : f32
    %416 = vector.broadcast %cst_190 : f32 to vector<8x8xf32>
    %417 = arith.mulf %415, %416 : vector<8x8xf32>
    %cst_191 = arith.constant dense<0xFF800000> : vector<8xf32>
    %418 = vector.multi_reduction <maximumf>, %417, %cst_191 [1] : vector<8x8xf32> to vector<8xf32>
    %419 = vector.shape_cast %418 : vector<8xf32> to vector<8x1xf32>
    %420 = vector.broadcast %419 : vector<8x1xf32> to vector<8x8xf32>
    %421 = arith.subf %417, %420 : vector<8x8xf32>
    %422 = math.exp %421 : vector<8x8xf32>
    %cst_192 = arith.constant dense<0.000000e+00> : vector<8xf32>
    %423 = vector.multi_reduction <add>, %422, %cst_192 [1] : vector<8x8xf32> to vector<8xf32>
    %424 = vector.shape_cast %423 : vector<8xf32> to vector<8x1xf32>
    %425 = tpu.reciprocal %424 {approx = true} : vector<8x1xf32> -> vector<8x1xf32>
    %426 = vector.broadcast %425 : vector<8x1xf32> to vector<8x8xf32>
    %427 = arith.mulf %422, %426 : vector<8x8xf32>
    %cst_193 = arith.constant dense<0.000000e+00> : vector<8x16xf32>
    %428 = tpu.matmul %427, %414, %cst_193 {dimension_numbers = #tpu.dot_dimension_numbers<[1], [0], [0], [1], [0, 0, 1, 1], [], []>} : vector<8x8xf32>, vector<8x16xf32>, vector<8x16xf32> -> vector<8x16xf32>
    %429 = vector.extract_strided_slice %384 {offsets = [16, 0], sizes = [16, 32], strides = [1, 1]} : vector<64x32xf32> to vector<16x32xf32>
    %cst_194 = arith.constant dense<0.000000e+00> : vector<8x32xf32>
    %430 = tpu.matmul %428, %429, %cst_194 {dimension_numbers = #tpu.dot_dimension_numbers<[1], [0], [0], [1], [0, 0, 1, 1], [], []>} : vector<8x16xf32>, vector<16x32xf32>, vector<8x32xf32> -> vector<8x32xf32>
    %431 = arith.addf %411, %430 : vector<8x32xf32>
    %432 = vector.extract_strided_slice %387 {offsets = [0, 32], sizes = [8, 16], strides = [1, 1]} : vector<8x64xf32> to vector<8x16xf32>
    %433 = vector.extract_strided_slice %389 {offsets = [0, 32], sizes = [8, 16], strides = [1, 1]} : vector<8x64xf32> to vector<8x16xf32>
    %434 = vector.extract_strided_slice %390 {offsets = [0, 32], sizes = [8, 16], strides = [1, 1]} : vector<8x64xf32> to vector<8x16xf32>
    %cst_195 = arith.constant dense<0.000000e+00> : vector<8x8xf32>
    %435 = tpu.matmul %432, %433, %cst_195 {dimension_numbers = #tpu.dot_dimension_numbers<[1], [1], [0], [0], [0, 0, 1, 0], [], []>} : vector<8x16xf32>, vector<8x16xf32>, vector<8x8xf32> -> vector<8x8xf32>
    %cst_196 = arith.constant 2.500000e-01 : f32
    %436 = vector.broadcast %cst_196 : f32 to vector<8x8xf32>
    %437 = arith.mulf %435, %436 : vector<8x8xf32>
    %cst_197 = arith.constant dense<0xFF800000> : vector<8xf32>
    %438 = vector.multi_reduction <maximumf>, %437, %cst_197 [1] : vector<8x8xf32> to vector<8xf32>
    %439 = vector.shape_cast %438 : vector<8xf32> to vector<8x1xf32>
    %440 = vector.broadcast %439 : vector<8x1xf32> to vector<8x8xf32>
    %441 = arith.subf %437, %440 : vector<8x8xf32>
    %442 = math.exp %441 : vector<8x8xf32>
    %cst_198 = arith.constant dense<0.000000e+00> : vector<8xf32>
    %443 = vector.multi_reduction <add>, %442, %cst_198 [1] : vector<8x8xf32> to vector<8xf32>
    %444 = vector.shape_cast %443 : vector<8xf32> to vector<8x1xf32>
    %445 = tpu.reciprocal %444 {approx = true} : vector<8x1xf32> -> vector<8x1xf32>
    %446 = vector.broadcast %445 : vector<8x1xf32> to vector<8x8xf32>
    %447 = arith.mulf %442, %446 : vector<8x8xf32>
    %cst_199 = arith.constant dense<0.000000e+00> : vector<8x16xf32>
    %448 = tpu.matmul %447, %434, %cst_199 {dimension_numbers = #tpu.dot_dimension_numbers<[1], [0], [0], [1], [0, 0, 1, 1], [], []>} : vector<8x8xf32>, vector<8x16xf32>, vector<8x16xf32> -> vector<8x16xf32>
    %449 = vector.extract_strided_slice %384 {offsets = [32, 0], sizes = [16, 32], strides = [1, 1]} : vector<64x32xf32> to vector<16x32xf32>
    %cst_200 = arith.constant dense<0.000000e+00> : vector<8x32xf32>
    %450 = tpu.matmul %448, %449, %cst_200 {dimension_numbers = #tpu.dot_dimension_numbers<[1], [0], [0], [1], [0, 0, 1, 1], [], []>} : vector<8x16xf32>, vector<16x32xf32>, vector<8x32xf32> -> vector<8x32xf32>
    %451 = arith.addf %431, %450 : vector<8x32xf32>
    %452 = vector.extract_strided_slice %387 {offsets = [0, 48], sizes = [8, 16], strides = [1, 1]} : vector<8x64xf32> to vector<8x16xf32>
    %453 = vector.extract_strided_slice %389 {offsets = [0, 48], sizes = [8, 16], strides = [1, 1]} : vector<8x64xf32> to vector<8x16xf32>
    %454 = vector.extract_strided_slice %390 {offsets = [0, 48], sizes = [8, 16], strides = [1, 1]} : vector<8x64xf32> to vector<8x16xf32>
    %cst_201 = arith.constant dense<0.000000e+00> : vector<8x8xf32>
    %455 = tpu.matmul %452, %453, %cst_201 {dimension_numbers = #tpu.dot_dimension_numbers<[1], [1], [0], [0], [0, 0, 1, 0], [], []>} : vector<8x16xf32>, vector<8x16xf32>, vector<8x8xf32> -> vector<8x8xf32>
    %cst_202 = arith.constant 2.500000e-01 : f32
    %456 = vector.broadcast %cst_202 : f32 to vector<8x8xf32>
    %457 = arith.mulf %455, %456 : vector<8x8xf32>
    %cst_203 = arith.constant dense<0xFF800000> : vector<8xf32>
    %458 = vector.multi_reduction <maximumf>, %457, %cst_203 [1] : vector<8x8xf32> to vector<8xf32>
    %459 = vector.shape_cast %458 : vector<8xf32> to vector<8x1xf32>
    %460 = vector.broadcast %459 : vector<8x1xf32> to vector<8x8xf32>
    %461 = arith.subf %457, %460 : vector<8x8xf32>
    %462 = math.exp %461 : vector<8x8xf32>
    %cst_204 = arith.constant dense<0.000000e+00> : vector<8xf32>
    %463 = vector.multi_reduction <add>, %462, %cst_204 [1] : vector<8x8xf32> to vector<8xf32>
    %464 = vector.shape_cast %463 : vector<8xf32> to vector<8x1xf32>
    %465 = tpu.reciprocal %464 {approx = true} : vector<8x1xf32> -> vector<8x1xf32>
    %466 = vector.broadcast %465 : vector<8x1xf32> to vector<8x8xf32>
    %467 = arith.mulf %462, %466 : vector<8x8xf32>
    %cst_205 = arith.constant dense<0.000000e+00> : vector<8x16xf32>
    %468 = tpu.matmul %467, %454, %cst_205 {dimension_numbers = #tpu.dot_dimension_numbers<[1], [0], [0], [1], [0, 0, 1, 1], [], []>} : vector<8x8xf32>, vector<8x16xf32>, vector<8x16xf32> -> vector<8x16xf32>
    %469 = vector.extract_strided_slice %384 {offsets = [48, 0], sizes = [16, 32], strides = [1, 1]} : vector<64x32xf32> to vector<16x32xf32>
    %cst_206 = arith.constant dense<0.000000e+00> : vector<8x32xf32>
    %470 = tpu.matmul %468, %469, %cst_206 {dimension_numbers = #tpu.dot_dimension_numbers<[1], [0], [0], [1], [0, 0, 1, 1], [], []>} : vector<8x16xf32>, vector<16x32xf32>, vector<8x32xf32> -> vector<8x32xf32>
    %471 = arith.addf %451, %470 : vector<8x32xf32>
    %472 = vector.broadcast %386 : vector<1x32xf32> to vector<8x32xf32>
    %473 = arith.addf %471, %472 : vector<8x32xf32>
    %c1_207 = arith.constant 1 : index
    %c0_208 = arith.constant 0 : index
    %c0_209 = arith.constant 0 : index
    %474 = vector.load %arg23[%c1_207, %c0_208, %c0_209] : memref<2x1x32xf32, #tpu.memory_space<vmem>>, vector<1x1x32xf32>
    %475 = vector.shape_cast %474 : vector<1x1x32xf32> to vector<1x32xf32>
    %c1_210 = arith.constant 1 : index
    %c0_211 = arith.constant 0 : index
    %c0_212 = arith.constant 0 : index
    %476 = vector.load %arg24[%c1_210, %c0_211, %c0_212] : memref<2x1x32xf32, #tpu.memory_space<vmem>>, vector<1x1x32xf32>
    %477 = vector.shape_cast %476 : vector<1x1x32xf32> to vector<1x32xf32>
    %cst_213 = arith.constant dense<0.000000e+00> : vector<8xf32>
    %478 = vector.multi_reduction <add>, %473, %cst_213 [1] : vector<8x32xf32> to vector<8xf32>
    %479 = vector.shape_cast %478 : vector<8xf32> to vector<8x1xf32>
    %cst_214 = arith.constant 3.200000e+01 : f32
    %480 = vector.broadcast %cst_214 : f32 to vector<8x1xf32>
    %481 = arith.divf %479, %480 : vector<8x1xf32>
    %482 = vector.broadcast %481 : vector<8x1xf32> to vector<8x32xf32>
    %483 = arith.subf %473, %482 : vector<8x32xf32>
    %484 = arith.mulf %483, %483 : vector<8x32xf32>
    %cst_215 = arith.constant dense<0.000000e+00> : vector<8xf32>
    %485 = vector.multi_reduction <add>, %484, %cst_215 [1] : vector<8x32xf32> to vector<8xf32>
    %486 = vector.shape_cast %485 : vector<8xf32> to vector<8x1xf32>
    %cst_216 = arith.constant 3.200000e+01 : f32
    %487 = vector.broadcast %cst_216 : f32 to vector<8x1xf32>
    %488 = arith.divf %486, %487 : vector<8x1xf32>
    %cst_217 = arith.constant 9.99999974E-6 : f32
    %489 = vector.broadcast %cst_217 : f32 to vector<8x1xf32>
    %490 = arith.addf %488, %489 : vector<8x1xf32>
    %491 = math.rsqrt %490 : vector<8x1xf32>
    %492 = vector.broadcast %491 : vector<8x1xf32> to vector<8x32xf32>
    %493 = arith.mulf %483, %492 : vector<8x32xf32>
    %494 = vector.broadcast %475 : vector<1x32xf32> to vector<8x32xf32>
    %495 = arith.mulf %493, %494 : vector<8x32xf32>
    %496 = vector.broadcast %477 : vector<1x32xf32> to vector<8x32xf32>
    %497 = arith.addf %495, %496 : vector<8x32xf32>
    %c1_218 = arith.constant 1 : index
    %c0_219 = arith.constant 0 : index
    %c0_220 = arith.constant 0 : index
    %498 = vector.load %arg25[%c1_218, %c0_219, %c0_220] : memref<2x32x64xf32, #tpu.memory_space<vmem>>, vector<1x32x64xf32>
    %499 = vector.shape_cast %498 : vector<1x32x64xf32> to vector<32x64xf32>
    %c1_221 = arith.constant 1 : index
    %c0_222 = arith.constant 0 : index
    %c0_223 = arith.constant 0 : index
    %500 = vector.load %arg26[%c1_221, %c0_222, %c0_223] : memref<2x1x64xf32, #tpu.memory_space<vmem>>, vector<1x1x64xf32>
    %501 = vector.shape_cast %500 : vector<1x1x64xf32> to vector<1x64xf32>
    %c1_224 = arith.constant 1 : index
    %c0_225 = arith.constant 0 : index
    %c0_226 = arith.constant 0 : index
    %502 = vector.load %arg27[%c1_224, %c0_225, %c0_226] : memref<2x64x32xf32, #tpu.memory_space<vmem>>, vector<1x64x32xf32>
    %503 = vector.shape_cast %502 : vector<1x64x32xf32> to vector<64x32xf32>
    %c1_227 = arith.constant 1 : index
    %c0_228 = arith.constant 0 : index
    %c0_229 = arith.constant 0 : index
    %504 = vector.load %arg28[%c1_227, %c0_228, %c0_229] : memref<2x1x32xf32, #tpu.memory_space<vmem>>, vector<1x1x32xf32>
    %505 = vector.shape_cast %504 : vector<1x1x32xf32> to vector<1x32xf32>
    %cst_230 = arith.constant dense<0.000000e+00> : vector<8x64xf32>
    %506 = tpu.matmul %497, %499, %cst_230 {dimension_numbers = #tpu.dot_dimension_numbers<[1], [0], [0], [1], [0, 0, 1, 1], [], []>} : vector<8x32xf32>, vector<32x64xf32>, vector<8x64xf32> -> vector<8x64xf32>
    %507 = vector.broadcast %501 : vector<1x64xf32> to vector<8x64xf32>
    %508 = arith.addf %506, %507 : vector<8x64xf32>
    %cst_231 = arith.constant 5.000000e-01 : f32
    %509 = vector.broadcast %cst_231 : f32 to vector<8x64xf32>
    %510 = arith.mulf %509, %508 : vector<8x64xf32>
    %cst_232 = arith.constant 4.471500e-02 : f32
    %511 = vector.broadcast %cst_232 : f32 to vector<8x64xf32>
    %512 = arith.mulf %511, %508 : vector<8x64xf32>
    %513 = arith.mulf %512, %508 : vector<8x64xf32>
    %514 = arith.mulf %513, %508 : vector<8x64xf32>
    %515 = arith.addf %508, %514 : vector<8x64xf32>
    %cst_233 = arith.constant 0.797884583 : f32
    %516 = vector.broadcast %cst_233 : f32 to vector<8x64xf32>
    %517 = arith.mulf %516, %515 : vector<8x64xf32>
    %518 = math.tanh %517 : vector<8x64xf32>
    %cst_234 = arith.constant 1.000000e+00 : f32
    %519 = vector.broadcast %cst_234 : f32 to vector<8x64xf32>
    %520 = arith.addf %519, %518 : vector<8x64xf32>
    %521 = arith.mulf %510, %520 : vector<8x64xf32>
    %cst_235 = arith.constant dense<0.000000e+00> : vector<8x32xf32>
    %522 = tpu.matmul %521, %503, %cst_235 {dimension_numbers = #tpu.dot_dimension_numbers<[1], [0], [0], [1], [0, 0, 1, 1], [], []>} : vector<8x64xf32>, vector<64x32xf32>, vector<8x32xf32> -> vector<8x32xf32>
    %523 = vector.broadcast %505 : vector<1x32xf32> to vector<8x32xf32>
    %524 = arith.addf %522, %523 : vector<8x32xf32>
    %c0_236 = arith.constant 0 : index
    %c0_237 = arith.constant 0 : index
    %c0_238 = arith.constant 0 : index
    %525 = vector.load %arg29[%c0_236, %c0_237, %c0_238] : memref<1x8x32xf32, #tpu.memory_space<vmem>>, vector<1x8x32xf32>
    %526 = vector.shape_cast %525 : vector<1x8x32xf32> to vector<8x32xf32>
    %527 = vector.shape_cast %524 : vector<8x32xf32> to vector<1x8x32xf32>
    tpu.vector_store %arg29[%c0_236, %c0_237, %c0_238], %527 {strides = array<i32>} : memref<1x8x32xf32, #tpu.memory_space<vmem>>, vector<1x8x32xf32>,
    return
  }
  func.func @transform_0(%arg0: i32) -> (i32, i32, i32) {
    %c0_i32 = arith.constant 0 : i32
    %c0_i32_0 = arith.constant 0 : i32
    %c0_i32_1 = arith.constant 0 : i32
    return %arg0, %c0_i32, %c0_i32_0 : i32, i32, i32
  }
  func.func @transform_1(%arg0: i32) -> (i32, i32) {
    %c0_i32 = arith.constant 0 : i32
    %c0_i32_0 = arith.constant 0 : i32
    %c0_i32_1 = arith.constant 0 : i32
    return %c0_i32, %c0_i32_0 : i32, i32
  }
  func.func @transform_2(%arg0: i32) -> (i32, i32) {
    %c0_i32 = arith.constant 0 : i32
    %c0_i32_0 = arith.constant 0 : i32
    %c0_i32_1 = arith.constant 0 : i32
    return %c0_i32, %c0_i32_0 : i32, i32
  }
  func.func @transform_3(%arg0: i32) -> (i32, i32) {
    %c0_i32 = arith.constant 0 : i32
    %c0_i32_0 = arith.constant 0 : i32
    %c0_i32_1 = arith.constant 0 : i32
    return %c0_i32, %c0_i32_0 : i32, i32
  }
  func.func @transform_4(%arg0: i32) -> (i32, i32) {
    %c0_i32 = arith.constant 0 : i32
    %c0_i32_0 = arith.constant 0 : i32
    %c0_i32_1 = arith.constant 0 : i32
    return %c0_i32, %c0_i32_0 : i32, i32
  }
  func.func @transform_5(%arg0: i32) -> (i32, i32) {
    %c0_i32 = arith.constant 0 : i32
    %c0_i32_0 = arith.constant 0 : i32
    %c0_i32_1 = arith.constant 0 : i32
    return %c0_i32, %c0_i32_0 : i32, i32
  }
  func.func @transform_6(%arg0: i32) -> (i32, i32) {
    %c0_i32 = arith.constant 0 : i32
    %c0_i32_0 = arith.constant 0 : i32
    %c0_i32_1 = arith.constant 0 : i32
    return %c0_i32, %c0_i32_0 : i32, i32
  }
  func.func @transform_7(%arg0: i32) -> (i32, i32) {
    %c0_i32 = arith.constant 0 : i32
    %c0_i32_0 = arith.constant 0 : i32
    %c0_i32_1 = arith.constant 0 : i32
    return %c0_i32, %c0_i32_0 : i32, i32
  }
  func.func @transform_8(%arg0: i32) -> (i32, i32) {
    %c0_i32 = arith.constant 0 : i32
    %c0_i32_0 = arith.constant 0 : i32
    %c0_i32_1 = arith.constant 0 : i32
    return %c0_i32, %c0_i32_0 : i32, i32
  }
  func.func @transform_9(%arg0: i32) -> (i32, i32) {
    %c0_i32 = arith.constant 0 : i32
    %c0_i32_0 = arith.constant 0 : i32
    %c0_i32_1 = arith.constant 0 : i32
    return %c0_i32, %c0_i32_0 : i32, i32
  }
  func.func @transform_10(%arg0: i32) -> (i32, i32) {
    %c0_i32 = arith.constant 0 : i32
    %c0_i32_0 = arith.constant 0 : i32
    %c0_i32_1 = arith.constant 0 : i32
    return %c0_i32, %c0_i32_0 : i32, i32
  }
  func.func @transform_11(%arg0: i32) -> (i32, i32) {
    %c0_i32 = arith.constant 0 : i32
    %c0_i32_0 = arith.constant 0 : i32
    %c0_i32_1 = arith.constant 0 : i32
    return %c0_i32, %c0_i32_0 : i32, i32
  }
  func.func @transform_12(%arg0: i32) -> (i32, i32) {
    %c0_i32 = arith.constant 0 : i32
    %c0_i32_0 = arith.constant 0 : i32
    %c0_i32_1 = arith.constant 0 : i32
    return %c0_i32, %c0_i32_0 : i32, i32
  }
  func.func @transform_13(%arg0: i32) -> (i32, i32) {
    %c0_i32 = arith.constant 0 : i32
    %c0_i32_0 = arith.constant 0 : i32
    %c0_i32_1 = arith.constant 0 : i32
    return %c0_i32, %c0_i32_0 : i32, i32
  }
  func.func @transform_14(%arg0: i32) -> (i32, i32) {
    %c0_i32 = arith.constant 0 : i32
    %c0_i32_0 = arith.constant 0 : i32
    %c0_i32_1 = arith.constant 0 : i32
    return %c0_i32, %c0_i32_0 : i32, i32
  }
  func.func @transform_15(%arg0: i32) -> (i32, i32) {
    %c0_i32 = arith.constant 0 : i32
    %c0_i32_0 = arith.constant 0 : i32
    %c0_i32_1 = arith.constant 0 : i32
    return %c0_i32, %c0_i32_0 : i32, i32
  }
  func.func @transform_16(%arg0: i32) -> (i32, i32, i32) {
    %c0_i32 = arith.constant 0 : i32
    %c0_i32_0 = arith.constant 0 : i32
    %c0_i32_1 = arith.constant 0 : i32
    %c0_i32_2 = arith.constant 0 : i32
    return %c0_i32, %c0_i32_0, %c0_i32_1 : i32, i32, i32
  }
  func.func @transform_17(%arg0: i32) -> (i32, i32, i32) {
    %c0_i32 = arith.constant 0 : i32
    %c0_i32_0 = arith.constant 0 : i32
    %c0_i32_1 = arith.constant 0 : i32
    %c0_i32_2 = arith.constant 0 : i32
    return %c0_i32, %c0_i32_0, %c0_i32_1 : i32, i32, i32
  }
  func.func @transform_18(%arg0: i32) -> (i32, i32, i32) {
    %c0_i32 = arith.constant 0 : i32
    %c0_i32_0 = arith.constant 0 : i32
    %c0_i32_1 = arith.constant 0 : i32
    %c0_i32_2 = arith.constant 0 : i32
    return %c0_i32, %c0_i32_0, %c0_i32_1 : i32, i32, i32
  }
  func.func @transform_19(%arg0: i32) -> (i32, i32, i32) {
    %c0_i32 = arith.constant 0 : i32
    %c0_i32_0 = arith.constant 0 : i32
    %c0_i32_1 = arith.constant 0 : i32
    %c0_i32_2 = arith.constant 0 : i32
    return %c0_i32, %c0_i32_0, %c0_i32_1 : i32, i32, i32
  }
  func.func @transform_20(%arg0: i32) -> (i32, i32, i32) {
    %c0_i32 = arith.constant 0 : i32
    %c0_i32_0 = arith.constant 0 : i32
    %c0_i32_1 = arith.constant 0 : i32
    %c0_i32_2 = arith.constant 0 : i32
    return %c0_i32, %c0_i32_0, %c0_i32_1 : i32, i32, i32
  }
  func.func @transform_21(%arg0: i32) -> (i32, i32, i32) {
    %c0_i32 = arith.constant 0 : i32
    %c0_i32_0 = arith.constant 0 : i32
    %c0_i32_1 = arith.constant 0 : i32
    %c0_i32_2 = arith.constant 0 : i32
    return %c0_i32, %c0_i32_0, %c0_i32_1 : i32, i32, i32
  }
  func.func @transform_22(%arg0: i32) -> (i32, i32, i32) {
    %c0_i32 = arith.constant 0 : i32
    %c0_i32_0 = arith.constant 0 : i32
    %c0_i32_1 = arith.constant 0 : i32
    %c0_i32_2 = arith.constant 0 : i32
    return %c0_i32, %c0_i32_0, %c0_i32_1 : i32, i32, i32
  }
  func.func @transform_23(%arg0: i32) -> (i32, i32, i32) {
    %c0_i32 = arith.constant 0 : i32
    %c0_i32_0 = arith.constant 0 : i32
    %c0_i32_1 = arith.constant 0 : i32
    %c0_i32_2 = arith.constant 0 : i32
    return %c0_i32, %c0_i32_0, %c0_i32_1 : i32, i32, i32
  }
  func.func @transform_24(%arg0: i32) -> (i32, i32, i32) {
    %c0_i32 = arith.constant 0 : i32
    %c0_i32_0 = arith.constant 0 : i32
    %c0_i32_1 = arith.constant 0 : i32
    %c0_i32_2 = arith.constant 0 : i32
    return %c0_i32, %c0_i32_0, %c0_i32_1 : i32, i32, i32
  }
  func.func @transform_25(%arg0: i32) -> (i32, i32, i32) {
    %c0_i32 = arith.constant 0 : i32
    %c0_i32_0 = arith.constant 0 : i32
    %c0_i32_1 = arith.constant 0 : i32
    %c0_i32_2 = arith.constant 0 : i32
    return %c0_i32, %c0_i32_0, %c0_i32_1 : i32, i32, i32
  }
  func.func @transform_26(%arg0: i32) -> (i32, i32, i32) {
    %c0_i32 = arith.constant 0 : i32
    %c0_i32_0 = arith.constant 0 : i32
    %c0_i32_1 = arith.constant 0 : i32
    %c0_i32_2 = arith.constant 0 : i32
    return %c0_i32, %c0_i32_0, %c0_i32_1 : i32, i32, i32
  }
  func.func @transform_27(%arg0: i32) -> (i32, i32, i32) {
    %c0_i32 = arith.constant 0 : i32
    %c0_i32_0 = arith.constant 0 : i32
    %c0_i32_1 = arith.constant 0 : i32
    %c0_i32_2 = arith.constant 0 : i32
    return %c0_i32, %c0_i32_0, %c0_i32_1 : i32, i32, i32
  }
  func.func @transform_28(%arg0: i32) -> (i32, i32, i32) {
    %c0_i32 = arith.constant 0 : i32
    %c0_i32_0 = arith.constant 0 : i32
    %c0_i32_1 = arith.constant 0 : i32
    return %arg0, %c0_i32, %c0_i32_0 : i32, i32, i32
  }
}

</mosaic_0001>

<bundles_post_ra>
// kernel: perceiver_forward.1
= control target key start
LH: loop header
LB: loop body
LE: loop exit
PB: predicated region body
PF: predicated region fallthrough
CT: control target
= control target key end

     0   :  { %s7092_s0 = inlined_call_operand.vmem [shape: f32[2,16,32], index: 0, kind: input, shape index: {}]   ;;  %s7093_s1 = inlined_call_operand.vmem [shape: f32[8,32], index: 1, kind: input, shape index: {}]   ;;  %s7094_s2 = inlined_call_operand.vmem [shape: f32[1,32], index: 2, kind: input, shape index: {}]   ;;  %s7095_s3 = inlined_call_operand.vmem [shape: f32[1,32], index: 3, kind: input, shape index: {}]   ;;  %s7096_s4 = inlined_call_operand.vmem [shape: f32[1,32], index: 4, kind: input, shape index: {}]   ;;  %s7097_s5 = inlined_call_operand.vmem [shape: f32[1,32], index: 5, kind: input, shape index: {}]   ;;  %s7098_s6 = inlined_call_operand.vmem [shape: f32[32,64], index: 6, kind: input, shape index: {}]   ;;  %s7099_s7 = inlined_call_operand.vmem [shape: f32[32,128], index: 7, kind: input, shape index: {}]   ;;  %s7100_s8 = inlined_call_operand.vmem [shape: f32[64,32], index: 8, kind: input, shape index: {}]   ;;  %s7101_s9 = inlined_call_operand.vmem [shape: f32[1,32], index: 9, kind: input, shape index: {}]   ;;  %s7102_s10 = inlined_call_operand.vmem [shape: f32[1,32], index: 10, kind: input, shape index: {}]   ;;  %s7103_s11 = inlined_call_operand.vmem [shape: f32[1,32], index: 11, kind: input, shape index: {}]   ;;  %s7104_s12 = inlined_call_operand.vmem [shape: f32[32,64], index: 12, kind: input, shape index: {}]   ;;  %s7105_s13 = inlined_call_operand.vmem [shape: f32[1,64], index: 13, kind: input, shape index: {}]   ;;  %s7106_s14 = inlined_call_operand.vmem [shape: f32[64,32], index: 14, kind: input, shape index: {}]   ;;  %s7107_s15 = inlined_call_operand.vmem [shape: f32[1,32], index: 15, kind: input, shape index: {}]   ;;  %s7108_s16 = inlined_call_operand.vmem [shape: f32[2,1,32], index: 16, kind: input, shape index: {}]   ;;  %s7109_s17 = inlined_call_operand.vmem [shape: f32[2,1,32], index: 17, kind: input, shape index: {}]   ;;  %s7110_s18 = inlined_call_operand.vmem [shape: f32[2,32,64], index: 18, kind: input, shape index: {}]   ;;  %s7111_s19 = inlined_call_operand.vmem [shape: f32[2,32,128], index: 19, kind: input, shape index: {}]   ;;  %s7112_s20 = inlined_call_operand.vmem [shape: f32[2,64,32], index: 20, kind: input, shape index: {}]   ;;  %s7113_s21 = inlined_call_operand.vmem [shape: f32[2,1,32], index: 21, kind: input, shape index: {}]   ;;  %s7114_s22 = inlined_call_operand.vmem [shape: f32[2,1,32], index: 22, kind: input, shape index: {}]   ;;  %s7115_s23 = inlined_call_operand.vmem [shape: f32[2,1,32], index: 23, kind: input, shape index: {}]   ;;  %s7116_s24 = inlined_call_operand.vmem [shape: f32[2,32,64], index: 24, kind: input, shape index: {}]   ;;  %s7117_s25 = inlined_call_operand.vmem [shape: f32[2,1,64], index: 25, kind: input, shape index: {}]   ;;  %s7118_s26 = inlined_call_operand.vmem [shape: f32[2,64,32], index: 26, kind: input, shape index: {}]   ;;  %s7119_s27 = inlined_call_operand.vmem [shape: f32[2,1,32], index: 27, kind: input, shape index: {}]   ;;  %s7120_s28 = inlined_call_operand.hbm [shape: f32[2,8,32], index: 28, kind: output, shape index: {}]  }
   0x1   :  { %7150 = sst [smem:[#allocation11_spill]] %s7092_s0 }
   0x2   :  { %7151 = sst [smem:[#allocation12_spill]] %s7093_s1 }
   0x3   :  { %7152 = sst [smem:[#allocation13_spill]] %s7094_s2 }
   0x4   :  { %7153 = sst [smem:[#allocation14_spill]] %s7095_s3 }
   0x5   :  { %7154 = sst [smem:[#allocation15_spill]] %s7096_s4 }
   0x6   :  { %7155 = sst [smem:[#allocation16_spill]] %s7097_s5 }
   0x7   :  { %7156 = sst [smem:[#allocation17_spill]] %s7098_s6 }
   0x8   :  { %7157 = sst [smem:[#allocation18_spill]] %s7099_s7 }
   0x9   :  { %7158 = sst [smem:[#allocation19_spill]] %s7100_s8 }
   0xa   :  { %7159 = sst [smem:[#allocation20_spill]] %s7101_s9 }
   0xb   :  { %7160 = sst [smem:[#allocation21_spill]] %s7102_s10 }
   0xc   :  { %7161 = sst [smem:[#allocation22_spill]] %s7103_s11 }
   0xd   :  { %7162 = sst [smem:[#allocation23_spill]] %s7104_s12 }
   0xe   :  { %7163 = sst [smem:[#allocation24_spill]] %s7105_s13 }
   0xf   :  { %7164 = sst [smem:[#allocation25_spill]] %s7106_s14 }
  0x10   :  { %7165 = sst [smem:[#allocation26_spill]] %s7107_s15 }
  0x11   :  { %7166 = sst [smem:[#allocation27_spill]] %s7110_s18 }
  0x12   :  { %7167 = sst [smem:[#allocation28_spill]] %s7120_s28 }
  0x13   :  { %33 = vsyncpa [#allocation3], 0 }
  0x14   :  { %35 = vsyncpa [#allocation3 + $0x1], 0  ;;  %s6314_s8 = smov 0   ;;  %s6316_s5 = smov 0  }
  0x15   :  { %s6318_s9 = smov 0   ;;  %s6320_s30 = smov 0  }
  0x16 LB: > { %7168 = sst [smem:[#allocation5_spill]] %s6144_s8  ;;  %s6335_s3 = sadd.s32 4294967295, %s6156_s30   ;;  %s6156_s30 = sphi %s6320_s30, %s7207_s30   ;;  %s6152_s9 = sphi %s6318_s9, %s7209_s9   ;;  %s6148_s5 = sphi %s6316_s5, %s7211_s5   ;;  %s6144_s8 = sphi %s6314_s8, %s7210_s8  }
  0x17   : > { %7169 = sst [smem:[#allocation6_spill]] %s6152_s9  ;;  %s5108_s6 = sadd.s32 4294967294, %s6156_s30  }
  0x18   : > { %7170 = sst [smem:[#allocation7_spill]] %s6156_s30  ;;  %s6339_s10 = sadd.s32 1, %s6156_s30  }
  0x19   : > { %7171 = sst [smem:[#allocation8_spill]] %s6339_s10  ;;  %s641_s0 = sadd.s32 1, %s6152_s9 }
  0x1a   : > { %s638_s11 = ssub.s32 %s6156_s30, %s6339_s10  ;;  %p651_p0 = scmp.ne.s32.totalorder %s6152_s9, %s6148_s5 }
  0x1b   : > { %p639_p1 = scmp.eq.s32.totalorder %s638_s11, 0  ;;  %p652_p2 = scmp.eq.s32.totalorder %s6335_s3, 1 }
  0x1c   : > { %p657_p3 = scmp.ne.s32.totalorder %s6148_s5, %s6144_s8  ;;  %p658_p4 = scmp.eq.s32.totalorder %s5108_s6, 1 }
  0x1d   : > { %s6350_s29 = scalar_select %p639_p1, %s6152_s9, %s641_s0  }
  0x1e   : > { %p6352_p5 = por %p652_p2, %p651_p0  ;;  %p6356_p6 = por %p658_p4, %p657_p3 }
  0x1f   : > { %7172 = sst [smem:[#allocation9_spill]] %s6350_s29  ;;  %p5111_p7 = scmp.ge.s32.totalorder %s6156_s30, 1 }
  0x20   : > { %s7174_s7 = scalar_select %p6356_p6, 1, 0 }
  0x21   : > { %p765_p8 = scmp.lt.s32.totalorder %s6156_s30, 3 }
  0x22   : > { %7175 = sst [smem:[#allocation10_spill]] %s7174_s7 }
  0x23   : > { %p766_p9 = pnand %p5111_p7, %p765_p8 }
  0x24   : > { %p839_p10 = scmp.lt.s32.totalorder (!%p766_p9), %s6335_s3, 1  ;;  %vm849_vm0 = vcmask (!%p766_p9), 261120   ;;  %s7176_s4 = sld [smem:[#allocation12_spill]] (!%p766_p9)  ;;  %v6158_v24 = vmov (!%p766_p9), 0.0|0.0   ;;  %vm6159_vm1 = vmmov (!%p766_p9), 0   ;;  %v6160_v34 = vmov (!%p766_p9), 0.0  }
  0x25   : > { %769 = sbr.rel (%p766_p9) target bundleno = 10710 (0x29d6), region = 132  ;;  %s7177_s9 = sld [smem:[#allocation11_spill]] (!%p766_p9)  ;;  %5784 = vmatprep.subr.bf16.mxu0 (!%p766_p9), %v6158_v24  ;;  %5416 = vmatprep.mubr.msk.f32.mxu0 (!%p766_p9), %vm6159_vm1, %v6160_v34  ;;  %vm1093_vm2 = vcmask (!%p766_p9), 130048   ;;  %vm2222_vm4 = vcmask (!%p766_p9), 523264   ;;  %vm2563_vm5 = vcmask (!%p766_p9), 64512  }
  0x26   : > { %s7178_s29 = sld [smem:[#allocation18_spill]] (!%p766_p9)  ;;  %s7182_s8 = sld [smem:[#allocation13_spill]] (!%p766_p9)  ;;  %vm6432_vm3 = vmpackc.low (!%p766_p9), %vm1093_vm2, %vm1093_vm2 }
  0x27   : > { %s7135_s1 = smov (!%p766_p9), 80   ;;  %s7137_s7 = smov (!%p766_p9), 32  }
  0x28   : > { %s7133_s12 = smov (!%p766_p9), 16   ;;  %s7192_s14 = sld [smem:[#allocation25_spill]] (!%p766_p9) }
  0x29   : > { %s7193_s13 = sld [smem:[#allocation24_spill]] (!%p766_p9)  ;;  %s7194_s15 = sld [smem:[#allocation26_spill]] (!%p766_p9) }
  0x2a   : > { %v6366_v0 = vld [vmem:[%s7176_s4] sm:$0xff] (!%p766_p9)  ;;  %s7143_s4 = smov (!%p766_p9), 48   ;;  %s7195_s18 = sld [smem:[#allocation27_spill]] (!%p766_p9) }
  0x2b   : > { %v850_v1 = vsel (!%p766_p9), %vm849_vm0, %v6366_v0, 0.0  ;;  %s7199_s30 = smov (!%p766_p9), 64  }
  0x2c   : > { %s840_s6 = scalar_select %p839_p10, %s6335_s3, 1  ;;  %851 = vadd.xlane.f32.xlu1 %v850_v1  ;;  %v926_v21 = vld [vmem:[%s7178_s29] sm:$0xff]  ;;  %v927_v22 = vld [vmem:[%s7178_s29 + $0x8] sm:$0xff]  ;;  %v928_v27 = vld [vmem:[%s7178_s29 + $0x10] sm:$0xff] }
  0x2d   : > { %v5790_v25 = vpack.c.bf16 %v927_v22, %v926_v21  ;;  %v929_v28 = vld [vmem:[%s7178_s29 + $0x18] sm:$0xff]  ;;  %v5115_v50 = vld [vmem:[%s7182_s8] ss:$0 sm:$0xff]  ;;  %s7183_s29 = sld [smem:[#allocation14_spill]]  ;;  %s7198_s8 = smov 96  }
  0x2e   : > { %s5242_s0 = sshll.u32 %s840_s6, 4  ;;  %v5794_v30 = vpack.c.bf16 %v929_v28, %v928_v27  ;;  %s7180_s6 = sld [smem:[#allocation15_spill]] }
  0x2f   : > { %s843_s10 = scalar_lea.vmem %s7177_s9, %s5242_s0  ;;  %s7179_s0 = sld [smem:[#allocation17_spill]]  ;;  %5791 = vmatprep.subr.bf16.mxu1 %v5790_v25 }
  0x30   : > { %v844_v2 = vld [vmem:[%s843_s10] sm:$0xff]  ;;  %v845_v3 = vld [vmem:[%s843_s10 + $0x8] sm:$0xff]  ;;  %5793 = vmatpush3.bf16.msra.mxu1 %v5790_v25  ;;  %s7181_s10 = sld [smem:[#allocation16_spill]]  ;;  %s7188_s9 = sld [smem:[#allocation23_spill]] }
  0x31   : > { %v880_v4 = vsel %vm849_vm0, %v844_v2, 0.0  ;;  %v883_v5 = vsel %vm849_vm0, %v845_v3, 0.0  ;;  %5795 = vmatprep.subr.bf16.mxu1 %v5794_v30 }
  0x32   : > { %881 = vadd.xlane.f32.xlu0 %v880_v4 }
  0x33   : > { %v5116_v55 = vld [vmem:[%s7183_s29] ss:$0 sm:$0xff]  ;;  %s7145_s29 = smov 112  }
  0x34   : > { %5797 = vmatpush3.bf16.msra.mxu1 %v5794_v30  ;;  %v5117_v45 = vld [vmem:[%s7180_s6] ss:$0 sm:$0xff]  ;;  %s7141_s6 = smov 96  }
  0x35   : > { %v922_v23 = vld [vmem:[%s7179_s0] sm:$0xff]  ;;  %v923_v26 = vld [vmem:[%s7179_s0 + $0x8] sm:$0xff]  ;;  %5805 = vmatprep.subr.bf16.mxu1 %v6158_v24  ;;  %v924_v31 = vld [vmem:[%s7179_s0 + $0x10] sm:$0xff] }
  0x36   : > { %884 = vadd.xlane.f32.xlu0 %v883_v5  ;;  %v5785_v29 = vpack.c.bf16 %v923_v26, %v922_v23  ;;  %v925_v32 = vld [vmem:[%s7179_s0 + $0x18] sm:$0xff]  ;;  %v5118_v47 = vld [vmem:[%s7181_s10] ss:$0 sm:$0xff]  ;;  %s7139_s0 = smov 64   ;;  %s7186_s10 = sld [smem:[#allocation19_spill]] }
  0x37   : > { %v5788_v33 = vpack.c.bf16 %v925_v32, %v924_v31 }
  0x38   : > { %5786 = vmatpush3.bf16.msra.mxu0 %v5785_v29 }
  0x39   : > { %5787 = vmatprep.subr.bf16.mxu0 %v6158_v24 }
  0x3c   : > { %5789 = vmatpush3.bf16.msra.mxu0 %v5788_v33  ;;  %v930_v33 = vld [vmem:[%s7186_s10] sm:$0xff] }
  0x3d   : > { %5798 = vmatprep.subr.bf16.mxu0 %v6158_v24 }
  0xb9   : > { %v852_v6 = vpop.xlane.xlu1 %851 }
  0xba   : > { %v854_v7 = vmul.f32 0.03125, %v852_v6 }
  0xbc   : > { %v855_v10 = vsub.f32 %v6366_v0, %v854_v7 }
  0xbe   : > { %v856_v15 = vmul.f32 %v855_v10, %v855_v10 }
  0xbf   : > { %v882_v8 = vpop.xlane.xlu0 %881 }
  0xc0   : > { %v886_v9 = vmul.f32 0.03125, %v882_v8  ;;  %v857_v18 = vsel %vm849_vm0, %v856_v15, 0.0 }
  0xc2   : > { %v888_v11 = vsub.f32 %v844_v2, %v886_v9 }
  0xc3   : > { %v885_v12 = vpop.xlane.xlu0 %884 }
  0xc4   : > { %v887_v13 = vmul.f32 0.03125, %v885_v12  ;;  %v890_v14 = vmul.f32 %v888_v11, %v888_v11 }
  0xc6   : > { %v889_v16 = vsub.f32 %v845_v3, %v887_v13  ;;  %v892_v17 = vsel %vm849_vm0, %v890_v14, 0.0 }
  0xc7   : > { %893 = vadd.xlane.f32.xlu1 %v892_v17 }
  0xc8   : > { %v891_v19 = vmul.f32 %v889_v16, %v889_v16 }
  0xca   : > { %v895_v20 = vsel %vm849_vm0, %v891_v19, 0.0 }
  0xcb   : > { %858 = vadd.xlane.f32.xlu1 %v857_v18  ;;  %896 = vadd.xlane.f32.xlu0 %v895_v20 }
 0x154   : > { %v894_v35 = vpop.xlane.xlu1 %893 }
 0x155   : > { %v898_v36 = vmul.f32 0.03125, %v894_v35  ;;  %v931_v35 = vld [vmem:[%s7186_s10 + $0x8] sm:$0xff] }
 0x157   : > { %v900_v37 = vadd.f32 1e-05, %v898_v36  ;;  %v5816_v36 = vpack.c.bf16 %v931_v35, %v930_v33  ;;  %v935_v33 = vld [vmem:[%s7186_s10 + $0x28] sm:$0xff] }
 0x158   : > { %v859_v38 = vpop.xlane.xlu1 %858  ;;  %v897_v39 = vpop.xlane.xlu0 %896 }
 0x159   : > { %6024 = vrsqrt.f32 %v900_v37  ;;  %v860_v40 = vmul.f32 0.03125, %v859_v38  ;;  %v899_v41 = vmul.f32 0.03125, %v897_v39 }
 0x15b   : > { %v861_v42 = vadd.f32 1e-05, %v860_v40  ;;  %v901_v43 = vadd.f32 1e-05, %v899_v41 }
 0x15d   : > { %6026 = vrsqrt.f32 %v861_v42 }
 0x15e   : > { %6028 = vrsqrt.f32 %v901_v43 }
 0x163   : > { %v6025_v44 = vpop.eup %6024 }
 0x164   : > { %v904_v46 = vmul.f32 %v6025_v44, %v888_v11  ;;  %v932_v44 = vld [vmem:[%s7186_s10 + $0x10] sm:$0xff] }
 0x166   : > { %v912_v48 = vmul.f32 %v5117_v45, %v904_v46 }
 0x167   : > { %v6027_v49 = vpop.eup %6026 }
 0x168   : > { %v6029_v51 = vpop.eup %6028  ;;  %v920_v52 = vadd.f32 %v5118_v47, %v912_v48  ;;  %v863_v53 = vmul.f32 %v6027_v49, %v855_v10 }
 0x169   : > { %v905_v54 = vmul.f32 %v6029_v51, %v889_v16 }
 0x16a   : > { %5427 = vmatprep.mubr.msk.f32.mxu1 %vm849_vm0, %v920_v52  ;;  %v870_v56 = vmul.f32 %v5115_v50, %v863_v53 }
 0x16b   : > { %v913_v57 = vmul.f32 %v5117_v45, %v905_v54  ;;  %v933_v45 = vld [vmem:[%s7186_s10 + $0x18] sm:$0xff] }
 0x16c   : > { %v877_v58 = vadd.f32 %v5116_v55, %v870_v56 }
 0x16d   : > { %v921_v59 = vadd.f32 %v5118_v47, %v913_v57  ;;  %v5813_v47 = vpack.c.bf16 %v933_v45, %v932_v44  ;;  %v936_v44 = vld [vmem:[%s7186_s10 + $0x30] sm:$0xff]  ;;  %v937_v45 = vld [vmem:[%s7186_s10 + $0x38] sm:$0xff] }
 0x16e   : > { %5417 = vmatmul.mubr.msk.f32.vlgmr.msra.gmra.mrb[0].mxu0 %vm849_vm0, %v877_v58 }
 0x16f   : > { %5428 = vmatmul.mubr.msk.f32.vlgmr.msra.gmra.mrb[0].mxu1 %vm849_vm0, %v921_v59  ;;  %5434 = vmatprep.mubr.msk.f32.mxu0 %vm6159_vm1, %v6160_v34 }
 0x170   : > { %5448 = vmatprep.mubr.msk.f32.mxu1 %vm6159_vm1, %v6160_v34 }
 0x241   : > { %v1008_v60 = vpop.f32.mrb[0].mxu0 }
 0x242   : > { %v5429_v61 = vpop.f32.mrb[0].mxu1  ;;  %1264 = vrot.lane.b32.xlu1 %v1008_v60, %s7145_s29  ;;  %v5418_v62 = vpop.f32.mrb[1].mxu0 }
 0x243   : > { %v1084_v63 = vpop.f32.mrb[1].mxu1 }
 0x244   : > { %v6436_v2 = vpack.i.bf16 %v5429_v61, %v1084_v63  ;;  %v5799_v3 = vpack.c.bf16 %v5429_v61, %v1084_v63 }
 0x246   : > { %5990 = vrot.lane.b32.xlu0 %v6436_v2, %s7145_s29  ;;  %5801 = vmatpush3.bf16.xpose.msk.msra.mxu0 %vm6432_vm3, %v5799_v3  ;;  %s7197_s29 = smov 48  }
 0x247   : > { %5802 = vmatprep.subr.bf16.mxu0 %v6158_v24 }
 0x24d   : > { %5435 = vmatmul.mubr.msk.f32.vlgmr.msra.gmra.mrb[2].mxu0 %vm1093_vm2, %v1008_v60 }
 0x24e   : > { %5441 = vmatprep.mubr.msk.f32.mxu0 %vm6159_vm1, %v6160_v34 }
 0x2b4   : > { %v1265_v8 = vpop.permute.xlu1 %1264 }
 0x2b8   : > { %v5991_v4 = vpop.permute.xlu0 %5990 }
 0x2b9   : > { %v5993_v5 = vunpack.i.h.bf16 %v5991_v4  ;;  %v5992_v6 = vunpack.i.l.bf16 %v5991_v4 }
 0x2bb   : > { %v5806_v7 = vpack.c.bf16 %v5993_v5, %v5992_v6 }
 0x2bd   : > { %5808 = vmatpush3.bf16.xpose.msk.msra.mxu1 %vm6432_vm3, %v5806_v7 }
 0x2be   : > { %5815 = vmatprep.subr.bf16.mxu1 %v6158_v24 }
 0x2c4   : > { %5449 = vmatmul.mubr.msk.f32.vlgmr.msra.gmra.mrb[2].mxu1 %vm1093_vm2, %v1265_v8 }
 0x2c5   : > { %5469 = vmatprep.mubr.msk.f32.mxu1 %vm6159_vm1, %v6160_v34  ;;  %5817 = vmatpush3.bf16.msra.mxu1 %v5816_v36 }
 0x2c6   : > { %5822 = vmatprep.subr.bf16.mxu1 %v6158_v24 }
 0x320   : > { %v1169_v9 = vpop.f32.mrb[2].mxu0 }
 0x321   : > { %v1173_v10 = vmul.f32 0.25, %v1169_v9  ;;  %v5436_v11 = vpop.f32.mrb[3].mxu0 }
 0x323   : > { %v1174_v12 = vsel %vm1093_vm2, %v1173_v10, -inf }
 0x324   : > { %1175 = vmax.xlane.f32.xlu1 %v1174_v12 }
 0x397   : > { %v1342_v13 = vpop.f32.mrb[2].mxu1 }
 0x398   : > { %v1346_v14 = vmul.f32 0.25, %v1342_v13  ;;  %v5450_v15 = vpop.f32.mrb[3].mxu1 }
 0x39a   : > { %v1347_v16 = vsel %vm1093_vm2, %v1346_v14, -inf }
 0x39b   : > { %1348 = vmax.xlane.f32.xlu0 %v1347_v16 }
 0x3b1   : > { %v1176_v17 = vpop.xlane.xlu1 %1175 }
 0x3b2   : > { %v1177_v18 = vsub.f32 %v1173_v10, %v1176_v17 }
 0x3b4   : > { %v1178_v19 = vmul.f32 1.442695, %v1177_v18 }
 0x3b6   : > { %6030 = vpow2.f32 %v1178_v19 }
 0x3c0   : > { %v6031_v20 = vpop.eup %6030 }
 0x3c1   : > { %v1180_v21 = vsel %vm1093_vm2, %v6031_v20, 0.0 }
 0x3c2   : > { %1181 = vadd.xlane.f32.xlu0 %v1180_v21 }
 0x3d8   : > { %5995 = vrot.lane.b32.xlu0 %v6436_v2, %s7139_s0  ;;  %s7201_s0 = smov 80  }
 0x3dc   : > { %6010 = vrot.lane.b32.xlu0 %v6436_v2, %s7135_s1 }
 0x428   : > { %v1349_v22 = vpop.xlane.xlu0 %1348 }
 0x429   : > { %v1350_v23 = vsub.f32 %v1346_v14, %v1349_v22 }
 0x42b   : > { %v1351_v25 = vmul.f32 1.442695, %v1350_v23 }
 0x42d   : > { %6032 = vpow2.f32 %v1351_v25 }
 0x437   : > { %v6033_v26 = vpop.eup %6032 }
 0x438   : > { %v1353_v27 = vsel %vm1093_vm2, %v6033_v26, 0.0 }
 0x439   : > { %1354 = vadd.xlane.f32.xlu1 %v1353_v27 }
 0x44a   : > { %6000 = vrot.lane.b32.xlu1 %v6436_v2, %s7143_s4  ;;  %s7191_s4 = sld [smem:[#allocation22_spill]] }
 0x44e   : > { %6005 = vrot.lane.b32.xlu1 %v6436_v2, %s7141_s6 }
 0x44f   : > { %v1182_v28 = vpop.xlane.xlu0 %1181 }
 0x450   : > { %6034 = vrcp.f32 %v1182_v28 }
 0x452   : > { %1583 = vrot.lane.b32.xlu1 %v1008_v60, %s7141_s6  ;;  %s7196_s6 = smov 112  }
 0x453   : > { %v5996_v29 = vpop.permute.xlu0 %5995 }
 0x454   : > { %v5998_v30 = vunpack.i.h.bf16 %v5996_v29  ;;  %v5997_v31 = vunpack.i.l.bf16 %v5996_v29 }
 0x456   : > { %v5803_v32 = vpack.c.bf16 %v5998_v30, %v5997_v31  ;;  %1830 = vrot.lane.b32.xlu1 %v1008_v60, %s7135_s1  ;;  %s7189_s1 = smov %s7188_s9 }
 0x457   : > { %v6011_v56 = vpop.permute.xlu0 %6010 }
 0x458   : > { %5804 = vmatpush3.bf16.msra.mxu0 %v5803_v32  ;;  %v6013_v58 = vunpack.i.h.bf16 %v6011_v56  ;;  %v6012_v59 = vunpack.i.l.bf16 %v6011_v56  ;;  %v934_v32 = vld [vmem:[%s7186_s10 + $0x20] sm:$0xff]  ;;  %s7203_s10 = sld [smem:[#allocation28_spill]] }
 0x459   : > { %5809 = vmatprep.subr.bf16.mxu0 %v6158_v24  ;;  %v5826_v35 = vpack.c.bf16 %v935_v33, %v934_v32 }
 0x45a   : > { %v6035_v37 = vpop.eup %6034  ;;  %v5829_v60 = vpack.c.bf16 %v6013_v58, %v6012_v59 }
 0x45b   : > { %v1184_v38 = vmul.f32 %v6035_v37, %v6031_v20 }
 0x45d   : > { %5442 = vmatmul.mubr.msk.f32.vlgmr.msra.gmra.mrb[4].mxu0 %vm1093_vm2, %v1184_v38 }
 0x45e   : > { %5455 = vmatprep.mubr.msk.f32.mxu0 %vm6159_vm1, %v6160_v34 }
 0x4c6   : > { %v1355_v39 = vpop.xlane.xlu1 %1354 }
 0x4c7   : > { %6036 = vrcp.f32 %v1355_v39 }
 0x4ca   : > { %v6001_v40 = vpop.permute.xlu1 %6000 }
 0x4cb   : > { %v6003_v41 = vunpack.i.h.bf16 %v6001_v40  ;;  %v6002_v42 = vunpack.i.l.bf16 %v6001_v40 }
 0x4cd   : > { %v5810_v43 = vpack.c.bf16 %v6003_v41, %v6002_v42 }
 0x4ce   : > { %v6006_v51 = vpop.permute.xlu1 %6005 }
 0x4cf   : > { %5811 = vmatpush3.bf16.msra.mxu0 %v5810_v43  ;;  %v6008_v52 = vunpack.i.h.bf16 %v6006_v51  ;;  %v6007_v53 = vunpack.i.l.bf16 %v6006_v51 }
 0x4d0   : > { %5812 = vmatprep.subr.bf16.mxu0 %v6158_v24 }
 0x4d1   : > { %v6037_v46 = vpop.eup %6036  ;;  %v5819_v54 = vpack.c.bf16 %v6008_v52, %v6007_v53 }
 0x4d2   : > { %v1357_v48 = vmul.f32 %v6037_v46, %v6033_v26  ;;  %v1584_v61 = vpop.permute.xlu1 %1583  ;;  %v5836_v46 = vpack.c.bf16 %v937_v45, %v936_v44 }
 0x4d4   : > { %5456 = vmatmul.mubr.msk.f32.vlgmr.msra.gmra.mrb[6].mxu0 %vm1093_vm2, %v1357_v48 }
 0x4d5   : > { %5814 = vmatpush3.bf16.msra.mxu0 %v5813_v47  ;;  %5462 = vmatprep.mubr.msk.f32.mxu0 %vm6159_vm1, %v6160_v34 }
 0x4d6   : > { %5818 = vmatprep.subr.bf16.mxu0 %v6158_v24  ;;  %v1831_v62 = vpop.permute.xlu1 %1830 }
 0x530   : > { %v1260_v49 = vpop.f32.mrb[4].mxu0 }
 0x531   : > { %v5443_v50 = vpop.f32.mrb[5].mxu0  ;;  %5470 = vmatmul.mubr.msk.f32.vlgmr.msra.gmra.mrb[4].mxu1 %vm1093_vm2, %v1260_v49 }
 0x532   : > { %5483 = vmatprep.mubr.msk.f32.mxu1 %vm6159_vm1, %v6160_v34 }
 0x5a7   : > { %v1433_v55 = vpop.f32.mrb[6].mxu0 }
 0x5a8   : > { %v5457_v57 = vpop.f32.mrb[7].mxu0  ;;  %5463 = vmatmul.mubr.msk.f32.vlgmr.msra.gmra.mrb[8].mxu0 %vm1093_vm2, %v1433_v55 }
 0x5a9   : > { %5821 = vmatpush3.bf16.xpose.msk.msra.mxu0 %vm6432_vm3, %v5819_v54  ;;  %5476 = vmatprep.mubr.msk.f32.mxu0 %vm6159_vm1, %v6160_v34 }
 0x5aa   : > { %5828 = vmatprep.subr.bf16.mxu0 %v6158_v24 }
 0x5b0   : > { %5477 = vmatmul.mubr.msk.f32.vlgmr.msra.gmra.mrb[10].mxu0 %vm1093_vm2, %v1584_v61 }
 0x5b1   : > { %5831 = vmatpush3.bf16.xpose.msk.msra.mxu0 %vm6432_vm3, %v5829_v60  ;;  %5497 = vmatprep.mubr.msk.f32.mxu0 %vm6159_vm1, %v6160_v34 }
 0x5b2   : > { %5838 = vmatprep.subr.bf16.mxu0 %v6158_v24 }
 0x5b8   : > { %5498 = vmatmul.mubr.msk.f32.vlgmr.msra.gmra.mrb[12].mxu0 %vm1093_vm2, %v1831_v62 }
 0x5b9   : > { %5522 = vmatprep.mubr.msk.f32.mxu0 %vm6159_vm1, %v6160_v34 }
 0x604   : > { %v1579_v63 = vpop.f32.mrb[4].mxu1 }
 0x605   : > { %v5471_v3 = vpop.f32.mrb[5].mxu1 }
 0x606   : > { %v2114_v3 = vld [vmem:[%s7188_s9] sm:$0xff]  ;;  %s7190_s9 = sld [smem:[#allocation21_spill]] }
 0x67b   : > { %v1506_v4 = vpop.f32.mrb[8].mxu0 }
 0x67c   : > { %v6506_v5 = vadd.f32 %v1579_v63, %v1506_v4  ;;  %v5464_v6 = vpop.f32.mrb[9].mxu0 }
 0x67d   : > { %v2117_v6 = vld [vmem:[%s7189_s1 + $0x18] sm:$0xff] }
 0x683   : > { %v1661_v7 = vpop.f32.mrb[10].mxu0 }
 0x684   : > { %v1665_v1 = vmul.f32 0.25, %v1661_v7  ;;  %v5478_v8 = vpop.f32.mrb[11].mxu0 }
 0x686   : > { %v1666_v9 = vsel %vm1093_vm2, %v1665_v1, -inf }
 0x687   : > { %1667 = vmax.xlane.f32.xlu0 %v1666_v9 }
 0x68b   : > { %v1908_v10 = vpop.f32.mrb[12].mxu0 }
 0x68c   : > { %v5499_v11 = vpop.f32.mrb[13].mxu0  ;;  %v1912_v20 = vmul.f32 0.25, %v1908_v10 }
 0x68d   : > { %v5143_v11 = vld [vmem:[%s7190_s9] ss:$0 sm:$0xff]  ;;  %s7200_s9 = smov 32  }
 0x68e   : > { %v1913_v22 = vsel %vm1093_vm2, %v1912_v20, -inf }
 0x69d   : > { %6015 = vrot.lane.b32.xlu0 %v6436_v2, %s7137_s7  ;;  %s7202_s7 = smov 16  }
 0x714   : > { %v1668_v12 = vpop.xlane.xlu0 %1667 }
 0x715   : > { %v1669_v13 = vsub.f32 %v1665_v1, %v1668_v12 }
 0x717   : > { %v1670_v14 = vmul.f32 1.442695, %v1669_v13  ;;  %v5144_v13 = vld [vmem:[%s7191_s4] ss:$0 sm:$0xff] }
 0x718   : > { %v6016_v15 = vpop.permute.xlu0 %6015 }
 0x719   : > { %6038 = vpow2.f32 %v1670_v14  ;;  %v6018_v16 = vunpack.i.h.bf16 %v6016_v15  ;;  %v6017_v17 = vunpack.i.l.bf16 %v6016_v15 }
 0x71b   : > { %v5823_v18 = vpack.c.bf16 %v6018_v16, %v6017_v17  ;;  %v2119_v16 = vld [vmem:[%s7192_s14] sm:$0xff]  ;;  %v2120_v17 = vld [vmem:[%s7192_s14 + $0x8] sm:$0xff] }
 0x71d   : > { %5824 = vmatpush3.bf16.msra.mxu1 %v5823_v18  ;;  %v5845_v18 = vpack.c.bf16 %v2120_v17, %v2119_v16 }
 0x71e   : > { %5825 = vmatprep.subr.bf16.mxu1 %v6158_v24 }
 0x723   : > { %v6039_v19 = vpop.eup %6038 }
 0x724   : > { %v1672_v21 = vsel %vm1093_vm2, %v6039_v19, 0.0 }
 0x725   : > { %1673 = vadd.xlane.f32.xlu1 %v1672_v21 }
 0x729   : > { %1914 = vmax.xlane.f32.xlu1 %v1913_v22  ;;  %v2123_v22 = vld [vmem:[%s7192_s14 + $0x20] sm:$0xff] }
 0x7b2   : > { %v1674_v23 = vpop.xlane.xlu1 %1673 }
 0x7b3   : > { %6040 = vrcp.f32 %v1674_v23  ;;  %v2124_v23 = vld [vmem:[%s7192_s14 + $0x28] sm:$0xff] }
 0x7b6   : > { %v1915_v25 = vpop.xlane.xlu1 %1914 }
 0x7b7   : > { %v1916_v26 = vsub.f32 %v1912_v20, %v1915_v25  ;;  %v2122_v20 = vld [vmem:[%s7192_s14 + $0x18] sm:$0xff]  ;;  %v5851_v25 = vpack.c.bf16 %v2124_v23, %v2123_v22 }
 0x7b9   : > { %v1917_v27 = vmul.f32 1.442695, %v1916_v26  ;;  %v2125_v26 = vld [vmem:[%s7192_s14 + $0x30] sm:$0xff] }
 0x7bb   : > { %6042 = vpow2.f32 %v1917_v27  ;;  %v2126_v27 = vld [vmem:[%s7192_s14 + $0x38] sm:$0xff] }
 0x7bd   : > { %v6041_v28 = vpop.eup %6040 }
 0x7be   : > { %v1676_v29 = vmul.f32 %v6041_v28, %v6039_v19  ;;  %v2121_v19 = vld [vmem:[%s7192_s14 + $0x10] sm:$0xff]  ;;  %v5854_v28 = vpack.c.bf16 %v2126_v27, %v2125_v26 }
 0x7bf   : > { %v5848_v21 = vpack.c.bf16 %v2122_v20, %v2121_v19 }
 0x7c0   : > { %5484 = vmatmul.mubr.msk.f32.vlgmr.msra.gmra.mrb[6].mxu1 %vm1093_vm2, %v1676_v29  ;;  %v5145_v29 = vld [vmem:[%s7193_s13] ss:$0 sm:$0xff] }
 0x7c1   : > { %5490 = vmatprep.mubr.msk.f32.mxu1 %vm6159_vm1, %v6160_v34  ;;  %5827 = vmatpush3.bf16.msra.mxu1 %v5826_v35 }
 0x7c2   : > { %5832 = vmatprep.subr.bf16.mxu1 %v6158_v24 }
 0x7c5   : > { %v6043_v30 = vpop.eup %6042 }
 0x7c6   : > { %v1919_v31 = vsel %vm1093_vm2, %v6043_v30, 0.0 }
 0x7c7   : > { %1920 = vadd.xlane.f32.xlu1 %v1919_v31 }
 0x7d8   : > { %6020 = vrot.lane.b32.xlu1 %v6436_v2, %s7133_s12  ;;  %s7187_s12 = sld [smem:[#allocation20_spill]] }
 0x7de   : > { %v5142_v52 = vld [vmem:[%s7187_s12] ss:$0 sm:$0xff] }
 0x854   : > { %v1921_v36 = vpop.xlane.xlu1 %1920 }
 0x855   : > { %6044 = vrcp.f32 %v1921_v36 }
 0x858   : > { %v6021_v37 = vpop.permute.xlu1 %6020 }
 0x859   : > { %v6023_v38 = vunpack.i.h.bf16 %v6021_v37  ;;  %v6022_v39 = vunpack.i.l.bf16 %v6021_v37 }
 0x85b   : > { %v5833_v41 = vpack.c.bf16 %v6023_v38, %v6022_v39 }
 0x85f   : > { %v6045_v40 = vpop.eup %6044 }
 0x860   : > { %v1923_v43 = vmul.f32 %v6045_v40, %v6043_v30 }
 0x893   : > { %v1752_v2 = vpop.f32.mrb[6].mxu1 }
 0x894   : > { %v5485_v42 = vpop.f32.mrb[7].mxu1  ;;  %5491 = vmatmul.mubr.msk.f32.vlgmr.msra.gmra.mrb[8].mxu1 %vm1093_vm2, %v1752_v2 }
 0x895   : > { %5834 = vmatpush3.bf16.msra.mxu1 %v5833_v41  ;;  %5504 = vmatprep.mubr.msk.f32.mxu1 %vm6159_vm1, %v6160_v34  ;;  %v5147_v42 = vld [vmem:[%s7194_s15] ss:$0 sm:$0xff]  ;;  %s836_s15 = sand.u32 1, %s6148_s5  }
 0x896   : > { %5835 = vmatprep.subr.bf16.mxu1 %v6158_v24  ;;  %s5036_s13 = scalar_lea.sflag [#allocation3], %s836_s15 }
 0x898   : > { %5505 = vmatmul.mubr.msk.f32.vlgmr.msra.gmra.mrb[10].mxu1 %vm1093_vm2, %v1923_v43 }
 0x899   : > { %5511 = vmatprep.mubr.msk.f32.mxu1 %vm6159_vm1, %v6160_v34  ;;  %5837 = vmatpush3.bf16.msra.mxu1 %v5836_v46 }
 0x89a   : > { %5844 = vmatprep.subr.bf16.mxu1 %v6158_v24 }
 0x967   : > { %v1825_v47 = vpop.f32.mrb[8].mxu1 }
 0x968   : > { %v1829_v48 = vadd.f32 %v1825_v47, %v6506_v5  ;;  %v5492_v49 = vpop.f32.mrb[9].mxu1  ;;  %v2116_v5 = vld [vmem:[%s7189_s1 + $0x10] sm:$0xff] }
 0x969   : > { %v5842_v7 = vpack.c.bf16 %v2117_v6, %v2116_v5  ;;  %v5150_v5 = vld [vmem:[%s7109_s17] ss:$0 sm:$0xff] }
 0x96b   : > { %v1999_v50 = vpop.f32.mrb[10].mxu1 }
 0x96c   : > { %v5506_v51 = vpop.f32.mrb[11].mxu1  ;;  %5512 = vmatmul.mubr.msk.f32.vlgmr.msra.gmra.mrb[12].mxu1 %vm1093_vm2, %v1999_v50 }
 0x96d   : > { %5541 = vmatprep.mubr.msk.f32.mxu1 %vm6159_vm1, %v6160_v34  ;;  %5846 = vmatpush3.bf16.msra.mxu1 %v5845_v18 }
 0x96e   : > { %5847 = vmatprep.subr.bf16.mxu1 %v6158_v24 }
 0x971   : > { %5849 = vmatpush3.bf16.msra.mxu1 %v5848_v21 }
 0x972   : > { %5850 = vmatprep.subr.bf16.mxu1 %v6158_v24 }
 0x975   : > { %5852 = vmatpush3.bf16.msra.mxu1 %v5851_v25 }
 0x976   : > { %5853 = vmatprep.subr.bf16.mxu1 %v6158_v24 }
 0x979   : > { %5855 = vmatpush3.bf16.msra.mxu1 %v5854_v28 }
 0x97a   : > { %5566 = vmatprep.subr.mxu1 %v6160_v34 }
 0xa3f   : > { %v2072_v53 = vpop.f32.mrb[12].mxu1 }
 0xa40   : > { %v2076_v54 = vadd.f32 %v2072_v53, %v1829_v48  ;;  %v5513_v55 = vpop.f32.mrb[13].mxu1  ;;  %v2326_v53 = vld [vmem:[%s7195_s18] sm:$0xff] }
 0xa42   : > { %v2083_v56 = vadd.f32 %v5142_v52, %v2076_v54  ;;  %v2327_v54 = vld [vmem:[%s7195_s18 + $0x8] sm:$0xff] }
 0xa43   : > { %v5857_v55 = vpack.c.bf16 %v2327_v54, %v2326_v53 }
 0xa44   : > { %v6549_v57 = vadd.f32 %v2083_v56, %v6366_v0  ;;  %v2115_v0 = vld [vmem:[%s7189_s1 + $0x8] sm:$0xff]  ;;  %v2328_v56 = vld [vmem:[%s7195_s18 + $0x10] sm:$0xff]  ;;  %s5112_s1 = sshll.u32 %s836_s15, 3 }
 0xa45   : > { %v5839_v4 = vpack.c.bf16 %v2115_v0, %v2114_v3  ;;  %v2330_v0 = vld [vmem:[%s7111_s19] sm:$0xff] }
 0xa46   : > { %v2087_v58 = vsel %vm849_vm0, %v6549_v57, 0.0 }
 0xa47   : > { %2088 = vadd.xlane.f32.xlu0 %v2087_v58  ;;  %5840 = vmatpush3.bf16.msra.mxu0 %v5839_v4  ;;  %v2331_v4 = vld [vmem:[%s7111_s19 + $0x8] sm:$0xff] }
 0xa48   : > { %5841 = vmatprep.subr.bf16.mxu0 %v6158_v24 }
 0xa4b   : > { %5843 = vmatpush3.bf16.msra.mxu0 %v5842_v7  ;;  %v5863_v7 = vpack.c.bf16 %v2331_v4, %v2330_v0 }
 0xa4c   : > { %5856 = vmatprep.subr.bf16.mxu0 %v6158_v24 }
 0xad4   : > { %v2089_v59 = vpop.xlane.xlu0 %2088 }
 0xad5   : > { %v2090_v60 = vmul.f32 0.03125, %v2089_v59 }
 0xad7   : > { %v2091_v61 = vsub.f32 %v6549_v57, %v2090_v60 }
 0xad9   : > { %v2092_v62 = vmul.f32 %v2091_v61, %v2091_v61 }
 0xadb   : > { %v2093_v63 = vsel %vm849_vm0, %v2092_v62, 0.0 }
 0xadc   : > { %2094 = vadd.xlane.f32.xlu1 %v2093_v63  ;;  %v5149_v63 = vld [vmem:[%s7108_s16] ss:$0 sm:$0xff] }
 0xb69   : > { %v2095_v1 = vpop.xlane.xlu1 %2094 }
 0xb6a   : > { %v2096_v8 = vmul.f32 0.03125, %v2095_v1 }
 0xb6c   : > { %v2097_v9 = vadd.f32 1e-05, %v2096_v8  ;;  %v2332_v8 = vld [vmem:[%s7111_s19 + $0x10] sm:$0xff] }
 0xb6e   : > { %6046 = vrsqrt.f32 %v2097_v9  ;;  %v2333_v9 = vld [vmem:[%s7111_s19 + $0x18] sm:$0xff] }
 0xb78   : > { %v6047_v10 = vpop.eup %6046 }
 0xb79   : > { %v2099_v12 = vmul.f32 %v6047_v10, %v2091_v61  ;;  %v5866_v10 = vpack.c.bf16 %v2333_v9, %v2332_v8  ;;  %v2338_v8 = vld [vmem:[%s7112_s20 + $0x20] sm:$0xff]  ;;  %v2339_v9 = vld [vmem:[%s7112_s20 + $0x28] sm:$0xff] }
 0xb7b   : > { %v2106_v14 = vmul.f32 %v5143_v11, %v2099_v12 }
 0xb7d   : > { %v2113_v15 = vadd.f32 %v5144_v13, %v2106_v14 }
 0xb7f   : > { %5523 = vmatmul.mubr.msk.f32.vlgmr.msra.gmra.mrb[14].mxu0 %vm849_vm0, %v2113_v15 }
 0xb80   : > { %5552 = vmatprep.mubr.msk.f32.mxu0 %vm6159_vm1, %v6160_v34  ;;  %5858 = vmatpush3.bf16.msra.mxu0 %v5857_v55 }
 0xb81   : > { %5859 = vmatprep.subr.bf16.mxu0 %v6158_v24 }
 0xc52   : > { %v2203_v30 = vpop.f32.mrb[14].mxu0 }
 0xc53   : > { %v2204_v31 = vadd.f32 %v5145_v29, %v2203_v30  ;;  %v5524_v32 = vpop.f32.mrb[15].mxu0 }
 0xc55   : > { %v2208_v33 = vmul.f32 0.044715, %v2204_v31  ;;  %v2207_v40 = vmul.f32 0.5, %v2204_v31 }
 0xc57   : > { %v2209_v35 = vmul.f32 %v2208_v33, %v2204_v31 }
 0xc59   : > { %v2210_v36 = vmul.f32 %v2209_v35, %v2204_v31 }
 0xc5b   : > { %v2211_v37 = vadd.f32 %v2210_v36, %v2204_v31 }
 0xc5d   : > { %v2212_v38 = vmul.f32 0.7978846, %v2211_v37 }
 0xc5f   : > { %6048 = vtanh.f32 %v2212_v38 }
 0xc69   : > { %v6049_v39 = vpop.eup %6048 }
 0xc6a   : > { %v2214_v41 = vadd.f32 1.0, %v6049_v39 }
 0xc6c   : > { %v2215_v2 = vmul.f32 %v2214_v41, %v2207_v40 }
 0xc6e   : > { %5542 = vmatmul.mubr.msk.f32.vlgmr.msra.gmra.mrb[14].mxu1 %vm2222_vm4, %v2215_v2 }
 0xc6f   : > { %5568 = vmatprep.mubr.msk.f32.mxu1 %vm6159_vm1, %v6160_v34 }
 0xd41   : > { %v2292_v43 = vpop.f32.mrb[14].mxu1 }
 0xd42   : > { %v2293_v44 = vadd.f32 %v5147_v42, %v2292_v43  ;;  %v5543_v45 = vpop.f32.mrb[15].mxu1  ;;  %v2334_v42 = vld [vmem:[%s7112_s20] sm:$0xff]  ;;  %v2335_v43 = vld [vmem:[%s7112_s20 + $0x8] sm:$0xff] }
 0xd43   : > { %v5872_v45 = vpack.c.bf16 %v2335_v43, %v2334_v42 }
 0xd44   : > { %v2296_v46 = vadd.f32 %v2293_v44, %v6549_v57  ;;  %v2329_v57 = vld [vmem:[%s7195_s18 + $0x18] sm:$0xff] }
 0xd45   : > { %v5860_v58 = vpack.c.bf16 %v2329_v57, %v2328_v56 }
 0xd46   : > { %v2299_v47 = vsel %vm849_vm0, %v2296_v46, 0.0 }
 0xd47   : > { %2300 = vadd.xlane.f32.xlu0 %v2299_v47  ;;  %5861 = vmatpush3.bf16.msra.mxu0 %v5860_v58  ;;  %v2336_v47 = vld [vmem:[%s7112_s20 + $0x10] sm:$0xff] }
 0xd48   : > { %5862 = vmatprep.subr.bf16.mxu0 %v6158_v24 }
 0xdd4   : > { %v2301_v48 = vpop.xlane.xlu0 %2300 }
 0xdd5   : > { %v2302_v49 = vmul.f32 0.03125, %v2301_v48  ;;  %v2337_v48 = vld [vmem:[%s7112_s20 + $0x18] sm:$0xff] }
 0xdd7   : > { %v2303_v50 = vsub.f32 %v2296_v46, %v2302_v49  ;;  %v5869_v49 = vpack.c.bf16 %v2337_v48, %v2336_v47 }
 0xdd9   : > { %v2304_v51 = vmul.f32 %v2303_v50, %v2303_v50 }
 0xddb   : > { %v2305_v52 = vsel %vm849_vm0, %v2304_v51, 0.0 }
 0xddc   : > { %2306 = vadd.xlane.f32.xlu0 %v2305_v52 }
 0xe69   : > { %v2307_v59 = vpop.xlane.xlu0 %2306 }
 0xe6a   : > { %v2308_v60 = vmul.f32 0.03125, %v2307_v59 }
 0xe6c   : > { %v2309_v61 = vadd.f32 1e-05, %v2308_v60 }
 0xe6e   : > { %6050 = vrsqrt.f32 %v2309_v61 }
 0xe78   : > { %v6051_v62 = vpop.eup %6050 }
 0xe79   : > { %v2311_v3 = vmul.f32 %v6051_v62, %v2303_v50 }
 0xe7b   : > { %v2318_v6 = vmul.f32 %v5149_v63, %v2311_v3 }
 0xe7d   : > { %v2325_v1 = vadd.f32 %v5150_v5, %v2318_v6 }
 0xe7f   : > { %5553 = vmatmul.mubr.msk.f32.vlgmr.msra.gmra.mrb[16].mxu0 %vm849_vm0, %v2325_v1 }
 0xe80   : > { %5864 = vmatpush3.bf16.msra.mxu0 %v5863_v7  ;;  %5563 = vmatprep.mubr.msk.f32.mxu0 %vm6159_vm1, %v6160_v34 }
 0xe81   : > { %5865 = vmatprep.subr.bf16.mxu0 %v6158_v24 }
 0xe84   : > { %5867 = vmatpush3.bf16.msra.mxu0 %v5866_v10  ;;  %v5875_v10 = vpack.c.bf16 %v2339_v9, %v2338_v8  ;;  %v3488_v9 = vld [vmem:[%s7118_s26 + $0x20] sm:$0xff] }
 0xe85   : > { %5576 = vmatprep.subr.mxu0 %v6160_v34 }
 0xe87   : > { %5564 = vmatmul.mubr.msk.f32.vlgmr.msra.gmra.mrb[18].mxu0 %vm849_vm0, %v2325_v1 }
 0xe88   : > { %5578 = vmatprep.mubr.msk.f32.mxu0 %vm6159_vm1, %v6160_v34 }
 0xf52   : > { %v6658_v11 = vpop.f32.mrb[16].mxu0 }
 0xf53   : > { %2651 = vrot.lane.b32.xlu1 %v6658_v11, %s7196_s6  ;;  %v5554_v12 = vpop.f32.mrb[17].mxu0 }
 0xf5a   : > { %v6662_v13 = vpop.f32.mrb[18].mxu0 }
 0xf5b   : > { %2653 = vrot.lane.b32.xlu0 %v6662_v13, %s7196_s6  ;;  %v5565_v14 = vpop.f32.mrb[19].mxu0  ;;  %5567 = vmatpush3.xpose.msk.msra.mxu1 %vm1093_vm2, %v6662_v13 }
 0xf5c   : > { %5571 = vmatprep.subr.mxu1 %v6160_v34 }
 0xf5e   : > { %5569 = vmatmul.mubr.msk.f32.vlgmr.msra.gmra.mrb[16].mxu1 %vm1093_vm2, %v6658_v11 }
 0xf5f   : > { %5573 = vmatprep.mubr.msk.f32.mxu1 %vm6159_vm1, %v6160_v34 }
 0xfc5   : > { %v2652_v16 = vpop.permute.xlu1 %2651 }
 0xfcd   : > { %v2654_v15 = vpop.permute.xlu0 %2653 }
 0xfce   : > { %5577 = vmatpush3.xpose.msk.msra.mxu0 %vm1093_vm2, %v2654_v15 }
 0xfcf   : > { %5868 = vmatprep.subr.bf16.mxu0 %v6158_v24 }
 0xfd1   : > { %5579 = vmatmul.mubr.msk.f32.vlgmr.msra.gmra.mrb[20].mxu0 %vm1093_vm2, %v2652_v16 }
 0xfd2   : > { %5590 = vmatprep.mubr.msk.f32.mxu0 %vm6159_vm1, %v6160_v34  ;;  %5870 = vmatpush3.bf16.msra.mxu0 %v5869_v49 }
 0xfd3   : > { %5600 = vmatprep.subr.mxu0 %v6160_v34 }
0x1031   : > { %v2558_v17 = vpop.f32.mrb[16].mxu1 }
0x1032   : > { %v2562_v18 = vmul.f32 0.25, %v2558_v17  ;;  %v5570_v19 = vpop.f32.mrb[17].mxu1 }
0x1034   : > { %v2564_v20 = vsel %vm2563_vm5, %v2562_v18, -inf }
0x1035   : > { %2565 = vmax.xlane.f32.xlu0 %v2564_v20 }
0x10a4   : > { %v2725_v21 = vpop.f32.mrb[20].mxu0 }
0x10a5   : > { %v2729_v22 = vmul.f32 0.25, %v2725_v21  ;;  %v5580_v23 = vpop.f32.mrb[21].mxu0 }
0x10a7   : > { %v2730_v25 = vsel %vm2563_vm5, %v2729_v22, -inf }
0x10a8   : > { %2731 = vmax.xlane.f32.xlu1 %v2730_v25 }
0x10b9   : > { %2741 = vrot.lane.b32.xlu1 %v6662_v13, %s7197_s29 }
0x10bd   : > { %2965 = vrot.lane.b32.xlu1 %v6662_v13, %s7198_s8 }
0x10c1   : > { %2963 = vrot.lane.b32.xlu1 %v6658_v11, %s7198_s8 }
0x10c2   : > { %v2566_v26 = vpop.xlane.xlu0 %2565 }
0x10c3   : > { %v2567_v27 = vsub.f32 %v2562_v18, %v2566_v26 }
0x10c5   : > { %v2568_v28 = vmul.f32 1.442695, %v2567_v27 }
0x10c7   : > { %6052 = vpow2.f32 %v2568_v28 }
0x10d1   : > { %v6053_v29 = vpop.eup %6052 }
0x10d2   : > { %v2570_v30 = vsel %vm2563_vm5, %v6053_v29, 0.0 }
0x10d3   : > { %2571 = vadd.xlane.f32.xlu0 %v2570_v30  ;;  %v2341_v30 = vld [vmem:[%s7112_s20 + $0x38] sm:$0xff] }
0x1135   : > { %v2732_v31 = vpop.xlane.xlu1 %2731 }
0x1136   : > { %v2733_v32 = vsub.f32 %v2729_v22, %v2732_v31 }
0x1138   : > { %v2734_v33 = vmul.f32 1.442695, %v2733_v32 }
0x1139   : > { %v2742_v2 = vpop.permute.xlu1 %2741 }
0x113a   : > { %6054 = vpow2.f32 %v2734_v33 }
0x113d   : > { %v2966_v52 = vpop.permute.xlu1 %2965 }
0x1141   : > { %v2964_v55 = vpop.permute.xlu1 %2963 }
0x1144   : > { %v6055_v35 = vpop.eup %6054 }
0x1145   : > { %v2736_v36 = vsel %vm2563_vm5, %v6055_v35, 0.0 }
0x1146   : > { %2737 = vadd.xlane.f32.xlu0 %v2736_v36 }
0x115c   : > { %2575 = vrot.lane.b32.xlu0 %v6662_v13, %s7199_s30 }
0x1160   : > { %v2572_v37 = vpop.xlane.xlu0 %2571 }
0x1161   : > { %6056 = vrcp.f32 %v2572_v37 }
0x116b   : > { %v6057_v39 = vpop.eup %6056 }
0x116c   : > { %v2574_v40 = vmul.f32 %v6057_v39, %v6053_v29  ;;  %v2340_v29 = vld [vmem:[%s7112_s20 + $0x30] sm:$0xff] }
0x116d   : > { %v5878_v31 = vpack.c.bf16 %v2341_v30, %v2340_v29  ;;  %v5174_v30 = vld [vmem:[%s7119_s27] ss:$0 sm:$0xff] }
0x11d3   : > { %v2738_v38 = vpop.xlane.xlu0 %2737 }
0x11d4   : > { %6058 = vrcp.f32 %v2738_v38 }
0x11d7   : > { %v2576_v41 = vpop.permute.xlu0 %2575 }
0x11d8   : > { %5572 = vmatpush3.msra.mxu1 %v2576_v41 }
0x11d9   : > { %5574 = vmatmul.mubr.msk.f32.vlgmr.msra.gmra.mrb[18].mxu1 %vm2563_vm5, %v2574_v40  ;;  %5581 = vmatprep.subr.mxu1 %v6160_v34 }
0x11da   : > { %5582 = vmatpush3.msra.mxu1 %v2742_v2  ;;  %5583 = vmatprep.mubr.msk.f32.mxu1 %vm6159_vm1, %v6160_v34  ;;  %v5169_v2 = vld [vmem:[%s7113_s21] ss:$0 sm:$0xff] }
0x11db   : > { %5871 = vmatprep.subr.bf16.mxu1 %v6158_v24 }
0x11de   : > { %v6059_v44 = vpop.eup %6058 }
0x11df   : > { %v2740_v46 = vmul.f32 %v6059_v44, %v6055_v35 }
0x11e1   : > { %5584 = vmatmul.mubr.msk.f32.vlgmr.msra.gmra.mrb[20].mxu1 %vm2563_vm5, %v2740_v46 }
0x11e2   : > { %5873 = vmatpush3.bf16.msra.mxu1 %v5872_v45  ;;  %5597 = vmatprep.mubr.msk.f32.mxu1 %vm6159_vm1, %v6160_v34 }
0x11e3   : > { %5605 = vmatprep.subr.mxu1 %v6160_v34 }
0x12ac   : > { %v2647_v50 = vpop.f32.mrb[18].mxu1 }
0x12ad   : > { %v5575_v51 = vpop.f32.mrb[19].mxu1  ;;  %5598 = vmatmul.mubr.msk.f32.vlgmr.msra.gmra.mrb[22].mxu1 %vm1093_vm2, %v2647_v50 }
0x12ae   : > { %5607 = vmatprep.mubr.msk.f32.mxu1 %vm6159_vm1, %v6160_v34  ;;  %v3479_v51 = vld [vmem:[%s7116_s24] sm:$0xff] }
0x12b4   : > { %v2813_v53 = vpop.f32.mrb[20].mxu1 }
0x12b5   : > { %v5585_v54 = vpop.f32.mrb[21].mxu1  ;;  %5591 = vmatmul.mubr.msk.f32.vlgmr.msra.gmra.mrb[22].mxu0 %vm1093_vm2, %v2813_v53 }
0x12b6   : > { %5601 = vmatpush3.xpose.msk.msra.mxu0 %vm1093_vm2, %v2966_v52  ;;  %5602 = vmatprep.mubr.msk.f32.mxu0 %vm6159_vm1, %v6160_v34  ;;  %v3480_v52 = vld [vmem:[%s7116_s24 + $0x8] sm:$0xff]  ;;  %v3481_v54 = vld [vmem:[%s7116_s24 + $0x10] sm:$0xff] }
0x12b7   : > { %5874 = vmatprep.subr.bf16.mxu0 %v6158_v24  ;;  %v5881_v53 = vpack.c.bf16 %v3480_v52, %v3479_v51  ;;  %v5184_v51 = vld [vmem:[%s7111_s19 + $0x20] sm:$0xff]  ;;  %v5185_v52 = vld [vmem:[%s7111_s19 + $0x28] sm:$0xff] }
0x12b9   : > { %5603 = vmatmul.mubr.msk.f32.vlgmr.msra.gmra.mrb[24].mxu0 %vm1093_vm2, %v2964_v55  ;;  %v3482_v55 = vld [vmem:[%s7116_s24 + $0x18] sm:$0xff] }
0x12ba   : > { %5614 = vmatprep.mubr.msk.f32.mxu0 %vm6159_vm1, %v6160_v34  ;;  %5876 = vmatpush3.bf16.msra.mxu0 %v5875_v10  ;;  %v3489_v10 = vld [vmem:[%s7118_s26 + $0x28] sm:$0xff] }
0x12bb   : > { %5622 = vmatprep.subr.mxu0 %v6160_v34 }
0x1380   : > { %v2959_v56 = vpop.f32.mrb[22].mxu1 }
0x1381   : > { %v5599_v57 = vpop.f32.mrb[23].mxu1 }
0x1388   : > { %v2886_v58 = vpop.f32.mrb[22].mxu0 }
0x1389   : > { %v2960_v59 = vadd.f32 %v2959_v56, %v2886_v58  ;;  %v5592_v60 = vpop.f32.mrb[23].mxu0  ;;  %v5884_v56 = vpack.c.bf16 %v3482_v55, %v3481_v54  ;;  %v5905_v55 = vpack.c.bf16 %v5185_v52, %v5184_v51 }
0x138c   : > { %v3037_v61 = vpop.f32.mrb[24].mxu0 }
0x138d   : > { %v3041_v62 = vmul.f32 0.25, %v3037_v61  ;;  %v5604_v63 = vpop.f32.mrb[25].mxu0  ;;  %v5170_v61 = vld [vmem:[%s7114_s22] ss:$0 sm:$0xff] }
0x138e   : > { %v5171_v63 = vld [vmem:[%s7115_s23] ss:$0 sm:$0xff] }
0x138f   : > { %v3042_v3 = vsel %vm2563_vm5, %v3041_v62, -inf }
0x1390   : > { %3043 = vmax.xlane.f32.xlu0 %v3042_v3 }
0x13a6   : > { %3053 = vrot.lane.b32.xlu0 %v6662_v13, %s7200_s9 }
0x13aa   : > { %3203 = vrot.lane.b32.xlu0 %v6658_v11, %s7201_s0 }
0x141d   : > { %v3044_v0 = vpop.xlane.xlu0 %3043 }
0x141e   : > { %v3045_v4 = vsub.f32 %v3041_v62, %v3044_v0 }
0x1420   : > { %v3046_v5 = vmul.f32 1.442695, %v3045_v4  ;;  %v3484_v4 = vld [vmem:[%s7118_s26] sm:$0xff] }
0x1421   : > { %v3054_v6 = vpop.permute.xlu0 %3053 }
0x1422   : > { %6060 = vpow2.f32 %v3046_v5  ;;  %5606 = vmatpush3.msra.mxu1 %v3054_v6  ;;  %v3485_v5 = vld [vmem:[%s7118_s26 + $0x8] sm:$0xff] }
0x1423   : > { %5617 = vmatprep.subr.mxu1 %v6160_v34  ;;  %v5887_v6 = vpack.c.bf16 %v3485_v5, %v3484_v4 }
0x1425   : > { %v3204_v16 = vpop.permute.xlu0 %3203 }
0x142c   : > { %v6061_v7 = vpop.eup %6060 }
0x142d   : > { %v3048_v1 = vsel %vm2563_vm5, %v6061_v7, 0.0 }
0x142e   : > { %3049 = vadd.xlane.f32.xlu1 %v3048_v1  ;;  %v3487_v1 = vld [vmem:[%s7118_s26 + $0x18] sm:$0xff] }
0x143f   : > { %3205 = vrot.lane.b32.xlu1 %v6662_v13, %s7201_s0 }
0x14bb   : > { %v3050_v11 = vpop.xlane.xlu1 %3049 }
0x14bc   : > { %6062 = vrcp.f32 %v3050_v11  ;;  %v5893_v11 = vpack.c.bf16 %v3489_v10, %v3488_v9 }
0x14bf   : > { %v3206_v15 = vpop.permute.xlu1 %3205 }
0x14c6   : > { %v6063_v12 = vpop.eup %6062 }
0x14c7   : > { %v3052_v14 = vmul.f32 %v6063_v12, %v6061_v7  ;;  %v3486_v7 = vld [vmem:[%s7118_s26 + $0x10] sm:$0xff] }
0x14c8   : > { %v5890_v8 = vpack.c.bf16 %v3487_v1, %v3486_v7  ;;  %v3490_v12 = vld [vmem:[%s7118_s26 + $0x30] sm:$0xff] }
0x14c9   : > { %5608 = vmatmul.mubr.msk.f32.vlgmr.msra.gmra.mrb[24].mxu1 %vm2563_vm5, %v3052_v14  ;;  %v3491_v14 = vld [vmem:[%s7118_s26 + $0x38] sm:$0xff] }
0x14ca   : > { %5618 = vmatpush3.xpose.msk.msra.mxu1 %vm1093_vm2, %v3206_v15  ;;  %5619 = vmatprep.mubr.msk.f32.mxu1 %vm6159_vm1, %v6160_v34  ;;  %v5896_v15 = vpack.c.bf16 %v3491_v14, %v3490_v12 }
0x14cb   : > { %5877 = vmatprep.subr.bf16.mxu1 %v6158_v24 }
0x14cd   : > { %5620 = vmatmul.mubr.msk.f32.vlgmr.msra.gmra.mrb[26].mxu1 %vm1093_vm2, %v3204_v16  ;;  %v5172_v16 = vld [vmem:[%s7117_s25] ss:$0 sm:$0xff] }
0x14ce   : > { %5631 = vmatprep.mubr.msk.f32.mxu1 %vm6159_vm1, %v6160_v34  ;;  %5879 = vmatpush3.bf16.msra.mxu1 %v5878_v31 }
0x14cf   : > { %5886 = vmatprep.subr.bf16.mxu1 %v6158_v24 }
0x159c   : > { %v3125_v17 = vpop.f32.mrb[24].mxu1 }
0x159d   : > { %v5609_v18 = vpop.f32.mrb[25].mxu1  ;;  %5615 = vmatmul.mubr.msk.f32.vlgmr.msra.gmra.mrb[26].mxu0 %vm1093_vm2, %v3125_v17 }
0x159e   : > { %5624 = vmatprep.mubr.msk.f32.mxu0 %vm6159_vm1, %v6160_v34 }
0x15a0   : > { %v3277_v19 = vpop.f32.mrb[26].mxu1 }
0x15a1   : > { %v3281_v20 = vmul.f32 0.25, %v3277_v19  ;;  %v5621_v21 = vpop.f32.mrb[27].mxu1 }
0x15a3   : > { %v3282_v22 = vsel %vm2563_vm5, %v3281_v20, -inf }
0x15a4   : > { %3283 = vmax.xlane.f32.xlu1 %v3282_v22 }
0x1631   : > { %v3284_v23 = vpop.xlane.xlu1 %3283 }
0x1632   : > { %v3285_v25 = vsub.f32 %v3281_v20, %v3284_v23 }
0x1634   : > { %v3286_v26 = vmul.f32 1.442695, %v3285_v25 }
0x1636   : > { %6064 = vpow2.f32 %v3286_v26 }
0x1640   : > { %v6065_v27 = vpop.eup %6064 }
0x1641   : > { %v3288_v28 = vsel %vm2563_vm5, %v6065_v27, 0.0 }
0x1642   : > { %3289 = vadd.xlane.f32.xlu0 %v3288_v28 }
0x1658   : > { %3293 = vrot.lane.b32.xlu0 %v6662_v13, %s7202_s7 }
0x1670   : > { %v3198_v32 = vpop.f32.mrb[26].mxu0 }
0x1671   : > { %v3202_v33 = vadd.f32 %v3198_v32, %v2960_v59  ;;  %v5616_v35 = vpop.f32.mrb[27].mxu0 }
0x16cf   : > { %v3290_v36 = vpop.xlane.xlu0 %3289 }
0x16d0   : > { %6066 = vrcp.f32 %v3290_v36 }
0x16d3   : > { %v3294_v37 = vpop.permute.xlu0 %3293 }
0x16d4   : > { %5623 = vmatpush3.msra.mxu0 %v3294_v37 }
0x16d5   : > { %5880 = vmatprep.subr.bf16.mxu0 %v6158_v24 }
0x16da   : > { %v6067_v13 = vpop.eup %6066 }
0x16db   : > { %v3292_v38 = vmul.f32 %v6067_v13, %v6065_v27 }
0x16dd   : > { %5625 = vmatmul.mubr.msk.f32.vlgmr.msra.gmra.mrb[28].mxu0 %vm2563_vm5, %v3292_v38 }
0x16de   : > { %5642 = vmatprep.mubr.msk.f32.mxu0 %vm6159_vm1, %v6160_v34  ;;  %5882 = vmatpush3.bf16.msra.mxu0 %v5881_v53  ;;  %v5179_v53 = vld [vmem:[%s7109_s17 + $0x1] ss:$0 sm:$0xff] }
0x16df   : > { %5883 = vmatprep.subr.bf16.mxu0 %v6158_v24 }
0x16e2   : > { %5885 = vmatpush3.bf16.msra.mxu0 %v5884_v56 }
0x16e3   : > { %5898 = vmatprep.subr.bf16.mxu0 %v6158_v24 }
0x17b0   : > { %v3365_v39 = vpop.f32.mrb[28].mxu0 }
0x17b1   : > { %v5626_v40 = vpop.f32.mrb[29].mxu0  ;;  %5632 = vmatmul.mubr.msk.f32.vlgmr.msra.gmra.mrb[28].mxu1 %vm1093_vm2, %v3365_v39 }
0x17b2   : > { %5661 = vmatprep.mubr.msk.f32.mxu1 %vm6159_vm1, %v6160_v34  ;;  %5888 = vmatpush3.bf16.msra.mxu1 %v5887_v6  ;;  %v5180_v40 = vld [vmem:[%s7195_s18 + $0x20] sm:$0xff] }
0x17b3   : > { %5889 = vmatprep.subr.bf16.mxu1 %v6158_v24 }
0x17b6   : > { %5891 = vmatpush3.bf16.msra.mxu1 %v5890_v8 }
0x17b7   : > { %5892 = vmatprep.subr.bf16.mxu1 %v6158_v24 }
0x17ba   : > { %5894 = vmatpush3.bf16.msra.mxu1 %v5893_v11 }
0x17bb   : > { %5895 = vmatprep.subr.bf16.mxu1 %v6158_v24 }
0x17be   : > { %5897 = vmatpush3.bf16.msra.mxu1 %v5896_v15 }
0x17bf   : > { %5686 = vmatprep.subr.mxu1 %v6160_v34 }
0x1884   : > { %v3438_v41 = vpop.f32.mrb[28].mxu1 }
0x1885   : > { %v3442_v42 = vadd.f32 %v3438_v41, %v3202_v33  ;;  %v5633_v43 = vpop.f32.mrb[29].mxu1  ;;  %v5181_v41 = vld [vmem:[%s7195_s18 + $0x28] sm:$0xff] }
0x1886   : > { %v5183_v43 = vld [vmem:[%s7195_s18 + $0x38] sm:$0xff] }
0x1887   : > { %v3449_v44 = vadd.f32 %v5169_v2, %v3442_v42  ;;  %v5899_v2 = vpack.c.bf16 %v5181_v41, %v5180_v40  ;;  %v5182_v42 = vld [vmem:[%s7195_s18 + $0x30] sm:$0xff] }
0x1889   : > { %v3452_v45 = vsel %vm849_vm0, %v3449_v44, 0.0 }
0x188a   : > { %3453 = vadd.xlane.f32.xlu1 %v3452_v45 }
0x1917   : > { %v3454_v46 = vpop.xlane.xlu1 %3453 }
0x1918   : > { %v3455_v47 = vmul.f32 0.03125, %v3454_v46 }
0x191a   : > { %v3456_v48 = vsub.f32 %v3449_v44, %v3455_v47  ;;  %v5902_v44 = vpack.c.bf16 %v5183_v43, %v5182_v42 }
0x191c   : > { %v3457_v49 = vmul.f32 %v3456_v48, %v3456_v48 }
0x191e   : > { %v3458_v50 = vsel %vm849_vm0, %v3457_v49, 0.0  ;;  %v5178_v49 = vld [vmem:[%s7108_s16 + $0x1] ss:$0 sm:$0xff] }
0x191f   : > { %3459 = vadd.xlane.f32.xlu1 %v3458_v50 }
0x19ac   : > { %v3460_v57 = vpop.xlane.xlu1 %3459 }
0x19ad   : > { %v3461_v58 = vmul.f32 0.03125, %v3460_v57  ;;  %v5186_v57 = vld [vmem:[%s7111_s19 + $0x30] sm:$0xff] }
0x19af   : > { %v3462_v59 = vadd.f32 1e-05, %v3461_v58  ;;  %v5187_v58 = vld [vmem:[%s7111_s19 + $0x38] sm:$0xff] }
0x19b1   : > { %6068 = vrsqrt.f32 %v3462_v59  ;;  %v5908_v59 = vpack.c.bf16 %v5187_v58, %v5186_v57  ;;  %v5192_v57 = vld [vmem:[%s7112_s20 + $0x60] sm:$0xff]  ;;  %v5193_v58 = vld [vmem:[%s7112_s20 + $0x68] sm:$0xff] }
0x19bb   : > { %v6069_v60 = vpop.eup %6068 }
0x19bc   : > { %v3464_v62 = vmul.f32 %v6069_v60, %v3456_v48 }
0x19be   : > { %v3471_v3 = vmul.f32 %v5170_v61, %v3464_v62 }
0x19c0   : > { %v3478_v0 = vadd.f32 %v5171_v63, %v3471_v3 }
0x19c2   : > { %5643 = vmatmul.mubr.msk.f32.vlgmr.msra.gmra.mrb[30].mxu0 %vm849_vm0, %v3478_v0 }
0x19c3   : > { %5672 = vmatprep.mubr.msk.f32.mxu0 %vm6159_vm1, %v6160_v34  ;;  %5900 = vmatpush3.bf16.msra.mxu0 %v5899_v2 }
0x19c4   : > { %5901 = vmatprep.subr.bf16.mxu0 %v6158_v24 }
0x19c7   : > { %5903 = vmatpush3.bf16.msra.mxu0 %v5902_v44 }
0x19c8   : > { %5904 = vmatprep.subr.bf16.mxu0 %v6158_v24 }
0x1a95   : > { %v3568_v17 = vpop.f32.mrb[30].mxu0 }
0x1a96   : > { %v3569_v18 = vadd.f32 %v5172_v16, %v3568_v17  ;;  %v5644_v19 = vpop.f32.mrb[31].mxu0 }
0x1a98   : > { %v3573_v20 = vmul.f32 0.044715, %v3569_v18  ;;  %v3572_v27 = vmul.f32 0.5, %v3569_v18 }
0x1a9a   : > { %v3574_v21 = vmul.f32 %v3573_v20, %v3569_v18 }
0x1a9c   : > { %v3575_v22 = vmul.f32 %v3574_v21, %v3569_v18 }
0x1a9e   : > { %v3576_v23 = vadd.f32 %v3575_v22, %v3569_v18 }
0x1aa0   : > { %v3577_v25 = vmul.f32 0.7978846, %v3576_v23 }
0x1aa2   : > { %6070 = vtanh.f32 %v3577_v25 }
0x1aac   : > { %v6071_v26 = vpop.eup %6070 }
0x1aad   : > { %v3579_v28 = vadd.f32 1.0, %v6071_v26 }
0x1aaf   : > { %v3580_v29 = vmul.f32 %v3579_v28, %v3572_v27 }
0x1ab1   : > { %5662 = vmatmul.mubr.msk.f32.vlgmr.msra.gmra.mrb[30].mxu1 %vm2222_vm4, %v3580_v29  ;;  %v5188_v29 = vld [vmem:[%s7112_s20 + $0x40] sm:$0xff] }
0x1ab2   : > { %5688 = vmatprep.mubr.msk.f32.mxu1 %vm6159_vm1, %v6160_v34 }
0x1b84   : > { %v3656_v31 = vpop.f32.mrb[30].mxu1 }
0x1b85   : > { %v3657_v32 = vadd.f32 %v5174_v30, %v3656_v31  ;;  %v5663_v33 = vpop.f32.mrb[31].mxu1  ;;  %v5189_v30 = vld [vmem:[%s7112_s20 + $0x48] sm:$0xff] }
0x1b87   : > { %v3664_v35 = vsel %vm849_vm0, %v3657_v32, 0.0 }
0x1b88   : > { %3665 = vadd.xlane.f32.xlu1 %v3664_v35  ;;  %v5190_v35 = vld [vmem:[%s7112_s20 + $0x50] sm:$0xff] }
0x1c15   : > { %v3666_v36 = vpop.xlane.xlu1 %3665 }
0x1c16   : > { %v3667_v37 = vmul.f32 0.03125, %v3666_v36  ;;  %v5191_v36 = vld [vmem:[%s7112_s20 + $0x58] sm:$0xff] }
0x1c18   : > { %v3668_v13 = vsub.f32 %v3657_v32, %v3667_v37  ;;  %v5914_v32 = vpack.c.bf16 %v5189_v30, %v5188_v29  ;;  %v5911_v37 = vpack.c.bf16 %v5191_v36, %v5190_v35 }
0x1c1a   : > { %v3669_v38 = vmul.f32 %v3668_v13, %v3668_v13 }
0x1c1c   : > { %v3670_v39 = vsel %vm849_vm0, %v3669_v38, 0.0 }
0x1c1d   : > { %3671 = vadd.xlane.f32.xlu1 %v3670_v39 }
0x1caa   : > { %v3672_v45 = vpop.xlane.xlu1 %3671 }
0x1cab   : > { %v3673_v46 = vmul.f32 0.03125, %v3672_v45 }
0x1cad   : > { %v3674_v47 = vadd.f32 1e-05, %v3673_v46 }
0x1caf   : > { %6072 = vrsqrt.f32 %v3674_v47 }
0x1cb9   : > { %v6073_v48 = vpop.eup %6072 }
0x1cba   : > { %v3676_v50 = vmul.f32 %v6073_v48, %v3668_v13 }
0x1cbc   : > { %v3683_v54 = vmul.f32 %v5178_v49, %v3676_v50 }
0x1cbe   : > { %v3690_v56 = vadd.f32 %v5179_v53, %v3683_v54 }
0x1cc0   : > { %5673 = vmatmul.mubr.msk.f32.vlgmr.msra.gmra.mrb[32].mxu0 %vm849_vm0, %v3690_v56 }
0x1cc1   : > { %5906 = vmatpush3.bf16.msra.mxu0 %v5905_v55  ;;  %5683 = vmatprep.mubr.msk.f32.mxu0 %vm6159_vm1, %v6160_v34 }
0x1cc2   : > { %5907 = vmatprep.subr.bf16.mxu0 %v6158_v24 }
0x1cc5   : > { %5909 = vmatpush3.bf16.msra.mxu0 %v5908_v59  ;;  %v5917_v59 = vpack.c.bf16 %v5193_v58, %v5192_v57  ;;  %v5229_v57 = vld [vmem:[%s7118_s26 + $0x60] sm:$0xff]  ;;  %v5230_v58 = vld [vmem:[%s7118_s26 + $0x68] sm:$0xff] }
0x1cc6   : > { %5696 = vmatprep.subr.mxu0 %v6160_v34 }
0x1cc8   : > { %5684 = vmatmul.mubr.msk.f32.vlgmr.msra.gmra.mrb[34].mxu0 %vm849_vm0, %v3690_v56 }
0x1cc9   : > { %5698 = vmatprep.mubr.msk.f32.mxu0 %vm6159_vm1, %v6160_v34 }
0x1d93   : > { %v6875_v60 = vpop.f32.mrb[32].mxu0 }
0x1d94   : > { %4019 = vrot.lane.b32.xlu0 %v6875_v60, %s7196_s6  ;;  %v5674_v61 = vpop.f32.mrb[33].mxu0 }
0x1d9b   : > { %v6879_v62 = vpop.f32.mrb[34].mxu0 }
0x1d9c   : > { %4021 = vrot.lane.b32.xlu1 %v6879_v62, %s7196_s6  ;;  %v5685_v63 = vpop.f32.mrb[35].mxu0  ;;  %5687 = vmatpush3.xpose.msk.msra.mxu1 %vm1093_vm2, %v6879_v62  ;;  %s5239_s6 = sshll.u32 %s6335_s3, 7  ;;  %s6168_s3 = smov [#allocation2]  }
0x1d9d   : > { %5691 = vmatprep.subr.mxu1 %v6160_v34  ;;  %s7049_s12 = scalar_lea.hbm %s7203_s10, %s5239_s6  ;;  %s6098_s28 = sshll.u32 %s6168_s3, 4  ;;  %s6099_s28 = int_to_ptr.vmem [resolvable:$false] %s6098_s28 }
0x1d9e   : > { %s6100_s11 = scalar_lea.vmem %s6099_s28, 256 }
0x1d9f   : > { %5689 = vmatmul.mubr.msk.f32.vlgmr.msra.gmra.mrb[32].mxu1 %vm1093_vm2, %v6875_v60 }
0x1da0   : > { %5693 = vmatprep.mubr.msk.f32.mxu1 %vm6159_vm1, %v6160_v34 }
0x1e06   : > { %v4020_v0 = vpop.permute.xlu0 %4019 }
0x1e0e   : > { %v4022_v3 = vpop.permute.xlu1 %4021 }
0x1e0f   : > { %5697 = vmatpush3.xpose.msk.msra.mxu0 %vm1093_vm2, %v4022_v3 }
0x1e10   : > { %5910 = vmatprep.subr.bf16.mxu0 %v6158_v24 }
0x1e12   : > { %5699 = vmatmul.mubr.msk.f32.vlgmr.msra.gmra.mrb[36].mxu0 %vm1093_vm2, %v4020_v0 }
0x1e13   : > { %5710 = vmatprep.mubr.msk.f32.mxu0 %vm6159_vm1, %v6160_v34  ;;  %5912 = vmatpush3.bf16.msra.mxu0 %v5911_v37 }
0x1e14   : > { %5720 = vmatprep.subr.mxu0 %v6160_v34 }
0x1e72   : > { %v3927_v4 = vpop.f32.mrb[32].mxu1 }
0x1e73   : > { %v3931_v5 = vmul.f32 0.25, %v3927_v4  ;;  %v5690_v6 = vpop.f32.mrb[33].mxu1 }
0x1e75   : > { %v3932_v7 = vsel %vm2563_vm5, %v3931_v5, -inf }
0x1e76   : > { %3933 = vmax.xlane.f32.xlu0 %v3932_v7 }
0x1ee5   : > { %v4093_v1 = vpop.f32.mrb[36].mxu0 }
0x1ee6   : > { %v4097_v8 = vmul.f32 0.25, %v4093_v1  ;;  %v5700_v9 = vpop.f32.mrb[37].mxu0 }
0x1ee8   : > { %v4098_v10 = vsel %vm2563_vm5, %v4097_v8, -inf }
0x1ee9   : > { %4099 = vmax.xlane.f32.xlu1 %v4098_v10 }
0x1efa   : > { %4109 = vrot.lane.b32.xlu1 %v6879_v62, %s7197_s29  ;;  %s838_s29 = scalar_lea.vmem [#allocation2], %s5112_s1 }
0x1efe   : > { %4331 = vrot.lane.b32.xlu1 %v6875_v60, %s7198_s8 }
0x1f03   : > { %v3934_v11 = vpop.xlane.xlu0 %3933 }
0x1f04   : > { %v3935_v12 = vsub.f32 %v3931_v5, %v3934_v11 }
0x1f06   : > { %v3936_v14 = vmul.f32 1.442695, %v3935_v12 }
0x1f08   : > { %6074 = vpow2.f32 %v3936_v14 }
0x1f12   : > { %v6075_v15 = vpop.eup %6074 }
0x1f13   : > { %v3938_v16 = vsel %vm2563_vm5, %v6075_v15, 0.0 }
0x1f14   : > { %3939 = vadd.xlane.f32.xlu0 %v3938_v16  ;;  %v5195_v16 = vld [vmem:[%s7112_s20 + $0x78] sm:$0xff] }
0x1f76   : > { %v4100_v17 = vpop.xlane.xlu1 %4099 }
0x1f77   : > { %v4101_v18 = vsub.f32 %v4097_v8, %v4100_v17 }
0x1f79   : > { %v4102_v19 = vmul.f32 1.442695, %v4101_v18 }
0x1f7a   : > { %v4110_v28 = vpop.permute.xlu1 %4109 }
0x1f7b   : > { %6076 = vpow2.f32 %v4102_v19 }
0x1f7e   : > { %v4332_v2 = vpop.permute.xlu1 %4331 }
0x1f85   : > { %v6077_v20 = vpop.eup %6076 }
0x1f86   : > { %v4104_v21 = vsel %vm2563_vm5, %v6077_v20, 0.0 }
0x1f87   : > { %4105 = vadd.xlane.f32.xlu0 %v4104_v21 }
0x1f9d   : > { %3943 = vrot.lane.b32.xlu0 %v6879_v62, %s7199_s30 }
0x1fa1   : > { %4333 = vrot.lane.b32.xlu0 %v6879_v62, %s7198_s8  ;;  %v3940_v22 = vpop.xlane.xlu0 %3939  ;;  %s5049_s8 = sshll.u32 %s838_s29, 4  ;;  %s7051_s8 = int_to_ptr.vmem [resolvable:$true] %s5049_s8 }
0x1fa2   : > { %6078 = vrcp.f32 %v3940_v22  ;;  %p6101_p0 = scmp.lt.s32.totalorder %s7051_s8, %s6099_s28 }
0x1fac   : > { %v6079_v25 = vpop.eup %6078 }
0x1fad   : > { %v3942_v26 = vmul.f32 %v6079_v25, %v6075_v15  ;;  %v5194_v15 = vld [vmem:[%s7112_s20 + $0x70] sm:$0xff] }
0x1fae   : > { %v5920_v17 = vpack.c.bf16 %v5195_v16, %v5194_v15 }
0x2014   : > { %v4106_v23 = vpop.xlane.xlu0 %4105 }
0x2015   : > { %6080 = vrcp.f32 %v4106_v23 }
0x2018   : > { %v3944_v27 = vpop.permute.xlu0 %3943 }
0x2019   : > { %5692 = vmatpush3.msra.mxu1 %v3944_v27 }
0x201a   : > { %5694 = vmatmul.mubr.msk.f32.vlgmr.msra.gmra.mrb[34].mxu1 %vm2563_vm5, %v3942_v26  ;;  %5701 = vmatprep.subr.mxu1 %v6160_v34 }
0x201b   : > { %5702 = vmatpush3.msra.mxu1 %v4110_v28  ;;  %5703 = vmatprep.mubr.msk.f32.mxu1 %vm6159_vm1, %v6160_v34  ;;  %v5215_v28 = vld [vmem:[%s7113_s21 + $0x1] ss:$0 sm:$0xff] }
0x201c   : > { %5913 = vmatprep.subr.bf16.mxu1 %v6158_v24  ;;  %v4334_v40 = vpop.permute.xlu0 %4333 }
0x201f   : > { %v6081_v31 = vpop.eup %6080 }
0x2020   : > { %v4108_v33 = vmul.f32 %v6081_v31, %v6077_v20 }
0x2022   : > { %5704 = vmatmul.mubr.msk.f32.vlgmr.msra.gmra.mrb[36].mxu1 %vm2563_vm5, %v4108_v33 }
0x2023   : > { %5915 = vmatpush3.bf16.msra.mxu1 %v5914_v32  ;;  %5717 = vmatprep.mubr.msk.f32.mxu1 %vm6159_vm1, %v6160_v34 }
0x2024   : > { %5725 = vmatprep.subr.mxu1 %v6160_v34 }
0x20ed   : > { %v4015_v13 = vpop.f32.mrb[34].mxu1 }
0x20ee   : > { %v5695_v38 = vpop.f32.mrb[35].mxu1  ;;  %5718 = vmatmul.mubr.msk.f32.vlgmr.msra.gmra.mrb[38].mxu1 %vm1093_vm2, %v4015_v13 }
0x20ef   : > { %5727 = vmatprep.mubr.msk.f32.mxu1 %vm6159_vm1, %v6160_v34  ;;  %v5221_v38 = vld [vmem:[%s7116_s24 + $0x28] sm:$0xff] }
0x20f5   : > { %v4181_v39 = vpop.f32.mrb[36].mxu1 }
0x20f6   : > { %v5705_v41 = vpop.f32.mrb[37].mxu1  ;;  %5711 = vmatmul.mubr.msk.f32.vlgmr.msra.gmra.mrb[38].mxu0 %vm1093_vm2, %v4181_v39 }
0x20f7   : > { %5721 = vmatpush3.xpose.msk.msra.mxu0 %vm1093_vm2, %v4334_v40  ;;  %5722 = vmatprep.mubr.msk.f32.mxu0 %vm6159_vm1, %v6160_v34  ;;  %v5222_v40 = vld [vmem:[%s7116_s24 + $0x30] sm:$0xff]  ;;  %v5223_v41 = vld [vmem:[%s7116_s24 + $0x38] sm:$0xff] }
0x20f8   : > { %5916 = vmatprep.subr.bf16.mxu0 %v6158_v24 }
0x20fa   : > { %5723 = vmatmul.mubr.msk.f32.vlgmr.msra.gmra.mrb[40].mxu0 %vm1093_vm2, %v4332_v2  ;;  %v5926_v2 = vpack.c.bf16 %v5223_v41, %v5222_v40 }
0x20fb   : > { %5734 = vmatprep.mubr.msk.f32.mxu0 %vm6159_vm1, %v6160_v34  ;;  %5918 = vmatpush3.bf16.msra.mxu0 %v5917_v59  ;;  %v5935_v59 = vpack.c.bf16 %v5230_v58, %v5229_v57 }
0x20fc   : > { %5742 = vmatprep.subr.mxu0 %v6160_v34 }
0x21c1   : > { %v4327_v42 = vpop.f32.mrb[38].mxu1 }
0x21c2   : > { %v5719_v43 = vpop.f32.mrb[39].mxu1 }
0x21c9   : > { %v4254_v44 = vpop.f32.mrb[38].mxu0 }
0x21ca   : > { %v4328_v45 = vadd.f32 %v4327_v42, %v4254_v44  ;;  %v5712_v46 = vpop.f32.mrb[39].mxu0 }
0x21cb   : > { %v5218_v46 = vld [vmem:[%s7114_s22 + $0x1] ss:$0 sm:$0xff] }
0x21cd   : > { %v4405_v47 = vpop.f32.mrb[40].mxu0 }
0x21ce   : > { %v4409_v48 = vmul.f32 0.25, %v4405_v47  ;;  %v5724_v49 = vpop.f32.mrb[41].mxu0 }
0x21d0   : > { %v4410_v50 = vsel %vm2563_vm5, %v4409_v48, -inf }
0x21d1   : > { %4411 = vmax.xlane.f32.xlu0 %v4410_v50 }
0x21e7   : > { %4421 = vrot.lane.b32.xlu0 %v6879_v62, %s7200_s9  ;;  %s6094_s9 = scalar_lea.vmem %s7051_s8, 128 }
0x21e8   : > { %p6095_p11 = scmp.ne.s32.totalorder %s7051_s8, %s6094_s9  ;;  %p6102_p1 = scmp.lt.s32.totalorder %s6100_s11, %s6094_s9 }
0x21ea   : > { %p6096_p12 = pnand %p6095_p11, %p6352_p5  ;;  %p6103_p2 = por %p6102_p1, %p6101_p0 }
0x21eb   : > { %4571 = vrot.lane.b32.xlu0 %v6875_v60, %s7201_s0 }
0x21ec   : > { %p6097_p13 = pneg %p6096_p12 }
0x21ee   : > { %p6104_p3 = pnand %p6103_p2, %p6097_p13 }
0x225e   : > { %v4412_v51 = vpop.xlane.xlu0 %4411 }
0x225f   : > { %v4413_v52 = vsub.f32 %v4409_v48, %v4412_v51  ;;  %v5219_v48 = vld [vmem:[%s7115_s23 + $0x1] ss:$0 sm:$0xff] }
0x2260   : > { %v5225_v51 = vld [vmem:[%s7118_s26 + $0x40] sm:$0xff] }
0x2261   : > { %v4414_v53 = vmul.f32 1.442695, %v4413_v52  ;;  %v5226_v52 = vld [vmem:[%s7118_s26 + $0x48] sm:$0xff] }
0x2262   : > { %v4422_v54 = vpop.permute.xlu0 %4421 }
0x2263   : > { %6082 = vpow2.f32 %v4414_v53  ;;  %5726 = vmatpush3.msra.mxu1 %v4422_v54  ;;  %v5929_v53 = vpack.c.bf16 %v5226_v52, %v5225_v51  ;;  %v5227_v54 = vld [vmem:[%s7118_s26 + $0x50] sm:$0xff] }
0x2264   : > { %5737 = vmatprep.subr.mxu1 %v6160_v34 }
0x2266   : > { %v4572_v0 = vpop.permute.xlu0 %4571 }
0x226d   : > { %v6083_v55 = vpop.eup %6082 }
0x226e   : > { %v4416_v56 = vsel %vm2563_vm5, %v6083_v55, 0.0 }
0x226f   : > { %4417 = vadd.xlane.f32.xlu1 %v4416_v56 }
0x2280   : > { %4573 = vrot.lane.b32.xlu1 %v6879_v62, %s7201_s0 }
0x22fc   : > { %v4418_v60 = vpop.xlane.xlu1 %4417 }
0x22fd   : > { %6084 = vrcp.f32 %v4418_v60  ;;  %v5231_v60 = vld [vmem:[%s7118_s26 + $0x70] sm:$0xff] }
0x2300   : > { %v4574_v3 = vpop.permute.xlu1 %4573 }
0x2307   : > { %v6085_v61 = vpop.eup %6084 }
0x2308   : > { %v4420_v63 = vmul.f32 %v6085_v61, %v6083_v55  ;;  %v5228_v55 = vld [vmem:[%s7118_s26 + $0x58] sm:$0xff] }
0x2309   : > { %v5932_v56 = vpack.c.bf16 %v5228_v55, %v5227_v54  ;;  %v5232_v61 = vld [vmem:[%s7118_s26 + $0x78] sm:$0xff] }
0x230a   : > { %5728 = vmatmul.mubr.msk.f32.vlgmr.msra.gmra.mrb[40].mxu1 %vm2563_vm5, %v4420_v63  ;;  %v5938_v63 = vpack.c.bf16 %v5232_v61, %v5231_v60 }
0x230b   : > { %5738 = vmatpush3.xpose.msk.msra.mxu1 %vm1093_vm2, %v4574_v3  ;;  %5739 = vmatprep.mubr.msk.f32.mxu1 %vm6159_vm1, %v6160_v34  ;;  %v5234_v3 = vld [vmem:[%s7117_s25 + $0x1] ss:$0 sm:$0xff] }
0x230c   : > { %5919 = vmatprep.subr.bf16.mxu1 %v6158_v24 }
0x230e   : > { %5740 = vmatmul.mubr.msk.f32.vlgmr.msra.gmra.mrb[42].mxu1 %vm1093_vm2, %v4572_v0 }
0x230f   : > { %5751 = vmatprep.mubr.msk.f32.mxu1 %vm6159_vm1, %v6160_v34  ;;  %5921 = vmatpush3.bf16.msra.mxu1 %v5920_v17 }
0x2310   : > { %5928 = vmatprep.subr.bf16.mxu1 %v6158_v24 }
0x23dd   : > { %v4493_v4 = vpop.f32.mrb[40].mxu1 }
0x23de   : > { %v5729_v5 = vpop.f32.mrb[41].mxu1  ;;  %5735 = vmatmul.mubr.msk.f32.vlgmr.msra.gmra.mrb[42].mxu0 %vm1093_vm2, %v4493_v4 }
0x23df   : > { %5744 = vmatprep.mubr.msk.f32.mxu0 %vm6159_vm1, %v6160_v34 }
0x23e1   : > { %v4645_v6 = vpop.f32.mrb[42].mxu1 }
0x23e2   : > { %v4649_v7 = vmul.f32 0.25, %v4645_v6  ;;  %v5741_v1 = vpop.f32.mrb[43].mxu1 }
0x23e4   : > { %v4650_v8 = vsel %vm2563_vm5, %v4649_v7, -inf }
0x23e5   : > { %4651 = vmax.xlane.f32.xlu1 %v4650_v8 }
0x2472   : > { %v4652_v9 = vpop.xlane.xlu1 %4651 }
0x2473   : > { %v4653_v10 = vsub.f32 %v4649_v7, %v4652_v9 }
0x2475   : > { %v4654_v11 = vmul.f32 1.442695, %v4653_v10 }
0x2477   : > { %6086 = vpow2.f32 %v4654_v11 }
0x2481   : > { %v6087_v12 = vpop.eup %6086 }
0x2482   : > { %v4656_v14 = vsel %vm2563_vm5, %v6087_v12, 0.0 }
0x2483   : > { %4657 = vadd.xlane.f32.xlu0 %v4656_v14  ;;  %v5236_v14 = vld [vmem:[%s7119_s27 + $0x1] ss:$0 sm:$0xff] }
0x2499   : > { %4661 = vrot.lane.b32.xlu0 %v6879_v62, %s7202_s7 }
0x24b1   : > { %v4566_v18 = vpop.f32.mrb[42].mxu0 }
0x24b2   : > { %v4570_v19 = vadd.f32 %v4566_v18, %v4328_v45  ;;  %v5736_v20 = vpop.f32.mrb[43].mxu0 }
0x2510   : > { %v4658_v21 = vpop.xlane.xlu0 %4657 }
0x2511   : > { %6088 = vrcp.f32 %v4658_v21 }
0x2514   : > { %v4662_v22 = vpop.permute.xlu0 %4661 }
0x2515   : > { %5743 = vmatpush3.msra.mxu0 %v4662_v22 }
0x2516   : > { %5922 = vmatprep.subr.bf16.mxu0 %v6158_v24 }
0x251b   : > { %v6089_v62 = vpop.eup %6088 }
0x251c   : > { %v4660_v23 = vmul.f32 %v6089_v62, %v6087_v12 }
0x251e   : > { %5745 = vmatmul.mubr.msk.f32.vlgmr.msra.gmra.mrb[44].mxu0 %vm2563_vm5, %v4660_v23 }
0x251f   : > { %5762 = vmatprep.mubr.msk.f32.mxu0 %vm6159_vm1, %v6160_v34 }
0x25f1   : > { %v4733_v25 = vpop.f32.mrb[44].mxu0 }
0x25f2   : > { %v5746_v26 = vpop.f32.mrb[45].mxu0  ;;  %5752 = vmatmul.mubr.msk.f32.vlgmr.msra.gmra.mrb[44].mxu1 %vm1093_vm2, %v4733_v25 }
0x25f3   : > { %5781 = vmatprep.mubr.msk.f32.mxu1 %vm6159_vm1, %v6160_v34  ;;  %v5220_v34 = vld [vmem:[%s7116_s24 + $0x20] sm:$0xff]  ;;  %5930 = vmatpush3.bf16.msra.mxu1 %v5929_v53 }
0x25f4   : > { %v5923_v39 = vpack.c.bf16 %v5221_v38, %v5220_v34  ;;  %5931 = vmatprep.subr.bf16.mxu1 %v6158_v24 }
0x25f6   : > { %5924 = vmatpush3.bf16.msra.mxu0 %v5923_v39 }
0x25f7   : > { %5925 = vmatprep.subr.bf16.mxu0 %v6158_v24  ;;  %5933 = vmatpush3.bf16.msra.mxu1 %v5932_v56 }
0x25f8   : > { %5934 = vmatprep.subr.bf16.mxu1 %v6158_v24 }
0x25fa   : > { %5927 = vmatpush3.bf16.msra.mxu0 %v5926_v2 }
0x25fb   : > { %5936 = vmatpush3.bf16.msra.mxu1 %v5935_v59 }
0x25fc   : > { %5937 = vmatprep.subr.bf16.mxu1 %v6158_v24 }
0x25ff   : > { %5939 = vmatpush3.bf16.msra.mxu1 %v5938_v63 }
0x26c5   : > { %v4806_v27 = vpop.f32.mrb[44].mxu1 }
0x26c6   : > { %v4810_v29 = vadd.f32 %v4806_v27, %v4570_v19  ;;  %v5753_v30 = vpop.f32.mrb[45].mxu1 }
0x26c8   : > { %v4817_v31 = vadd.f32 %v5215_v28, %v4810_v29 }
0x26ca   : > { %v4822_v32 = vsel %vm849_vm0, %v4817_v31, 0.0 }
0x26cb   : > { %4823 = vadd.xlane.f32.xlu1 %v4822_v32 }
0x2758   : > { %v4824_v33 = vpop.xlane.xlu1 %4823 }
0x2759   : > { %v4825_v35 = vmul.f32 0.03125, %v4824_v33 }
0x275b   : > { %v4826_v36 = vsub.f32 %v4817_v31, %v4825_v35 }
0x275d   : > { %v4827_v37 = vmul.f32 %v4826_v36, %v4826_v36 }
0x275f   : > { %v4828_v13 = vsel %vm849_vm0, %v4827_v37, 0.0 }
0x2760   : > { %4829 = vadd.xlane.f32.xlu1 %v4828_v13 }
0x27ed   : > { %v4830_v42 = vpop.xlane.xlu1 %4829 }
0x27ee   : > { %v4831_v43 = vmul.f32 0.03125, %v4830_v42 }
0x27f0   : > { %v4832_v44 = vadd.f32 1e-05, %v4831_v43 }
0x27f2   : > { %6090 = vrsqrt.f32 %v4832_v44 }
0x27fc   : > { %v6091_v45 = vpop.eup %6090 }
0x27fd   : > { %v4834_v47 = vmul.f32 %v6091_v45, %v4826_v36 }
0x27ff   : > { %v4841_v49 = vmul.f32 %v5218_v46, %v4834_v47 }
0x2801   : > { %v4848_v50 = vadd.f32 %v5219_v48, %v4841_v49 }
0x2803   : > { %5763 = vmatmul.mubr.msk.f32.vlgmr.msra.gmra.mrb[46].mxu0 %vm849_vm0, %v4848_v50 }
0x28d6   : > { %v4942_v0 = vpop.f32.mrb[46].mxu0 }
0x28d7   : > { %v4943_v4 = vadd.f32 %v5234_v3, %v4942_v0  ;;  %v5764_v5 = vpop.f32.mrb[47].mxu0 }
0x28d9   : > { %v4947_v6 = vmul.f32 0.044715, %v4943_v4  ;;  %v4946_v11 = vmul.f32 0.5, %v4943_v4 }
0x28db   : > { %v4948_v7 = vmul.f32 %v4947_v6, %v4943_v4 }
0x28dd   : > { %v4949_v1 = vmul.f32 %v4948_v7, %v4943_v4 }
0x28df   : > { %v4950_v8 = vadd.f32 %v4949_v1, %v4943_v4 }
0x28e1   : > { %v4951_v9 = vmul.f32 0.7978846, %v4950_v8 }
0x28e3   : > { %6092 = vtanh.f32 %v4951_v9 }
0x28ed   : > { %v6093_v10 = vpop.eup %6092 }
0x28ee   : > { %v4953_v12 = vadd.f32 1.0, %v6093_v10 }
0x28f0   : > { %v4954_v24 = vmul.f32 %v4953_v12, %v4946_v11 }
0x28f2   : > { %5782 = vmatmul.mubr.msk.f32.vlgmr.msra.gmra.mrb[46].mxu1 %vm2222_vm4, %v4954_v24 }
0x29c5   : > { %v5030_v15 = vpop.f32.mrb[46].mxu1 }
0x29c6   : > { %v5031_v16 = vadd.f32 %v5236_v14, %v5030_v15  ;;  %v5783_v17 = vpop.f32.mrb[47].mxu1 }
0x29c8   : > { %5034 = vst.msk [vmem:[%s838_s29] sm:$0xff] %vm849_vm0, %v5031_v16 }
0x29c9   : > { %6107 = shalt.err (!%p6104_p3)
}
0x29ca   : > { %s6108_s0 = scalar_lea.hbm %s7049_s12, 128  ;;  %s6112_s1 = scalar_lea.hbm %s7203_s10, 256 }
0x29cb   : > { %p6109_p4 = scmp.ne.s32.totalorder %s7049_s12, %s6108_s0  ;;  %p6113_p9 = scmp.lt.u32.totalorder %s7049_s12, %s7203_s10 }
0x29cc   : > { %p6114_p10 = scmp.lt.u32.totalorder %s6112_s1, %s6108_s0  ;;  %p6116_p12 = scmp.lt.u32.totalorder %s6108_s0, %s7049_s12 }
0x29cd   : > { %p6110_p7 = pnand %p6109_p4, %p6352_p5 }
0x29ce   : > { %p6115_p11 = por %p6114_p10, %p6113_p9 }
0x29cf   : > { %p6111_p8 = pneg %p6110_p7 }
0x29d0   : > { %p6117_p13 = por %p6116_p12, %p6115_p11 }
0x29d2   : > { %p6118_p0 = pnand %p6117_p13, %p6111_p8 }
0x29d4   : > { %6121 = shalt.err (!%p6118_p0)
}
0x29d5   : > { %5940 = dma.vmem_to_hbm [thread:$0]  (%p6352_p5), %s7051_s8, 128, %s7049_s12, %s5036_s13  }
0x29d6 PF: > { %s7204_s6 = sld [smem:[#allocation7_spill]]  ;;  %s7205_s29 = sld [smem:[#allocation5_spill]] }
0x29dc   : > { %p5946_p1 = scmp.ge.s32.totalorder %s7204_s6, 2  ;;  %s5061_s4 = sand.u32 1, %s7205_s29  }
0x29dd   : > { %s5062_s9 = scalar_lea.sflag [#allocation3], %s5061_s4 }
0x29de   : > { %p5943_p2 = pnand %p5946_p1, %p6356_p6 }
0x29e0   : > { %6139 = dma.done.wait (!%p5943_p2), %s5062_s9, 128  }
0x29e1   : > { %6141 = vsyncadd (!%p5943_p2), %s5062_s9, 4294967168  ;;  %s7207_s30 = sld [smem:[#allocation8_spill]]  ;;  %s7208_s3 = sld [smem:[#allocation6_spill]] }
0x29e2   : > { %s7209_s9 = sld [smem:[#allocation9_spill]]  ;;  %s7210_s8 = smov %s6148_s5 }
0x29e7   : > { %p38_p3 = scmp.ge.s32.totalorder %s7207_s30, 4   ;;  %s7211_s5 = smov %s7208_s3 }
0x29e9   :  { %40 = sbr.rel (!%p38_p3) target bundleno = 22 (0x16), region = 179 }
0x29f0   :  { %5067 = vsyncpa [#allocation3], 1 }
0x29f1   :  { %5069 = vsyncpa [#allocation3 + $0x1], 1 }

</bundles_post_ra>
